<compile_context>
chip_gen: v7x
topology: tpu7x:2x2x1
jax: 0.10.0
libtpu: 0.0.40
codegen_flags: <defaults>
</compile_context>

<pallas_src>
import functools

import jax
import jax.numpy as jnp
from jax.experimental import pallas as pl
from jax.experimental.pallas import tpu as pltpu


def _round_up(x, m):
    return (x + m - 1) // m * m


def _decoder_kernel(z_ref, u_ref, w1z_ref, w1u_ref, b1_ref, w2_ref, b2_ref,
                    out_ref, *, ew_dtype):
    # ---- Layer 1: Linear(z_dim+1 -> 50); concat folded into two terms ----
    # bf16 operands on the MXU, f32 accumulation.
    h = jnp.dot(z_ref[...], w1z_ref[...], preferred_element_type=jnp.float32)
    h = h + u_ref[...].astype(jnp.float32) * w1u_ref[...] + b1_ref[...]

    # ---- Softplus (numerically stable). ew_dtype = bf16 on v6e/v7x, f32 on v5e.
    h = h.astype(ew_dtype)
    h = jnp.maximum(h, 0.0) + jnp.log1p(jnp.exp(-jnp.abs(h)))

    # ---- Layer 2: Linear(50 -> out_pad); bf16 MXU operands, f32 accumulation.
    o = jnp.dot(h.astype(jnp.bfloat16), w2_ref[...],
                preferred_element_type=jnp.float32) + b2_ref[...]

    # ---- Sigmoid via a single EUP tanh: sigmoid(x) = 0.5 * (1 + tanh(x/2)).
    o = o.astype(ew_dtype)
    out_ref[...] = (0.5 + 0.5 * jnp.tanh(0.5 * o)).astype(out_ref.dtype)


def _default_bf16_elementwise():
    # v6e / v7x have bf16 VPU+EUP paths; v5e (and older / unknown) do not.
    try:
        kind = jax.devices()[0].device_kind.lower()
    except Exception:
        return False
    return ("v6" in kind) or ("v7" in kind)


def _pick_batch_tile(B, block_b, min_split):
    if B <= min_split:
        return B  # single full-batch block (block == full dim, always legal)
    # >= 2 grid steps (v7x megacore), <= block_b rows, multiple of 16 (bf16 sublanes).
    return min(block_b, _round_up(pl.cdiv(B, 2), 16))


def decoder_forward(z, u, w1, b1, w2, b2, *, block_b=8192, min_split=512,
                    out_dtype=jnp.bfloat16, bf16_elementwise=None):
    """Decoder forward pass.

    z: (B, z_dim) float, u: (B, 1) float.
    Weights pre-transposed to (in, out):
      w1: (z_dim+1, hidden), b1: (1, hidden), w2: (hidden, out_dim), b2: (1, out_dim)
    Returns (B, out_dim) in `out_dtype` (bf16 by default; upcast downstream if
    f32 is required) = sigmoid(softplus(cat(z,u) @ w1 + b1) @ w2 + b2).
    """
    B, z_dim = z.shape
    hidden = w1.shape[1]
    out_dim = w2.shape[1]

    if bf16_elementwise is None:
        bf16_elementwise = _default_bf16_elementwise()
    ew_dtype = jnp.bfloat16 if bf16_elementwise else jnp.float32

    # Split w1 so cat([z, u]) is never materialized in HBM.
    w1z_bf = w1[:z_dim, :].astype(jnp.bfloat16)
    w1u_f = w1[z_dim:z_dim + 1, :].astype(jnp.float32)
    b1_f = b1.reshape(1, hidden).astype(jnp.float32)

    # Lane-dense output: pad out_dim up to a multiple of 128 (unmasked vst).
    out_pad = _round_up(out_dim, 128)
    w2_bf = jnp.pad(w2, ((0, 0), (0, out_pad - out_dim))).astype(jnp.bfloat16)
    b2_f = jnp.pad(b2.reshape(1, out_dim),
                   ((0, 0), (0, out_pad - out_dim))).astype(jnp.float32)

    # bf16 for the streamed batch inputs and the MXU weight operands.
    z_bf = z.astype(jnp.bfloat16)
    u_bf = u.astype(jnp.bfloat16)

    tb = _pick_batch_tile(B, block_b, min_split)
    grid = (pl.cdiv(B, tb),)

    batch_spec = lambda feat: pl.BlockSpec((tb, feat), lambda i: (i, 0))
    resident = lambda shape: pl.BlockSpec(shape, lambda i: (0, 0))

    out_bytes = jnp.dtype(out_dtype).itemsize
    cost = pl.CostEstimate(
        flops=2 * B * (z_dim * hidden + hidden * out_pad),
        transcendentals=B * (2 * hidden + out_pad),
        bytes_accessed=(z_bf.size * 2 + u_bf.size * 2 + w1z_bf.size * 2
                        + w1u_f.size * 4 + b1_f.size * 4 + w2_bf.size * 2
                        + b2_f.size * 4 + B * out_pad * out_bytes),
    )

    out_padded = pl.pallas_call(
        functools.partial(_decoder_kernel, ew_dtype=ew_dtype),
        out_shape=jax.ShapeDtypeStruct((B, out_pad), out_dtype),
        grid=grid,
        in_specs=[
            batch_spec(z_dim),        # z   : streamed per batch tile
            batch_spec(1),            # u   : streamed per batch tile
            resident(w1z_bf.shape),   # weights / biases: VMEM-resident
            resident(w1u_f.shape),
            resident(b1_f.shape),
            resident(w2_bf.shape),
            resident(b2_f.shape),
        ],
        out_specs=batch_spec(out_pad),
        compiler_params=pltpu.CompilerParams(
            dimension_semantics=("parallel",)),   # shard batch tiles across TCs (v7x)
        cost_estimate=cost,
    )(z_bf, u_bf, w1z_bf, w1u_f, b1_f, w2_bf, b2_f)

    if out_pad != out_dim:
        out_padded = out_padded[:, :out_dim]
    return out_padded


def init_decoder_params(key, z_dim=10, out_dim=102, hidden=50):
    """Deterministic synthetic init (PyTorch Linear-like uniform fan-in bound).

    Returned weights are already transposed to (in, out) layout for the kernel."""
    k1, k2, k3, k4 = jax.random.split(key, 4)
    in1, in2 = z_dim + 1, hidden
    bound1 = float(in1) ** -0.5
    bound2 = float(in2) ** -0.5
    w1 = jax.random.uniform(k1, (in1, hidden), jnp.float32, -bound1, bound1)
    b1 = jax.random.uniform(k2, (1, hidden), jnp.float32, -bound1, bound1)
    w2 = jax.random.uniform(k3, (in2, out_dim), jnp.float32, -bound2, bound2)
    b2 = jax.random.uniform(k4, (1, out_dim), jnp.float32, -bound2, bound2)
    return w1, b1, w2, b2


def _reference(z, u, w1, b1, w2, b2):
    zu = jnp.concatenate([z, u], axis=1)
    h = jax.nn.softplus(zu @ w1 + b1)
    return jax.nn.sigmoid(h @ w2 + b2)


if __name__ == "__main__":
    key = jax.random.PRNGKey(0)
    kz, ku, kp = jax.random.split(key, 3)

    z_dim, out_dim = 10, 102            # args.data == 'adult' -> out_dim = 102
    B = 1024                            # small, but exercises the 2-step grid path

    z = jax.random.normal(kz, (B, z_dim), jnp.float32)
    u = jax.random.bernoulli(ku, 0.5, (B, 1)).astype(jnp.float32)
    w1, b1, w2, b2 = init_decoder_params(kp, z_dim=z_dim, out_dim=out_dim)

    ref = _reference(z, u, w1, b1, w2, b2)

    # Default path: two 512-row tiles -> grid=(2,), both v7x TCs busy.
    out = jax.block_until_ready(decoder_forward(z, u, w1, b1, w2, b2))
    assert out.shape == (B, out_dim), out.shape
    err = float(jnp.max(jnp.abs(out.astype(jnp.float32) - ref)))
    assert err < 3e-2, f"max abs err {err} vs f32 reference (bf16 path)"

    # Tiny-batch single-block path.
    out_small = jax.block_until_ready(decoder_forward(z[:8], u[:8], w1, b1, w2, b2))
    err_small = float(jnp.max(jnp.abs(out_small.astype(jnp.float32) - ref[:8])))
    assert err_small < 3e-2, f"max abs err {err_small} (small batch)"

    print("KERNEL_OK")
</pallas_src>

<mosaic_0001>
module attributes {stable_mosaic.version = 11 : i64} {
  func.func @_decoder_kernel(%arg0: i32, %arg1: memref<512x10xbf16, #tpu.memory_space<vmem>>, %arg2: memref<512x1xbf16, #tpu.memory_space<vmem>>, %arg3: memref<10x50xbf16, #tpu.memory_space<vmem>>, %arg4: memref<1x50xf32, #tpu.memory_space<vmem>>, %arg5: memref<1x50xf32, #tpu.memory_space<vmem>>, %arg6: memref<50x128xbf16, #tpu.memory_space<vmem>>, %arg7: memref<1x128xf32, #tpu.memory_space<vmem>>, %arg8: memref<512x128xbf16, #tpu.memory_space<vmem>>) attributes {dimension_semantics = [#tpu.dimension_semantics<parallel>], iteration_bounds = array<i64: 2>, scalar_prefetch = 0 : i64, scratch_operands = 0 : i64, tpu.core_type = #tpu.core_type<tc>, window_params = [{transform_indices = @transform_0, window_bounds = array<i64: 512, 10>}, {transform_indices = @transform_1, window_bounds = array<i64: 512, 1>}, {pipeline_mode = #tpu.pipeline_mode<synchronous>, transform_indices = @transform_2, window_bounds = array<i64: 10, 50>}, {pipeline_mode = #tpu.pipeline_mode<synchronous>, transform_indices = @transform_3, window_bounds = array<i64: 1, 50>}, {pipeline_mode = #tpu.pipeline_mode<synchronous>, transform_indices = @transform_4, window_bounds = array<i64: 1, 50>}, {pipeline_mode = #tpu.pipeline_mode<synchronous>, transform_indices = @transform_5, window_bounds = array<i64: 50, 128>}, {pipeline_mode = #tpu.pipeline_mode<synchronous>, transform_indices = @transform_6, window_bounds = array<i64: 1, 128>}, {transform_indices = @transform_7, window_bounds = array<i64: 512, 128>}]} {
    %c0 = arith.constant 0 : index
    %c0_0 = arith.constant 0 : index
    %0 = vector.load %arg1[%c0, %c0_0] : memref<512x10xbf16, #tpu.memory_space<vmem>>, vector<512x10xbf16>
    %c0_1 = arith.constant 0 : index
    %c0_2 = arith.constant 0 : index
    %1 = vector.load %arg3[%c0_1, %c0_2] : memref<10x50xbf16, #tpu.memory_space<vmem>>, vector<10x50xbf16>
    %cst = arith.constant dense<0.000000e+00> : vector<512x50xf32>
    %2 = tpu.matmul %0, %1, %cst {dimension_numbers = #tpu.dot_dimension_numbers<[1], [0], [0], [1], [0, 0, 1, 1], [], []>} : vector<512x10xbf16>, vector<10x50xbf16>, vector<512x50xf32> -> vector<512x50xf32>
    %c0_3 = arith.constant 0 : index
    %c0_4 = arith.constant 0 : index
    %3 = vector.load %arg2[%c0_3, %c0_4] : memref<512x1xbf16, #tpu.memory_space<vmem>>, vector<512x1xbf16>
    %4 = arith.extf %3 : vector<512x1xbf16> to vector<512x1xf32>
    %c0_5 = arith.constant 0 : index
    %c0_6 = arith.constant 0 : index
    %5 = vector.load %arg4[%c0_5, %c0_6] : memref<1x50xf32, #tpu.memory_space<vmem>>, vector<1x50xf32>
    %6 = vector.broadcast %4 : vector<512x1xf32> to vector<512x50xf32>
    %7 = vector.broadcast %5 : vector<1x50xf32> to vector<512x50xf32>
    %8 = arith.mulf %6, %7 : vector<512x50xf32>
    %9 = arith.addf %2, %8 : vector<512x50xf32>
    %c0_7 = arith.constant 0 : index
    %c0_8 = arith.constant 0 : index
    %10 = vector.load %arg5[%c0_7, %c0_8] : memref<1x50xf32, #tpu.memory_space<vmem>>, vector<1x50xf32>
    %11 = vector.broadcast %10 : vector<1x50xf32> to vector<512x50xf32>
    %12 = arith.addf %9, %11 : vector<512x50xf32>
    %cst_9 = arith.constant 0.000000e+00 : f32
    %13 = vector.broadcast %cst_9 : f32 to vector<512x50xf32>
    %14 = arith.maximumf %12, %13 : vector<512x50xf32>
    %15 = math.absf %12 : vector<512x50xf32>
    %cst_10 = arith.constant 0.000000e+00 : f32
    %16 = vector.broadcast %cst_10 : f32 to vector<512x50xf32>
    %17 = arith.subf %16, %15 : vector<512x50xf32>
    %18 = math.exp %17 : vector<512x50xf32>
    %19 = math.log1p %18 : vector<512x50xf32>
    %20 = arith.addf %14, %19 : vector<512x50xf32>
    %21 = arith.truncf %20 : vector<512x50xf32> to vector<512x50xbf16>
    %c0_11 = arith.constant 0 : index
    %c0_12 = arith.constant 0 : index
    %22 = vector.load %arg6[%c0_11, %c0_12] : memref<50x128xbf16, #tpu.memory_space<vmem>>, vector<50x128xbf16>
    %cst_13 = arith.constant dense<0.000000e+00> : vector<512x128xf32>
    %23 = tpu.matmul %21, %22, %cst_13 {dimension_numbers = #tpu.dot_dimension_numbers<[1], [0], [0], [1], [0, 0, 1, 1], [], []>} : vector<512x50xbf16>, vector<50x128xbf16>, vector<512x128xf32> -> vector<512x128xf32>
    %c0_14 = arith.constant 0 : index
    %c0_15 = arith.constant 0 : index
    %24 = vector.load %arg7[%c0_14, %c0_15] : memref<1x128xf32, #tpu.memory_space<vmem>>, vector<1x128xf32>
    %25 = vector.broadcast %24 : vector<1x128xf32> to vector<512x128xf32>
    %26 = arith.addf %23, %25 : vector<512x128xf32>
    %cst_16 = arith.constant 5.000000e-01 : f32
    %27 = vector.broadcast %cst_16 : f32 to vector<512x128xf32>
    %28 = arith.mulf %27, %26 : vector<512x128xf32>
    %29 = math.tanh %28 : vector<512x128xf32>
    %cst_17 = arith.constant 5.000000e-01 : f32
    %30 = vector.broadcast %cst_17 : f32 to vector<512x128xf32>
    %31 = arith.mulf %30, %29 : vector<512x128xf32>
    %cst_18 = arith.constant 5.000000e-01 : f32
    %32 = vector.broadcast %cst_18 : f32 to vector<512x128xf32>
    %33 = arith.addf %32, %31 : vector<512x128xf32>
    %34 = arith.truncf %33 : vector<512x128xf32> to vector<512x128xbf16>
    %c0_19 = arith.constant 0 : index
    %c0_20 = arith.constant 0 : index
    %35 = vector.load %arg8[%c0_19, %c0_20] : memref<512x128xbf16, #tpu.memory_space<vmem>>, vector<512x128xbf16>
    tpu.vector_store %arg8[%c0_19, %c0_20], %34 {strides = array<i32>} : memref<512x128xbf16, #tpu.memory_space<vmem>>, vector<512x128xbf16>,
    return
  }
  func.func @transform_0(%arg0: i32) -> (i32, i32) {
    %c0_i32 = arith.constant 0 : i32
    %c0_i32_0 = arith.constant 0 : i32
    return %arg0, %c0_i32 : i32, i32
  }
  func.func @transform_1(%arg0: i32) -> (i32, i32) {
    %c0_i32 = arith.constant 0 : i32
    %c0_i32_0 = arith.constant 0 : i32
    return %arg0, %c0_i32 : i32, i32
  }
  func.func @transform_2(%arg0: i32) -> (i32, i32) {
    %c0_i32 = arith.constant 0 : i32
    %c0_i32_0 = arith.constant 0 : i32
    %c0_i32_1 = arith.constant 0 : i32
    return %c0_i32, %c0_i32_0 : i32, i32
  }
  func.func @transform_3(%arg0: i32) -> (i32, i32) {
    %c0_i32 = arith.constant 0 : i32
    %c0_i32_0 = arith.constant 0 : i32
    %c0_i32_1 = arith.constant 0 : i32
    return %c0_i32, %c0_i32_0 : i32, i32
  }
  func.func @transform_4(%arg0: i32) -> (i32, i32) {
    %c0_i32 = arith.constant 0 : i32
    %c0_i32_0 = arith.constant 0 : i32
    %c0_i32_1 = arith.constant 0 : i32
    return %c0_i32, %c0_i32_0 : i32, i32
  }
  func.func @transform_5(%arg0: i32) -> (i32, i32) {
    %c0_i32 = arith.constant 0 : i32
    %c0_i32_0 = arith.constant 0 : i32
    %c0_i32_1 = arith.constant 0 : i32
    return %c0_i32, %c0_i32_0 : i32, i32
  }
  func.func @transform_6(%arg0: i32) -> (i32, i32) {
    %c0_i32 = arith.constant 0 : i32
    %c0_i32_0 = arith.constant 0 : i32
    %c0_i32_1 = arith.constant 0 : i32
    return %c0_i32, %c0_i32_0 : i32, i32
  }
  func.func @transform_7(%arg0: i32) -> (i32, i32) {
    %c0_i32 = arith.constant 0 : i32
    %c0_i32_0 = arith.constant 0 : i32
    return %arg0, %c0_i32 : i32, i32
  }
}

</mosaic_0001>

<bundles_post_ra>
// kernel: tpu_custom_call.1
= control target key start
LH: loop header
LB: loop body
LE: loop exit
PB: predicated region body
PF: predicated region fallthrough
CT: control target
= control target key end

     0   :  { %12 = vsyncpa [#allocation3], 0  ;;  %s7384_s0 = inlined_call_operand.vmem [shape: bf16[1024,10], index: 0, kind: input, shape index: {}]   ;;  %s7385_s1 = inlined_call_operand.vmem [shape: bf16[1024,1], index: 1, kind: input, shape index: {}]   ;;  %s7386_s2 = inlined_call_operand.vmem [shape: bf16[10,50], index: 2, kind: input, shape index: {}]   ;;  %s7387_s3 = inlined_call_operand.vmem [shape: f32[1,50], index: 3, kind: input, shape index: {}]   ;;  %s7388_s4 = inlined_call_operand.vmem [shape: f32[1,50], index: 4, kind: input, shape index: {}]   ;;  %s7389_s5 = inlined_call_operand.vmem [shape: bf16[50,128], index: 5, kind: input, shape index: {}]   ;;  %s7390_s6 = inlined_call_operand.vmem [shape: f32[1,128], index: 6, kind: input, shape index: {}]   ;;  %s7391_s7 = inlined_call_operand.hbm [shape: bf16[1024,128], index: 7, kind: output, shape index: {}]  }
   0x1   :  { %14 = vsyncpa [#allocation3 + $0x1], 0  ;;  %s5136_s24 = smov 0   ;;  %s5138_s25 = smov 0  }
   0x2   :  { %s5140_s26 = smov 0   ;;  %s5142_s27 = smov 0  }
   0x3 LB: > { %s5157_s28 = sadd.s32 4294967295, %s5090_s27   ;;  %s3595_s29 = sadd.s32 4294967294, %s5090_s27   ;;  %s5090_s27 = sphi %s5142_s27, %s7720_s27   ;;  %s5086_s26 = sphi %s5140_s26, %s7719_s26   ;;  %s5082_s25 = sphi %s5138_s25, %s7718_s25   ;;  %s5078_s24 = sphi %s5136_s24, %s7717_s24  }
   0x4   : > { %s5161_s30 = sadd.s32 1, %s5090_s27   ;;  %s184_s8 = sadd.s32 1, %s5086_s26 }
   0x5   : > { %s181_s9 = ssub.s32 %s5090_s27, %s5161_s30  ;;  %p194_p0 = scmp.ne.s32.totalorder %s5086_s26, %s5082_s25 }
   0x6   : > { %p182_p1 = scmp.eq.s32.totalorder %s181_s9, 0  ;;  %p195_p2 = scmp.eq.s32.totalorder %s5157_s28, 1 }
   0x7   : > { %p200_p3 = scmp.ne.s32.totalorder %s5082_s25, %s5078_s24  ;;  %p201_p4 = scmp.eq.s32.totalorder %s3595_s29, 1 }
   0x8   : > { %s5172_s10 = scalar_select %p182_p1, %s5086_s26, %s184_s8  }
   0x9   : > { %p5174_p5 = por %p195_p2, %p194_p0  ;;  %p5178_p6 = por %p201_p4, %p200_p3 }
   0xa   : > { %p3598_p7 = scmp.ge.s32.totalorder %s5090_s27, 1  ;;  %p252_p8 = scmp.lt.s32.totalorder %s5090_s27, 3 }
   0xc   : > { %p253_p9 = pnand %p3598_p7, %p252_p8 }
   0xe   : > { %256 = sbr.rel (%p253_p9) target bundleno = 800 (0x320), region = 48 }
  0x15   : > { %v4605_v0 = vld [vmem:[%s7386_s2] sm:$0x1f]   ;;  %vm1150_vm0 = vcmask 1044480   ;;  %s3600_s15 = sshll.u32 %s5157_s28, 6  ;;  %v5092_v2 = vmov 0   ;;  %vm1053_vm1 = vcmask 80896  }
  0x16   : > { %4399 = vmatprep.subr.msk.bf16.mxu0 %vm1150_vm0, %v4605_v0  ;;  %v1152_v1 = vsel %vm1150_vm0, %v4605_v0, 0  ;;  %p290_p10 = scmp.lt.s32.totalorder %s3600_s15, 127  ;;  %4443 = vset.pattern.permute.xlu0 %v5092_v2  ;;  %vm2638_vm2 = vcmask 1040384   ;;  %s286_s13 = sand.u32 1, %s5082_s25  }
  0x17   : > { %4262 = vmatpush3.bf16.msra.mxu0 %v1152_v1  ;;  %4454 = vset.pattern.permute.xlu1 %v5092_v2  ;;  %s3599_s14 = sshll.u32 %s286_s13, 8 }
  0x18   : > { %s7722_s15 = smov (!%p290_p10, %s3600_s15), 127 }
  0x19   : > { %s3601_s16 = sshll.u32 %s7722_s15, 2  ;;  %s7246_s15 = scalar_lea.vmem [#allocation2], %s3599_s14 }
  0x1a   : > { %s5191_s19 = scalar_lea.vmem %s7384_s0, %s3601_s16  ;;  %s5201_s22 = scalar_lea.vmem %s7385_s1, %s3601_s16 }
  0x1b   : > { %v4606_v3 = vld [vmem:[%s5191_s19] sm:$0xff]   ;;  %v4607_v4 = vld [vmem:[%s5191_s19 + $0x8] sm:$0xff]   ;;  %v4608_v5 = vld [vmem:[%s5191_s19 + $0x10] sm:$0xff]   ;;  %s3841_s16 = sshll.u32 %s5157_s28, 12  ;;  %s3521_s17 = sshll.u32 %s7246_s15, 4  ;;  %s7337_s17 = int_to_ptr.vmem [resolvable:$true] %s3521_s17 }
  0x1c   : > { %4263 = vmatprep.mubr.msk.bf16.mxu0 %vm1053_vm1, %v4606_v3  ;;  %v3843_v6 = vld [vmem:[%s5201_s22] sm:$0xff]   ;;  %v4609_v7 = vld [vmem:[%s5191_s19 + $0x18] sm:$0xff]   ;;  %v4130_v10 = vld [vmem:[%s5201_s22 + $0x8] sm:$0xff]   ;;  %s7335_s20 = scalar_lea.hbm %s7391_s7, %s3841_s16  ;;  %s7343_s28 = scalar_lea.sflag [#allocation3], %s286_s13 }
  0x1d   : > { %4264 = vmatmul.mubr.msk.bf16.vlgmr.msra.gmra.mrb[0].mxu0 %vm1053_vm1, %v4607_v4  ;;  %v3844_v8 = vunpack.c.l.bf16 %v3843_v6  ;;  %v3845_v9 = vunpack.c.h.bf16 %v3843_v6  ;;  %v4610_v11 = vld [vmem:[%s5191_s19 + $0x20] sm:$0xff]   ;;  %v3848_v12 = vunpack.c.l.bf16 %v4130_v10  ;;  %v3849_v13 = vunpack.c.h.bf16 %v4130_v10  ;;  %v4131_v14 = vld [vmem:[%s5201_s22 + $0x10] sm:$0xff]   ;;  %v4132_v21 = vld [vmem:[%s5201_s22 + $0x18] sm:$0xff]   ;;  %s5028_s21 = scalar_lea.vmem %s7337_s17, 4096 }
  0x1e   : > { %4267 = vmatprep.mubr.msk.bf16.mxu0 %vm1053_vm1, %v4608_v5  ;;  %v3852_v16 = vunpack.c.l.bf16 %v4131_v14  ;;  %v3853_v17 = vunpack.c.h.bf16 %v4131_v14  ;;  %v4133_v18 = vld [vmem:[%s5201_s22 + $0x20] sm:$0xff]   ;;  %v3856_v24 = vunpack.c.l.bf16 %v4132_v21  ;;  %v3857_v25 = vunpack.c.h.bf16 %v4132_v21  ;;  %v4135_v26 = vld [vmem:[%s5201_s22 + $0x30] sm:$0xff]   ;;  %v4134_v27 = vld [vmem:[%s5201_s22 + $0x28] sm:$0xff]   ;;  %p5029_p11 = scmp.ne.s32.totalorder %s7337_s17, %s5028_s21 }
  0x1f   : > { %v4444_v15 = vpack.i.bf16 %v3845_v9, %v3844_v8  ;;  %v4449_v19 = vpack.i.bf16 %v3849_v13, %v3848_v12  ;;  %v3860_v20 = vunpack.c.l.bf16 %v4133_v18  ;;  %v3861_v23 = vunpack.c.h.bf16 %v4133_v18  ;;  %v4136_v31 = vld [vmem:[%s5201_s22 + $0x38] sm:$0xff]   ;;  %v4611_v32 = vld [vmem:[%s5191_s19 + $0x28] sm:$0xff]   ;;  %v4612_v33 = vld [vmem:[%s5191_s19 + $0x30] sm:$0xff]  }
  0x20   : > { %v4455_v22 = vpack.i.bf16 %v3853_v17, %v3852_v16  ;;  %v4460_v28 = vpack.i.bf16 %v3857_v25, %v3856_v24  ;;  %v3864_v29 = vunpack.c.l.bf16 %v4134_v27  ;;  %v3865_v30 = vunpack.c.h.bf16 %v4134_v27  ;;  %v4137_v37 = vld [vmem:[%s5201_s22 + $0x40] sm:$0xff]   ;;  %v4138_v41 = vld [vmem:[%s5201_s22 + $0x48] sm:$0xff]   ;;  %v4139_v45 = vld [vmem:[%s5201_s22 + $0x50] sm:$0xff]   ;;  %p5030_p12 = pnand %p5029_p11, %p5174_p5 }
  0x21   : > { %4445 = vperm.xlu0 %4443, %v4444_v15   ;;  %v4465_v34 = vpack.i.bf16 %v3861_v23, %v3860_v20  ;;  %v3868_v35 = vunpack.c.l.bf16 %v4135_v26  ;;  %v3869_v36 = vunpack.c.h.bf16 %v4135_v26  ;;  %v3872_v39 = vunpack.c.l.bf16 %v4136_v31  ;;  %v4140_v49 = vld [vmem:[%s5201_s22 + $0x58] sm:$0xff]   ;;  %v4614_v51 = vld [vmem:[%s5191_s19 + $0x40] sm:$0xff]   ;;  %v4142_v59 = vld [vmem:[%s5201_s22 + $0x68] sm:$0xff]  }
  0x22   : > { %4456 = vperm.xlu1 %4454, %v4455_v22   ;;  %v4470_v38 = vpack.i.bf16 %v3865_v30, %v3864_v29  ;;  %v3873_v40 = vunpack.c.h.bf16 %v4136_v31  ;;  %v3876_v43 = vunpack.c.l.bf16 %v4137_v37  ;;  %v3877_v44 = vunpack.c.h.bf16 %v4137_v37  ;;  %v4613_v50 = vld [vmem:[%s5191_s19 + $0x38] sm:$0xff]   ;;  %v4141_v55 = vld [vmem:[%s5201_s22 + $0x60] sm:$0xff]   ;;  %v4143_v63 = vld [vmem:[%s5201_s22 + $0x70] sm:$0xff]   ;;  %p5031_p13 = pneg %p5030_p12 }
  0x23   : > { %v4475_v42 = vpack.i.bf16 %v3869_v36, %v3868_v35  ;;  %v3880_v47 = vunpack.c.l.bf16 %v4138_v41  ;;  %v3881_v48 = vunpack.c.h.bf16 %v4138_v41  ;;  %v3884_v53 = vunpack.c.l.bf16 %v4139_v45  ;;  %v4615_v3 = vld [vmem:[%s5191_s19 + $0x48] sm:$0xff]   ;;  %v4144_v4 = vld [vmem:[%s5201_s22 + $0x78] sm:$0xff]   ;;  %v4616_v5 = vld [vmem:[%s5191_s19 + $0x50] sm:$0xff]  }
  0x24   : > { %v4480_v46 = vpack.i.bf16 %v3873_v40, %v3872_v39  ;;  %v4485_v52 = vpack.i.bf16 %v3877_v44, %v3876_v43  ;;  %v3885_v54 = vunpack.c.h.bf16 %v4139_v45  ;;  %v3888_v57 = vunpack.c.l.bf16 %v4140_v49  ;;  %v4145_v9 = vld [vmem:[%s5201_s22 + $0x80] sm:$0xff]   ;;  %v4146_v13 = vld [vmem:[%s5201_s22 + $0x88] sm:$0xff]   ;;  %v4147_v17 = vld [vmem:[%s5201_s22 + $0x90] sm:$0xff]  }
  0x25   : > { %4268 = vmatmul.mubr.msk.bf16.gmra.mrb[4].mxu0 %vm1053_vm1, %v4609_v7  ;;  %4450 = vperm.xlu0 %4443, %v4449_v19   ;;  %v4490_v56 = vpack.i.bf16 %v3881_v48, %v3880_v47  ;;  %v3889_v58 = vunpack.c.h.bf16 %v4140_v49  ;;  %v3892_v61 = vunpack.c.l.bf16 %v4141_v55  ;;  %v3893_v62 = vunpack.c.h.bf16 %v4141_v55  ;;  %v4617_v18 = vld [vmem:[%s5191_s19 + $0x58] sm:$0xff]   ;;  %v4618_v23 = vld [vmem:[%s5191_s19 + $0x60] sm:$0xff]   ;;  %v4150_v31 = vld [vmem:[%s5201_s22 + $0xa8] sm:$0xff]  }
  0x26   : > { %4271 = vmatprep.mubr.msk.bf16.mxu0 %vm1053_vm1, %v4610_v11  ;;  %4461 = vperm.xlu1 %4454, %v4460_v28   ;;  %v4495_v60 = vpack.i.bf16 %v3885_v54, %v3884_v53  ;;  %v3896_v1 = vunpack.c.l.bf16 %v4142_v59  ;;  %v3897_v2 = vunpack.c.h.bf16 %v4142_v59  ;;  %v3900_v7 = vunpack.c.l.bf16 %v4143_v63  ;;  %v4148_v22 = vld [vmem:[%s5201_s22 + $0x98] sm:$0xff]   ;;  %v4149_v27 = vld [vmem:[%s5201_s22 + $0xa0] sm:$0xff]   ;;  %v4151_v35 = vld [vmem:[%s5201_s22 + $0xb0] sm:$0xff]  }
  0x27   : > { %v4500_v0 = vpack.i.bf16 %v3889_v58, %v3888_v57  ;;  %v4505_v6 = vpack.i.bf16 %v3893_v62, %v3892_v61  ;;  %v3901_v8 = vunpack.c.h.bf16 %v4143_v63  ;;  %v3904_v11 = vunpack.c.l.bf16 %v4144_v4  ;;  %v4152_v39 = vld [vmem:[%s5201_s22 + $0xb8] sm:$0xff]   ;;  %v4619_v40 = vld [vmem:[%s5191_s19 + $0x68] sm:$0xff]   ;;  %v4620_v44 = vld [vmem:[%s5191_s19 + $0x70] sm:$0xff]  }
  0x28   : > { %v4510_v10 = vpack.i.bf16 %v3897_v2, %v3896_v1  ;;  %v3905_v12 = vunpack.c.h.bf16 %v4144_v4  ;;  %v3908_v15 = vunpack.c.l.bf16 %v4145_v9  ;;  %v3909_v16 = vunpack.c.h.bf16 %v4145_v9  ;;  %v4153_v45 = vld [vmem:[%s5201_s22 + $0xc0] sm:$0xff]   ;;  %v4154_v49 = vld [vmem:[%s5201_s22 + $0xc8] sm:$0xff]   ;;  %v4155_v53 = vld [vmem:[%s5201_s22 + $0xd0] sm:$0xff]  }
  0x29   : > { %4466 = vperm.xlu0 %4443, %v4465_v34   ;;  %v4515_v14 = vpack.i.bf16 %v3901_v8, %v3900_v7  ;;  %v3912_v20 = vunpack.c.l.bf16 %v4146_v13  ;;  %v3913_v21 = vunpack.c.h.bf16 %v4146_v13  ;;  %v3916_v25 = vunpack.c.l.bf16 %v4147_v17  ;;  %v4156_v57 = vld [vmem:[%s5201_s22 + $0xd8] sm:$0xff]   ;;  %v4622_v62 = vld [vmem:[%s5191_s19 + $0x80] sm:$0xff]   ;;  %v4159_v7 = vld [vmem:[%s5201_s22 + $0xf0] sm:$0xff]  }
  0x2a   : > { %4471 = vperm.xlu1 %4454, %v4470_v38   ;;  %v4520_v19 = vpack.i.bf16 %v3905_v12, %v3904_v11  ;;  %v4525_v24 = vpack.i.bf16 %v3909_v16, %v3908_v15  ;;  %v3917_v26 = vunpack.c.h.bf16 %v4147_v17  ;;  %v3920_v29 = vunpack.c.l.bf16 %v4148_v22  ;;  %v4621_v58 = vld [vmem:[%s5191_s19 + $0x78] sm:$0xff]   ;;  %v4157_v63 = vld [vmem:[%s5201_s22 + $0xe0] sm:$0xff]   ;;  %v4623_v12 = vld [vmem:[%s5191_s19 + $0x88] sm:$0xff]  }
  0x2b   : > { %v4530_v28 = vpack.i.bf16 %v3913_v21, %v3912_v20  ;;  %v3921_v30 = vunpack.c.h.bf16 %v4148_v22  ;;  %v3925_v34 = vunpack.c.h.bf16 %v4149_v27  ;;  %v3928_v37 = vunpack.c.l.bf16 %v4150_v31  ;;  %v4160_v11 = vld [vmem:[%s5201_s22 + $0xf8] sm:$0xff]   ;;  %v4624_v16 = vld [vmem:[%s5191_s19 + $0x90] sm:$0xff]  }
  0x2c   : > { %v3929_v38 = vunpack.c.h.bf16 %v4150_v31  ;;  %v3933_v43 = vunpack.c.h.bf16 %v4151_v35  ;;  %v3936_v47 = vunpack.c.l.bf16 %v4152_v39  ;;  %v3937_v48 = vunpack.c.h.bf16 %v4152_v39  ;;  %v4625_v22 = vld [vmem:[%s5191_s19 + $0x98] sm:$0xff]   ;;  %v4634_v31 = vld [vmem:[%s5191_s19 + $0xe0] sm:$0xff]  }
  0x2d   : > { %4272 = vmatmul.mubr.msk.bf16.gmra.mrb[8].mxu0 %vm1053_vm1, %v4611_v32  ;;  %4476 = vperm.xlu0 %4443, %v4475_v42   ;;  %v4535_v32 = vpack.i.bf16 %v3917_v26, %v3916_v25  ;;  %v4540_v36 = vpack.i.bf16 %v3921_v30, %v3920_v29  ;;  %v3932_v42 = vunpack.c.l.bf16 %v4151_v35  ;;  %v3944_v55 = vunpack.c.l.bf16 %v4154_v49  ;;  %v4628_v25 = vld [vmem:[%s5191_s19 + $0xb0] sm:$0xff]   ;;  %v4629_v26 = vld [vmem:[%s5191_s19 + $0xb8] sm:$0xff]   ;;  %v4638_v35 = vld [vmem:[%s7389_s5] sm:$0xff]  }
  0x2e   : > { %4275 = vmatprep.mubr.msk.bf16.mxu0 %vm1053_vm1, %v4612_v33  ;;  %4481 = vperm.xlu1 %4454, %v4480_v46   ;;  %v3924_v33 = vunpack.c.l.bf16 %v4149_v27  ;;  %v4550_v46 = vpack.i.bf16 %v3929_v38, %v3928_v37  ;;  %v4560_v54 = vpack.i.bf16 %v3937_v48, %v3936_v47  ;;  %v3949_v61 = vunpack.c.h.bf16 %v4155_v53  ;;  %v4630_v27 = vld [vmem:[%s5191_s19 + $0xc0] sm:$0xff]   ;;  %v4632_v29 = vld [vmem:[%s5191_s19 + $0xd0] sm:$0xff]   ;;  %v4633_v30 = vld [vmem:[%s5191_s19 + $0xd8] sm:$0xff]  }
  0x2f   : > { %v3952_v1 = vunpack.c.l.bf16 %v4156_v57  ;;  %v3953_v2 = vunpack.c.h.bf16 %v4156_v57  ;;  %v3965_v15 = vunpack.c.h.bf16 %v4159_v7  ;;  %4327 = vmatprep.subr.bf16.mxu1 %v4638_v35  ;;  %v4639_v37 = vld [vmem:[%s7389_s5 + $0x8] sm:$0xff]  }
  0x30   : > { %v4545_v41 = vpack.i.bf16 %v3925_v34, %v3924_v33  ;;  %v4636_v33 = vld [vmem:[%s5191_s19 + $0xf0] sm:$0xff]   ;;  %v4637_v34 = vld [vmem:[%s5191_s19 + $0xf8] sm:$0xff]   ;;  %4328 = vmatpush3.bf16.msra.mxu1 %v4638_v35 }
  0x31   : > { %4486 = vperm.xlu0 %4443, %v4485_v52   ;;  %v3941_v52 = vunpack.c.h.bf16 %v4153_v45  ;;  %v4580_v8 = vpack.i.bf16 %v3953_v2, %v3952_v1  ;;  %4329 = vmatprep.subr.bf16.mxu1 %v4639_v37 }
  0x32   : > { %4491 = vperm.xlu1 %4454, %v4490_v56   ;;  %v3945_v56 = vunpack.c.h.bf16 %v4154_v49 }
  0x34   : > { %4330 = vmatpush3.bf16.msra.mxu1 %v4639_v37 }
  0x35   : > { %4276 = vmatmul.mubr.msk.bf16.gmra.mrb[12].mxu0 %vm1053_vm1, %v4613_v50  ;;  %4496 = vperm.xlu0 %4443, %v4495_v60   ;;  %v4555_v50 = vpack.i.bf16 %v3933_v43, %v3932_v42  ;;  %v3948_v60 = vunpack.c.l.bf16 %v4155_v53 }
  0x36   : > { %4279 = vmatprep.mubr.msk.bf16.mxu0 %vm1053_vm1, %v4614_v51  ;;  %4501 = vperm.xlu1 %4454, %v4500_v0   ;;  %v3940_v51 = vunpack.c.l.bf16 %v4153_v45  ;;  %v4570_v0 = vpack.i.bf16 %v3945_v56, %v3944_v55 }
  0x37   : > { %v4575_v4 = vpack.i.bf16 %v3949_v61, %v3948_v60 }
  0x38   : > { %v4565_v59 = vpack.i.bf16 %v3941_v52, %v3940_v51 }
  0x39   : > { %4506 = vperm.xlu0 %4443, %v4505_v6   ;;  %v3957_v6 = vunpack.c.h.bf16 %v4157_v63 }
  0x3a   : > { %4511 = vperm.xlu1 %4454, %v4510_v10  }
  0x3d   : > { %4280 = vmatmul.mubr.msk.bf16.gmra.mrb[16].mxu0 %vm1053_vm1, %v4615_v3  ;;  %4516 = vperm.xlu0 %4443, %v4515_v14   ;;  %v4158_v3 = vld [vmem:[%s5201_s22 + $0xe8] sm:$0xff]   ;;  %v3964_v14 = vunpack.c.l.bf16 %v4159_v7  ;;  %s5093_s22 = smov [#allocation2]  }
  0x3e   : > { %4283 = vmatprep.mubr.msk.bf16.mxu0 %vm1053_vm1, %v4616_v5  ;;  %4521 = vperm.xlu1 %4454, %v4520_v19   ;;  %v3956_v5 = vunpack.c.l.bf16 %v4157_v63  ;;  %v3960_v9 = vunpack.c.l.bf16 %v4158_v3  ;;  %v3961_v10 = vunpack.c.h.bf16 %v4158_v3  ;;  %v3969_v19 = vunpack.c.h.bf16 %v4160_v11  ;;  %s5032_s23 = sshll.u32 %s5093_s22, 4  ;;  %s5033_s23 = int_to_ptr.vmem [resolvable:$false] %s5032_s23 }
  0x3f   : > { %v4595_v20 = vpack.i.bf16 %v3965_v15, %v3964_v14  ;;  %s5034_s29 = scalar_lea.vmem %s5033_s23, 8192  ;;  %p5035_p0 = scmp.lt.s32.totalorder %s7337_s17, %s5033_s23 }
  0x40   : > { %v4585_v13 = vpack.i.bf16 %v3957_v6, %v3956_v5  ;;  %v4590_v17 = vpack.i.bf16 %v3961_v10, %v3960_v9  ;;  %p5036_p1 = scmp.lt.s32.totalorder %s5034_s29, %s5028_s21 }
  0x41   : > { %4526 = vperm.xlu0 %4443, %v4525_v24   ;;  %v4627_v24 = vld [vmem:[%s5191_s19 + $0xa8] sm:$0xff]  }
  0x42   : > { %4531 = vperm.xlu1 %4454, %v4530_v28   ;;  %v4631_v28 = vld [vmem:[%s5191_s19 + $0xc8] sm:$0xff]   ;;  %p5037_p2 = por %p5036_p1, %p5035_p0 }
  0x44   : > { %p5038_p3 = pnand %p5037_p2, %p5031_p13 }
  0x45   : > { %4284 = vmatmul.mubr.msk.bf16.gmra.mrb[20].mxu0 %vm1053_vm1, %v4617_v18  ;;  %4536 = vperm.xlu0 %4443, %v4535_v32   ;;  %v3968_v18 = vunpack.c.l.bf16 %v4160_v11  ;;  %v4635_v32 = vld [vmem:[%s5191_s19 + $0xe8] sm:$0xff]  }
  0x46   : > { %4287 = vmatprep.mubr.msk.bf16.mxu0 %vm1053_vm1, %v4618_v23  ;;  %4541 = vperm.xlu1 %4454, %v4540_v36   ;;  %v4626_v23 = vld [vmem:[%s5191_s19 + $0xa0] sm:$0xff]  }
  0x47   : > { %v4600_v21 = vpack.i.bf16 %v3969_v19, %v3968_v18 }
  0x49   : > { %4546 = vperm.xlu0 %4443, %v4545_v41   ;;  %v4640_v41 = vld [vmem:[%s7389_s5 + $0x10] sm:$0xff]  }
  0x4a   : > { %4551 = vperm.xlu1 %4454, %v4550_v46   ;;  %4331 = vmatprep.subr.bf16.mxu1 %v4640_v41 }
  0x4b   : > { %4332 = vmatpush3.bf16.msra.mxu1 %v4640_v41 }
  0x4d   : > { %4288 = vmatmul.mubr.msk.bf16.gmra.mrb[24].mxu0 %vm1053_vm1, %v4619_v40  ;;  %4556 = vperm.xlu0 %4443, %v4555_v50  }
  0x4e   : > { %4291 = vmatprep.mubr.msk.bf16.mxu0 %vm1053_vm1, %v4620_v44  ;;  %4561 = vperm.xlu1 %4454, %v4560_v54   ;;  %v4641_v44 = vld [vmem:[%s7389_s5 + $0x18] ss:$0 sps:$4 sm:$0x11]  }
  0x4f   : > { %4400 = vmatprep.subr.msk.bf16.mxu1 %vm2638_vm2, %v4641_v44  ;;  %v2640_v50 = vsel %vm2638_vm2, %v4641_v44, 0 }
  0x50   : > { %4334 = vmatpush3.bf16.msra.mxu1 %v2640_v50 }
  0x51   : > { %4566 = vperm.xlu0 %4443, %v4565_v59  }
  0x52   : > { %4571 = vperm.xlu1 %4454, %v4570_v0  }
  0x55   : > { %4292 = vmatmul.mubr.msk.bf16.gmra.mrb[28].mxu0 %vm1053_vm1, %v4621_v58  ;;  %4576 = vperm.xlu0 %4443, %v4575_v4  }
  0x56   : > { %4295 = vmatprep.mubr.msk.bf16.mxu0 %vm1053_vm1, %v4622_v62  ;;  %4581 = vperm.xlu1 %4454, %v4580_v8   ;;  %v5333_v62 = vld [vmem:[%s7387_s3] ss:$0 sm:$0xff] }
  0x59   : > { %4586 = vperm.xlu0 %4443, %v4585_v13  }
  0x5a   : > { %4591 = vperm.xlu1 %4454, %v4590_v17  }
  0x5d   : > { %4296 = vmatmul.mubr.msk.bf16.gmra.mrb[32].mxu0 %vm1053_vm1, %v4623_v12  ;;  %4596 = vperm.xlu0 %4443, %v4595_v20  }
  0x5e   : > { %4299 = vmatprep.mubr.msk.bf16.mxu0 %vm1053_vm1, %v4624_v16  ;;  %4601 = vperm.xlu1 %4454, %v4600_v21  }
  0x65   : > { %4300 = vmatmul.mubr.msk.bf16.gmra.mrb[36].mxu0 %vm1053_vm1, %v4625_v22 }
  0x66   : > { %4303 = vmatprep.mubr.msk.bf16.mxu0 %vm1053_vm1, %v4626_v23 }
  0x6d   : > { %4304 = vmatmul.mubr.msk.bf16.gmra.mrb[40].mxu0 %vm1053_vm1, %v4627_v24 }
  0x6e   : > { %4307 = vmatprep.mubr.msk.bf16.mxu0 %vm1053_vm1, %v4628_v25 }
  0x75   : > { %4308 = vmatmul.mubr.msk.bf16.gmra.mrb[44].mxu0 %vm1053_vm1, %v4629_v26 }
  0x76   : > { %4311 = vmatprep.mubr.msk.bf16.mxu0 %vm1053_vm1, %v4630_v27 }
  0x7d   : > { %4312 = vmatmul.mubr.msk.bf16.gmra.mrb[48].mxu0 %vm1053_vm1, %v4631_v28 }
  0x7e   : > { %4315 = vmatprep.mubr.msk.bf16.mxu0 %vm1053_vm1, %v4632_v29 }
  0x85   : > { %4316 = vmatmul.mubr.msk.bf16.gmra.mrb[52].mxu0 %vm1053_vm1, %v4633_v30 }
  0x86   : > { %4319 = vmatprep.mubr.msk.bf16.mxu0 %vm1053_vm1, %v4634_v31 }
  0x8d   : > { %4320 = vmatmul.mubr.msk.bf16.gmra.mrb[56].mxu0 %vm1053_vm1, %v4635_v32 }
  0x8e   : > { %4323 = vmatprep.mubr.msk.bf16.mxu0 %vm1053_vm1, %v4636_v33 }
  0x95   : > { %4324 = vmatmul.mubr.msk.bf16.gmra.mrb[60].mxu0 %vm1053_vm1, %v4637_v34 }
  0xa0   : > { %v4446_v36 = vpop.permute.xlu0 %4445 }
  0xa1   : > { %v4457_v38 = vpop.permute.xlu1 %4456  ;;  %v4447_v59 = vunpack.i.l.bf16 %v4446_v36  ;;  %v4448_v60 = vunpack.i.h.bf16 %v4446_v36 }
  0xa2   : > { %v4458_v61 = vunpack.i.l.bf16 %v4457_v38  ;;  %v4459_v1 = vunpack.i.h.bf16 %v4457_v38 }
  0xa3   : > { %v5338_v9 = vmul.f32 %v4447_v59, %v5333_v62  ;;  %v5343_v13 = vmul.f32 %v4448_v60, %v5333_v62  ;;  %v5429_v59 = vld [vmem:[%s7388_s4] ss:$0 sm:$0xff] }
  0xa4   : > { %v4451_v39 = vpop.permute.xlu0 %4450  ;;  %v5346_v14 = vmul.f32 %v4458_v61, %v5333_v62  ;;  %v5354_v18 = vmul.f32 %v4459_v1, %v5333_v62 }
  0xa5   : > { %v4462_v40 = vpop.permute.xlu1 %4461  ;;  %v4453_v63 = vunpack.i.h.bf16 %v4451_v39  ;;  %v4452_v0 = vunpack.i.l.bf16 %v4451_v39 }
  0xa6   : > { %v4463_v2 = vunpack.i.l.bf16 %v4462_v40  ;;  %v4464_v6 = vunpack.i.h.bf16 %v4462_v40 }
  0xa7   : > { %v826_v15 = vmul.f32 %v4452_v0, %v5333_v62  ;;  %v827_v16 = vmul.f32 %v4453_v63, %v5333_v62 }
  0xa8   : > { %v4467_v42 = vpop.permute.xlu0 %4466  ;;  %v5351_v17 = vmul.f32 %v4463_v2, %v5333_v62  ;;  %v5357_v19 = vmul.f32 %v4464_v6, %v5333_v62 }
  0xa9   : > { %v4472_v43 = vpop.permute.xlu1 %4471  ;;  %v4469_v4 = vunpack.i.h.bf16 %v4467_v42  ;;  %v4468_v5 = vunpack.i.l.bf16 %v4467_v42 }
  0xaa   : > { %v4473_v7 = vunpack.i.l.bf16 %v4472_v43  ;;  %v4474_v8 = vunpack.i.h.bf16 %v4472_v43 }
  0xab   : > { %v5363_v21 = vmul.f32 %v4468_v5, %v5333_v62  ;;  %v5366_v22 = vmul.f32 %v4469_v4, %v5333_v62 }
  0xac   : > { %v4477_v45 = vpop.permute.xlu0 %4476  ;;  %v5360_v20 = vmul.f32 %v4473_v7, %v5333_v62  ;;  %v5374_v27 = vmul.f32 %v4474_v8, %v5333_v62 }
  0xad   : > { %v5306_v46 = vpop.permute.xlu1 %4481  ;;  %v4479_v10 = vunpack.i.h.bf16 %v4477_v45  ;;  %v4478_v11 = vunpack.i.l.bf16 %v4477_v45 }
  0xae   : > { %v4484_v24 = vunpack.i.h.bf16 %v5306_v46  ;;  %v4483_v25 = vunpack.i.l.bf16 %v5306_v46 }
  0xaf   : > { %v5379_v30 = vmul.f32 %v4478_v11, %v5333_v62  ;;  %v5382_v31 = vmul.f32 %v4479_v10, %v5333_v62 }
  0xb0   : > { %v5308_v47 = vpop.permute.xlu0 %4486  ;;  %v5396_v42 = vmul.f32 %v4483_v25, %v5333_v62  ;;  %v5399_v43 = vmul.f32 %v4484_v24, %v5333_v62 }
  0xb1   : > { %v5310_v48 = vpop.permute.xlu1 %4491  ;;  %v4488_v23 = vunpack.i.l.bf16 %v5308_v47  ;;  %v4489_v28 = vunpack.i.h.bf16 %v5308_v47 }
  0xb2   : > { %v4493_v29 = vunpack.i.l.bf16 %v5310_v48  ;;  %v4494_v34 = vunpack.i.h.bf16 %v5310_v48 }
  0xb3   : > { %v5402_v44 = vmul.f32 %v4488_v23, %v5333_v62  ;;  %v5410_v48 = vmul.f32 %v4489_v28, %v5333_v62 }
  0xb4   : > { %v5312_v49 = vpop.permute.xlu0 %4496  ;;  %v5407_v47 = vmul.f32 %v4493_v29, %v5333_v62  ;;  %v5415_v50 = vmul.f32 %v4494_v34, %v5333_v62 }
  0xb5   : > { %v5314_v51 = vpop.permute.xlu1 %4501  ;;  %v4499_v32 = vunpack.i.h.bf16 %v5312_v49  ;;  %v4498_v33 = vunpack.i.l.bf16 %v5312_v49 }
  0xb6   : > { %v4503_v35 = vunpack.i.l.bf16 %v5314_v51  ;;  %v4504_v38 = vunpack.i.h.bf16 %v5314_v51 }
  0xb8   : > { %v5316_v52 = vpop.permute.xlu0 %4506  ;;  %v5418_v51 = vmul.f32 %v4503_v35, %v5333_v62  ;;  %v5432_v60 = vmul.f32 %v4504_v38, %v5333_v62 }
  0xb9   : > { %v5318_v53 = vpop.permute.xlu1 %4511  ;;  %v4509_v36 = vunpack.i.h.bf16 %v5316_v52  ;;  %v4508_v37 = vunpack.i.l.bf16 %v5316_v52  ;;  %v5421_v52 = vmul.f32 %v4498_v33, %v5333_v62 }
  0xba   : > { %v4513_v39 = vunpack.i.l.bf16 %v5318_v53  ;;  %v4514_v41 = vunpack.i.h.bf16 %v5318_v53  ;;  %v5424_v53 = vmul.f32 %v4499_v32, %v5333_v62 }
  0xbb   : > { %v5438_v63 = vmul.f32 %v4508_v37, %v5333_v62  ;;  %v5441_v0 = vmul.f32 %v4509_v36, %v5333_v62 }
  0xbc   : > { %v5320_v54 = vpop.permute.xlu0 %4516  ;;  %7400 = vst [vmem:[#allocation5_spill] sm:$0xff] %v5424_v53  ;;  %v5435_v61 = vmul.f32 %v4513_v39, %v5333_v62  ;;  %v5446_v6 = vmul.f32 %v4514_v41, %v5333_v62 }
  0xbd   : > { %v5322_v55 = vpop.permute.xlu1 %4521  ;;  %v4519_v45 = vunpack.i.h.bf16 %v5320_v54  ;;  %v4518_v46 = vunpack.i.l.bf16 %v5320_v54  ;;  %7402 = vst [vmem:[#allocation7_spill] sm:$0xff] %v5438_v63  ;;  %7403 = vst [vmem:[#allocation8_spill] sm:$0xff] %v5441_v0 }
  0xbe   : > { %7401 = vst [vmem:[#allocation6_spill] sm:$0xff] %v5435_v61  ;;  %v4524_v1 = vunpack.i.h.bf16 %v5322_v55  ;;  %v4523_v2 = vunpack.i.l.bf16 %v5322_v55  ;;  %7404 = vst [vmem:[#allocation9_spill] sm:$0xff] %v5446_v6 }
  0xbf   : > { %v5453_v23 = vmul.f32 %v4518_v46, %v5333_v62  ;;  %v5456_v24 = vmul.f32 %v4519_v45, %v5333_v62 }
  0xc0   : > { %v5324_v56 = vpop.permute.xlu0 %4526 }
  0xc1   : > { %v5326_v57 = vpop.permute.xlu1 %4531  ;;  %v4529_v7 = vunpack.i.h.bf16 %v5324_v56  ;;  %v4528_v8 = vunpack.i.l.bf16 %v5324_v56  ;;  %7405 = vst [vmem:[#allocation10_spill] sm:$0xff] %v5453_v23  ;;  %7406 = vst [vmem:[#allocation11_spill] sm:$0xff] %v5456_v24 }
  0xc2   : > { %v4534_v55 = vunpack.i.h.bf16 %v5326_v57 }
  0xc3   : > { %v5482_v39 = vmul.f32 %v4528_v8, %v5333_v62 }
  0xc4   : > { %v5328_v58 = vpop.permute.xlu0 %4536 }
  0xc5   : > { %v5335_v3 = vpop.permute.xlu1 %4541  ;;  %v4539_v56 = vunpack.i.h.bf16 %v5328_v58  ;;  %v4538_v32 = vunpack.i.l.bf16 %v5328_v58  ;;  %7409 = vst [vmem:[#allocation14_spill] sm:$0xff] %v5482_v39 }
  0xc6   : > { %v4544_v33 = vunpack.i.h.bf16 %v5335_v3  ;;  %v4543_v34 = vunpack.i.l.bf16 %v5335_v3  ;;  %v5485_v3 = vmul.f32 %v4529_v7, %v5333_v62 }
  0xc8   : > { %v5340_v12 = vpop.permute.xlu0 %4546  ;;  %7410 = vst [vmem:[#allocation15_spill] sm:$0xff] %v5485_v3  ;;  %v5504_v7 = vmul.f32 %v4544_v33, %v5333_v62 }
  0xc9   : > { %v5371_v26 = vpop.permute.xlu1 %4551  ;;  %v4548_v35 = vunpack.i.l.bf16 %v5340_v12  ;;  %v4549_v38 = vunpack.i.h.bf16 %v5340_v12 }
  0xca   : > { %v4554_v41 = vunpack.i.h.bf16 %v5371_v26  ;;  %v4553_v45 = vunpack.i.l.bf16 %v5371_v26  ;;  %7415 = vst [vmem:[#allocation20_spill] sm:$0xff] %v5504_v7  ;;  %v5507_v26 = vmul.f32 %v4539_v56, %v5333_v62 }
  0xcb   : > { %v5518_v7 = vmul.f32 %v4549_v38, %v5333_v62 }
  0xcc   : > { %v5392_v40 = vpop.permute.xlu0 %4556  ;;  %7416 = vst [vmem:[#allocation21_spill] sm:$0xff] %v5507_v26 }
  0xcd   : > { %v5412_v49 = vpop.permute.xlu1 %4561  ;;  %v4558_v8 = vunpack.i.l.bf16 %v5392_v40  ;;  %7418 = vst [vmem:[#allocation23_spill] sm:$0xff] %v5518_v7 }
  0xce   : > { %v4563_v38 = vunpack.i.l.bf16 %v5412_v49 }
  0xd0   : > { %v5450_v10 = vpop.permute.xlu0 %4566 }
  0xd1   : > { %v5468_v36 = vpop.permute.xlu1 %4571 }
  0xd5   : > { %v5520_v56 = vpop.permute.xlu1 %4581 }
  0xf0   : > { %v4265_v54 = vpop.f32.mrb[0].mxu0 }
  0xf1   : > { %v1197_v4 = vadd.f32 %v4265_v54, %v826_v15  ;;  %v1188_v5 = vpop.f32.mrb[1].mxu0  ;;  %v4533_v15 = vunpack.i.l.bf16 %v5326_v57  ;;  %v5474_v57 = vmul.f32 %v4523_v2, %v5333_v62  ;;  %v5493_v54 = vmul.f32 %v4534_v55, %v5333_v62 }
  0xf2   : > { %v4266_v11 = vpop.f32.mrb[2].mxu0  ;;  %v5498_v2 = vmul.f32 %v4543_v34, %v5333_v62  ;;  %v4559_v34 = vunpack.i.h.bf16 %v5392_v40  ;;  %v1189_v26 = vadd.f32 %v1188_v5, %v5338_v9  ;;  %v5530_v40 = vmul.f32 %v4554_v41, %v5333_v62 }
  0xf3   : > { %v5461_v25 = vadd.f32 %v5429_v59, %v1197_v4  ;;  %v1200_v28 = vadd.f32 %v4266_v11, %v827_v16  ;;  %v1191_v29 = vpop.f32.mrb[3].mxu0  ;;  %7407 = vst [vmem:[#allocation12_spill] sm:$0xff] %v5474_v57  ;;  %v5477_v16 = vmul.f32 %v4524_v1, %v5333_v62  ;;  %v5490_v46 = vmul.f32 %v4533_v15, %v5333_v62  ;;  %v5495_v1 = vpop.permute.xlu0 %4576 }
  0xf4   : > { %7412 = vst [vmem:[#allocation17_spill] sm:$0xff] %v5493_v54  ;;  %7413 = vst [vmem:[#allocation18_spill] sm:$0xff] %v5498_v2  ;;  %v5501_v4 = vmul.f32 %v4538_v32, %v5333_v62  ;;  %v4569_v41 = vunpack.i.h.bf16 %v5450_v10 }
  0xf5   : > { %v5471_v37 = vadd.f32 %v5429_v59, %v1200_v28  ;;  %7408 = vst [vmem:[#allocation13_spill] sm:$0xff] %v5477_v16  ;;  %v1580_v58 = vand.u32 2147483647, %v5461_v25  ;;  %7411 = vst [vmem:[#allocation16_spill] sm:$0xff] %v5490_v46  ;;  %v5513_v28 = vmul.f32 %v4548_v35, %v5333_v62  ;;  %v5527_v35 = vmul.f32 %v4553_v45, %v5333_v62 }
  0xf6   : > { %7414 = vst [vmem:[#allocation19_spill] sm:$0xff] %v5501_v4  ;;  %7420 = vst [vmem:[#allocation25_spill] sm:$0xff] %v5530_v40  ;;  %v5541_v45 = vmul.f32 %v4558_v8, %v5333_v62  ;;  %v4578_v8 = vunpack.i.l.bf16 %v5495_v1 }
  0xf7   : > { %v1581_v11 = vand.u32 2147483647, %v5471_v37  ;;  %7417 = vst [vmem:[#allocation22_spill] sm:$0xff] %v5513_v28  ;;  %v1644_v32 = vsub.f32 0.0, %v1580_v58  ;;  %7419 = vst [vmem:[#allocation24_spill] sm:$0xff] %v5527_v35  ;;  %v4564_v58 = vunpack.i.h.bf16 %v5412_v49  ;;  %v5545_v7 = vpop.permute.xlu0 %4586  ;;  %v5548_v49 = vmul.f32 %v4559_v34, %v5333_v62 }
  0xf8   : > { %v4269_v12 = vpop.f32.mrb[4].mxu0  ;;  %7421 = vst [vmem:[#allocation26_spill] sm:$0xff] %v5541_v45 }
  0xf9   : > { %v1213_v55 = vadd.f32 %v4269_v12, %v5351_v17  ;;  %v1204_v15 = vpop.f32.mrb[5].mxu0  ;;  %v1710_v40 = vmul.f32 1.442695, %v1644_v32  ;;  %7422 = vst [vmem:[#allocation27_spill] sm:$0xff] %v5548_v49 }
  0xfa   : > { %v1205_v4 = vadd.f32 %v1204_v15, %v5346_v14  ;;  %v4270_v33 = vpop.f32.mrb[6].mxu0  ;;  %v4568_v14 = vunpack.i.l.bf16 %v5450_v10  ;;  %v1645_v15 = vsub.f32 0.0, %v1581_v11  ;;  %v5553_v11 = vadd.f32 %v5429_v59, %v1189_v26 }
  0xfb   : > { %v5524_v2 = vadd.f32 %v5429_v59, %v1213_v55  ;;  %v1207_v17 = vpop.f32.mrb[7].mxu0  ;;  %v1216_v12 = vadd.f32 %v4270_v33, %v5357_v19  ;;  %v4574_v55 = vunpack.i.h.bf16 %v5468_v36  ;;  %v1192_v10 = vadd.f32 %v1191_v29, %v5343_v13 }
  0xfc   : > { %v5537_v9 = vadd.f32 %v5429_v59, %v1205_v4  ;;  %v1208_v5 = vadd.f32 %v1207_v17, %v5354_v18  ;;  %v4573_v4 = vunpack.i.l.bf16 %v5468_v36  ;;  %7423 = vst [vmem:[#allocation28_spill] sm:$0xff] %v5553_v11  ;;  %v5562_v34 = vmul.f32 %v4568_v14, %v5333_v62  ;;  %v5564_v17 = vpop.permute.xlu1 %4591 }
  0xfd   : > { %v1584_v18 = vand.u32 2147483647, %v5524_v2  ;;  %v5559_v33 = vadd.f32 %v5429_v59, %v1216_v12  ;;  %v1712_v19 = vmul.f32 1.442695, %v1645_v15  ;;  %v4584_v13 = vunpack.i.h.bf16 %v5520_v56 }
  0xfe   : > { %7424 = vst [vmem:[#allocation29_spill] sm:$0xff] %v5562_v34  ;;  %v1582_v36 = vand.u32 2147483647, %v5537_v9  ;;  %v5568_v26 = vadd.f32 %v5429_v59, %v1208_v5  ;;  %v4583_v29 = vunpack.i.l.bf16 %v5520_v56  ;;  %4642 = vpow2.f32 %v1710_v40 }
  0xff   : > { %v1578_v34 = vand.u32 2147483647, %v5553_v11  ;;  %v1648_v28 = vsub.f32 0.0, %v1584_v18  ;;  %v5579_v5 = vmul.f32 %v4563_v38, %v5333_v62  ;;  %v1585_v56 = vand.u32 2147483647, %v5559_v33 }
 0x100   : > { %v4273_v32 = vpop.f32.mrb[8].mxu0  ;;  %v5591_v40 = vmul.f32 %v4569_v41, %v5333_v62  ;;  %4644 = vpow2.f32 %v1712_v19  ;;  %v4589_v18 = vunpack.i.h.bf16 %v5545_v7  ;;  %v4593_v41 = vunpack.i.l.bf16 %v5564_v17  ;;  %v5603_v19 = vpop.permute.xlu1 %4601 }
 0x101   : > { %v1229_v49 = vadd.f32 %v4273_v32, %v5360_v20  ;;  %v1220_v45 = vpop.f32.mrb[9].mxu0  ;;  %7425 = vst [vmem:[#allocation30_spill] sm:$0xff] %v5579_v5  ;;  %v5581_v20 = vpop.permute.xlu0 %4596  ;;  %v5584_v32 = vadd.f32 %v5429_v59, %v1192_v10  ;;  %v4588_v10 = vunpack.i.l.bf16 %v5545_v7  ;;  %v1649_v54 = vsub.f32 0.0, %v1585_v56 }
 0x102   : > { %v1221_v12 = vadd.f32 %v1220_v45, %v5363_v21  ;;  %v4274_v14 = vpop.f32.mrb[10].mxu0  ;;  %v5588_v21 = vmul.f32 %v4564_v58, %v5333_v62  ;;  %7428 = vst [vmem:[#allocation33_spill] sm:$0xff] %v5591_v40  ;;  %v1646_v45 = vsub.f32 0.0, %v1582_v36  ;;  %v1642_v40 = vsub.f32 0.0, %v1578_v34 }
 0x103   : > { %v5576_v15 = vadd.f32 %v5429_v59, %v1229_v49  ;;  %v1223_v35 = vpop.f32.mrb[11].mxu0  ;;  %7426 = vst [vmem:[#allocation31_spill] sm:$0xff] %v5584_v32  ;;  %v1583_v49 = vand.u32 2147483647, %v5568_v26  ;;  %v1718_v36 = vmul.f32 1.442695, %v1648_v28  ;;  %v5610_v7 = vmul.f32 %v4573_v4, %v5333_v62 }
 0x104   : > { %7427 = vst [vmem:[#allocation32_spill] sm:$0xff] %v5588_v21  ;;  %v5595_v38 = vadd.f32 %v5429_v59, %v1221_v12  ;;  %v4598_v21 = vunpack.i.l.bf16 %v5581_v20  ;;  %v1579_v12 = vand.u32 2147483647, %v5584_v32  ;;  %v1714_v5 = vmul.f32 1.442695, %v1646_v45 }
 0x105   : > { %v1588_v3 = vand.u32 2147483647, %v5576_v15  ;;  %7429 = vst [vmem:[#allocation34_spill] sm:$0xff] %v5610_v7  ;;  %v1647_v46 = vsub.f32 0.0, %v1583_v49  ;;  %v1232_v24 = vadd.f32 %v4274_v14, %v5374_v27  ;;  %v5616_v23 = vmul.f32 %v4574_v55, %v5333_v62 }
 0x106   : > { %v1586_v58 = vand.u32 2147483647, %v5595_v38  ;;  %v5619_v56 = vmul.f32 %v4578_v8, %v5333_v62  ;;  %v1706_v57 = vmul.f32 1.442695, %v1642_v40  ;;  %v4603_v4 = vunpack.i.l.bf16 %v5603_v19 }
 0x107   : > { %v1652_v16 = vsub.f32 0.0, %v1588_v3  ;;  %7430 = vst [vmem:[#allocation35_spill] sm:$0xff] %v5616_v23  ;;  %4646 = vpow2.f32 %v1718_v36  ;;  %v1224_v45 = vadd.f32 %v1223_v35, %v5366_v22  ;;  %v1643_v27 = vsub.f32 0.0, %v1579_v12 }
 0x108   : > { %v5607_v39 = vpop.f32.mrb[12].mxu0  ;;  %7431 = vst [vmem:[#allocation36_spill] sm:$0xff] %v5619_v56  ;;  %v5623_v7 = vpop.eup %4642  ;;  %v1720_v14 = vmul.f32 1.442695, %v1649_v54  ;;  %v5628_v3 = vmul.f32 %v4583_v29, %v5333_v62  ;;  %v7433_v55 = vunpack.i.h.bf16 %v5495_v1  ;;  %4648 = vpow2.f32 %v1714_v5 }
 0x109   : > { %v1236_v28 = vpop.f32.mrb[13].mxu0  ;;  %v1716_v40 = vmul.f32 1.442695, %v1647_v46  ;;  %v1650_v36 = vsub.f32 0.0, %v1586_v58  ;;  %v5636_v22 = vadd.f32 %v5429_v59, %v1232_v24  ;;  %v1726_v35 = vmul.f32 1.442695, %v1652_v16 }
 0x10a   : > { %v4278_v49 = vpop.f32.mrb[14].mxu0  ;;  %7432 = vst [vmem:[#allocation37_spill] sm:$0xff] %v5628_v3  ;;  %v5633_v8 = vmul.f32 %v7433_v55, %v5333_v62  ;;  %v5639_v12 = vmul.f32 %v4584_v13, %v5333_v62  ;;  %v5642_v54 = vmul.f32 %v4588_v10, %v5333_v62  ;;  %v5645_v29 = vmul.f32 %v4589_v18, %v5333_v62  ;;  %v5647_v56 = vpop.eup %4644 }
 0x10b   : > { %v5625_v34 = vpop.f32.mrb[15].mxu0  ;;  %v1852_v1 = vadd.f32 1.0, %v5623_v7  ;;  %4650 = vpow2.f32 %v1706_v57  ;;  %v5651_v46 = vadd.f32 %v5429_v59, %v1224_v45  ;;  %v5654_v24 = vmul.f32 %v4598_v21, %v5333_v62 }
 0x10c   : > { %7434 = vst [vmem:[#allocation38_spill] sm:$0xff] %v5633_v8  ;;  %7435 = vst [vmem:[#allocation39_spill] sm:$0xff] %v5639_v12  ;;  %v1708_v5 = vmul.f32 1.442695, %v1643_v27  ;;  %4652 = vpow2.f32 %v1720_v14  ;;  %v1722_v58 = vmul.f32 1.442695, %v1650_v36  ;;  %v5669_v27 = vmul.f32 %v4593_v41, %v5333_v62 }
 0x10d   : > { %7436 = vst [vmem:[#allocation40_spill] sm:$0xff] %v5642_v54  ;;  %7437 = vst [vmem:[#allocation41_spill] sm:$0xff] %v5645_v29  ;;  %4654 = vpow2.f32 %v1716_v40  ;;  %v1589_v57 = vand.u32 2147483647, %v5636_v22  ;;  %v1861_v45 = vadd.f32 1.0, %v5647_v56  ;;  %v1855_v14 = vmul.f32 -0.5, %v5623_v7 }
 0x10e   : > { %7438 = vst [vmem:[#allocation42_spill] sm:$0xff] %v5651_v46  ;;  %7439 = vst [vmem:[#allocation43_spill] sm:$0xff] %v5654_v24  ;;  %4656 = vpow2.f32 %v1726_v35  ;;  %v1587_v40 = vand.u32 2147483647, %v5651_v46  ;;  %v7441_v13 = vunpack.i.h.bf16 %v5564_v17  ;;  %v1864_v21 = vmul.f32 -0.5, %v5647_v56 }
 0x10f   : > { %7440 = vst [vmem:[#allocation44_spill] sm:$0xff] %v5669_v27  ;;  %4658 = vlog2.f32 %v1852_v1  ;;  %v5682_v35 = vmul.f32 %v4603_v4, %v5333_v62  ;;  %v7444_v41 = vunpack.i.h.bf16 %v5581_v20  ;;  %v1653_v17 = vsub.f32 0.0, %v1589_v57 }
 0x110   : > { %v5658_v10 = vpop.f32.mrb[16].mxu0  ;;  %v5678_v18 = vmul.f32 %v7441_v13, %v5333_v62  ;;  %4660 = vpow2.f32 %v1708_v5  ;;  %v1245_v4 = vadd.f32 %v5607_v39, %v5396_v42  ;;  %v1237_v5 = vadd.f32 %v1236_v28, %v5379_v30 }
 0x111   : > { %v5662_v55 = vpop.f32.mrb[17].mxu0  ;;  %7443 = vst [vmem:[#allocation46_spill] sm:$0xff] %v5682_v35  ;;  %v5687_v1 = vmul.f32 %v7444_v41, %v5333_v62  ;;  %v5689_v24 = vpop.eup %4646  ;;  %4662 = vpow2.f32 %v1722_v58  ;;  %v1856_v20 = vadd.f32 1.0, %v1855_v14  ;;  %v1858_v41 = vand.u32 2147483647, %v5623_v7 }
 0x112   : > { %v5666_v16 = vpop.f32.mrb[18].mxu0  ;;  %7442 = vst [vmem:[#allocation45_spill] sm:$0xff] %v5678_v18  ;;  %4664 = vlog2.f32 %v1861_v45  ;;  %v5697_v35 = vpop.eup %4648  ;;  %v7446_v29 = vunpack.i.h.bf16 %v5603_v19  ;;  %v1865_v58 = vadd.f32 1.0, %v1864_v21  ;;  %v1888_v57 = vadd.f32 1.0, %v5689_v24 }
 0x113   : > { %v5673_v36 = vpop.f32.mrb[19].mxu0  ;;  %7445 = vst [vmem:[#allocation47_spill] sm:$0xff] %v5687_v1  ;;  %v1651_v1 = vsub.f32 0.0, %v1587_v40  ;;  %v1248_v42 = vadd.f32 %v4278_v49, %v5399_v43  ;;  %v1728_v19 = vmul.f32 1.442695, %v1653_v17  ;;  %v1870_v45 = vadd.f32 1.0, %v5697_v35 }
 0x114   : > { %v5703_v54 = vmul.f32 %v7446_v29, %v5333_v62  ;;  %v1867_v21 = vand.u32 2147483647, %v5647_v56  ;;  %v5722_v43 = vadd.f32 %v5429_v59, %v1245_v4  ;;  %v5725_v49 = vadd.f32 %v5429_v59, %v1237_v5 }
 0x115   : > { %v5710_v30 = vpop.eup %4650  ;;  %v5732_v17 = vmul.f32 %v5623_v7, %v1856_v20  ;;  %vm5734_vm3 = vcmp.lt.f32.partialorder %v1858_v41, 0.0004427343  ;;  %v1891_v13 = vmul.f32 -0.5, %v5689_v24  ;;  %v5744_v5 = vmul.f32 %v5647_v56, %v1865_v58 }
 0x116   : > { %7447 = vst [vmem:[#allocation48_spill] sm:$0xff] %v5703_v54  ;;  %7448 = vst [vmem:[#allocation49_spill] sm:$0xff] %v5710_v30  ;;  %v5717_v29 = vpop.eup %4652  ;;  %v1724_v54 = vmul.f32 1.442695, %v1651_v1  ;;  %4666 = vlog2.f32 %v1888_v57  ;;  %v5748_v7 = vadd.f32 %v5429_v59, %v1248_v42  ;;  %v1873_v41 = vmul.f32 -0.5, %v5697_v35 }
 0x117   : > { %v5729_v14 = vpop.eup %4654  ;;  %v1897_v8 = vadd.f32 1.0, %v5717_v29  ;;  %4668 = vpow2.f32 %v1728_v19  ;;  %v1592_v1 = vand.u32 2147483647, %v5722_v43  ;;  %vm5755_vm4 = vcmp.lt.f32.partialorder %v1867_v21, 0.0004427343 }
 0x118   : > { %v5708_v39 = vpop.f32.mrb[20].mxu0  ;;  %v5741_v4 = vpop.eup %4656  ;;  %4670 = vlog2.f32 %v1870_v45  ;;  %v1900_v56 = vmul.f32 -0.5, %v5717_v29  ;;  %v1879_v58 = vadd.f32 1.0, %v5729_v14  ;;  %v1590_v57 = vand.u32 2147483647, %v5725_v49 }
 0x119   : > { %v5715_v62 = vpop.f32.mrb[21].mxu0  ;;  %v4659_v20 = vpop.eup %4658  ;;  %v1892_v27 = vadd.f32 1.0, %v1891_v13  ;;  %v1894_v19 = vand.u32 2147483647, %v5689_v24  ;;  %v1924_v23 = vadd.f32 1.0, %v5741_v4  ;;  %4672 = vpow2.f32 %v1724_v54 }
 0x11a   : > { %v5727_v28 = vpop.f32.mrb[22].mxu0  ;;  %v5753_v12 = vpop.eup %4660  ;;  %v1854_v21 = vmul.f32 0.6931472, %v4659_v20  ;;  %v1882_v11 = vmul.f32 -0.5, %v5729_v14  ;;  %v1593_v45 = vand.u32 2147483647, %v5748_v7  ;;  %v1240_v0 = vadd.f32 %v5625_v34, %v5382_v31 }
 0x11b   : > { %v5739_v18 = vpop.f32.mrb[23].mxu0  ;;  %7452 = vst [vmem:[#allocation51_spill] sm:$0xff] %v5753_v12  ;;  %v5762_v42 = vpop.eup %4662  ;;  %v1874_v63 = vadd.f32 1.0, %v1873_v41  ;;  %v1876_v61 = vand.u32 2147483647, %v5697_v35  ;;  %4674 = vlog2.f32 %v1897_v8  ;;  %v1656_v13 = vsub.f32 0.0, %v1592_v1 }
 0x11c   : > { %7451 = vst [vmem:[#allocation50_spill] sm:$0xff] %v5739_v18  ;;  %v4665_v32 = vpop.eup %4664  ;;  %v1901_v30 = vadd.f32 1.0, %v1900_v56  ;;  %4676 = vlog2.f32 %v1879_v58  ;;  %v1906_v54 = vadd.f32 1.0, %v5762_v42  ;;  %v1654_v20 = vsub.f32 0.0, %v1590_v57 }
 0x11d   : > { %v1863_v53 = vmul.f32 0.6931472, %v4665_v32  ;;  %v5779_v46 = vmul.f32 %v5689_v24, %v1892_v27  ;;  %4678 = vlog2.f32 %v1924_v23  ;;  %v1657_v31 = vsub.f32 0.0, %v1593_v45 }
 0x11e   : > { %v1860_v8 = vsel %vm5734_vm3, %v5732_v17, %v1854_v21  ;;  %v1883_v41 = vadd.f32 1.0, %v1882_v11  ;;  %v1927_v1 = vmul.f32 -0.5, %v5741_v4  ;;  %v5788_v56 = vadd.f32 %v5429_v59, %v1240_v0 }
 0x11f   : > { %v5791_v58 = vmul.f32 %v5697_v35, %v1874_v63  ;;  %v1903_v32 = vand.u32 2147483647, %v5717_v29  ;;  %v1734_v24 = vmul.f32 1.442695, %v1656_v13  ;;  %v1261_v23 = vadd.f32 %v5658_v10, %v5407_v47 }
 0x120   : > { %v5770_v6 = vpop.f32.mrb[24].mxu0  ;;  %v4667_v27 = vpop.eup %4666  ;;  %vm5796_vm5 = vcmp.lt.f32.partialorder %v1894_v19, 0.0004427343  ;;  %v5801_v11 = vmul.f32 %v5717_v29, %v1901_v30  ;;  %v1885_v0 = vand.u32 2147483647, %v5729_v14  ;;  %4680 = vlog2.f32 %v1906_v54 }
 0x121   : > { %v5773_v12 = vpop.f32.mrb[25].mxu0  ;;  %v1730_v40 = vmul.f32 1.442695, %v1654_v20  ;;  %v5804_v63 = vpop.eup %4668  ;;  %v7457_v35 = vmax.f32 %v5461_v25, 0.0  ;;  %v1869_v47 = vsel %vm5755_vm4, %v5744_v5, %v1863_v53  ;;  %v1930_v10 = vand.u32 2147483647, %v5741_v4 }
 0x122   : > { %v5776_v18 = vpop.f32.mrb[26].mxu0  ;;  %v1736_v19 = vmul.f32 1.442695, %v1657_v31  ;;  %v4671_v21 = vpop.eup %4670  ;;  %vm5814_vm6 = vcmp.lt.f32.partialorder %v1876_v61, 0.0004427343  ;;  %v5819_v29 = vmul.f32 %v5729_v14, %v1883_v41  ;;  %v1928_v45 = vadd.f32 1.0, %v1927_v1 }
 0x123   : > { %v5781_v34 = vpop.f32.mrb[27].mxu0  ;;  %v5808_v17 = vadd.f32 %v1860_v8, %v7457_v35  ;;  %v1909_v25 = vmul.f32 -0.5, %v5762_v42  ;;  %v1591_v13 = vand.u32 2147483647, %v5788_v56  ;;  %v5825_v3 = vpop.eup %4672  ;;  %vm5827_vm7 = vcmp.lt.f32.partialorder %v1903_v32, 0.0004427343 }
 0x124   : > { %v1912_v61 = vand.u32 2147483647, %v5762_v42  ;;  %4682 = vpow2.f32 %v1734_v24  ;;  %v5833_v5 = vadd.f32 %v5429_v59, %v1261_v23  ;;  %v1253_v14 = vadd.f32 %v5662_v55, %v5402_v44 }
 0x125   : > { %vm5839_vm8 = vcmp.lt.f32.partialorder %v1885_v0, 0.0004427343  ;;  %v1933_v8 = vadd.f32 1.0, %v5804_v63  ;;  %4684 = vpow2.f32 %v1730_v40  ;;  %v1655_v41 = vsub.f32 0.0, %v1591_v13  ;;  %v4675_v24 = vpop.eup %4674 }
 0x126   : > { %v1264_v1 = vadd.f32 %v5666_v16, %v5415_v50  ;;  %v7467_v23 = vmax.f32 %v5471_v37, 0.0  ;;  %v1890_v44 = vmul.f32 0.6931472, %v4667_v27  ;;  %4686 = vpow2.f32 %v1736_v19  ;;  %v4677_v0 = vpop.eup %4676 }
 0x127   : > { %v1596_v55 = vand.u32 2147483647, %v5833_v5  ;;  %vm5854_vm9 = vcmp.lt.f32.partialorder %v1930_v10, 0.0004427343  ;;  %v1915_v50 = vadd.f32 1.0, %v5825_v3  ;;  %v5862_v27 = vadd.f32 %v5429_v59, %v1253_v14 }
 0x128   : > { %v5823_v54 = vpop.f32.mrb[28].mxu0  ;;  %v5850_v35 = vadd.f32 %v1869_v47, %v7467_v23  ;;  %v1732_v16 = vmul.f32 1.442695, %v1655_v41  ;;  %v1872_v37 = vmul.f32 0.6931472, %v4671_v21  ;;  %v1910_v47 = vadd.f32 1.0, %v1909_v25 }
 0x129   : > { %7460 = vst [vmem:[#allocation52_spill] sm:$0xff] %v5823_v54  ;;  %v5837_v20 = vpop.f32.mrb[29].mxu0  ;;  %v1660_v23 = vsub.f32 0.0, %v1596_v55  ;;  %v1899_v19 = vmul.f32 0.6931472, %v4675_v24  ;;  %4688 = vlog2.f32 %v1933_v8  ;;  %v1896_v10 = vsel %vm5796_vm5, %v5779_v46, %v1890_v44  ;;  %v7494_v21 = vld [vmem:[#allocation42_spill] sm:$0xff] }
 0x12a   : > { %7463 = vst [vmem:[#allocation53_spill] sm:$0xff] %v5837_v20  ;;  %v5846_v32 = vpop.f32.mrb[30].mxu0  ;;  %v1929_v20 = vmul.f32 %v5741_v4, %v1928_v45  ;;  %vm5864_vm10 = vcmp.lt.f32.partialorder %v1912_v61, 0.0004427343  ;;  %v5869_v4 = vadd.f32 %v5429_v59, %v1264_v1  ;;  %v1881_v45 = vmul.f32 0.6931472, %v4677_v0 }
 0x12b   : > { %7466 = vst [vmem:[#allocation54_spill] sm:$0xff] %v5846_v32  ;;  %v5859_v13 = vpop.f32.mrb[31].mxu0  ;;  %v4679_v32 = vpop.eup %4678  ;;  %4690 = vpow2.f32 %v1732_v16  ;;  %v1936_v41 = vmul.f32 -0.5, %v5804_v63  ;;  %v1878_v8 = vsel %vm5814_vm6, %v5791_v58, %v1872_v37  ;;  %v1911_v57 = vmul.f32 %v5762_v42, %v1910_v47 }
 0x12c   : > { %v4681_v25 = vpop.eup %4680  ;;  %v1926_v14 = vmul.f32 0.6931472, %v4679_v32  ;;  %4692 = vlog2.f32 %v1915_v50  ;;  %v1742_v46 = vmul.f32 1.442695, %v1660_v23  ;;  %v1594_v1 = vand.u32 2147483647, %v5862_v27 }
 0x12d   : > { %v7472_v32 = vmax.f32 %v5524_v2, 0.0  ;;  %v1905_v0 = vsel %vm5827_vm7, %v5801_v11, %v1899_v19  ;;  %v1597_v30 = vand.u32 2147483647, %v5869_v4  ;;  %v1887_v16 = vsel %vm5839_vm8, %v5819_v29, %v1881_v45 }
 0x12e   : > { %v5897_v42 = vpop.eup %4682  ;;  %v1908_v37 = vmul.f32 0.6931472, %v4681_v25  ;;  %v1939_v2 = vand.u32 2147483647, %v5804_v63  ;;  %v1256_v47 = vadd.f32 %v5673_v36, %v5410_v48  ;;  %v7474_v23 = vmax.f32 %v5537_v9, 0.0 }
 0x12f   : > { %v5888_v55 = vadd.f32 %v1896_v10, %v7472_v32  ;;  %v5907_v11 = vpop.eup %4684  ;;  %v1932_v10 = vsel %vm5854_vm9, %v1929_v20, %v1926_v14  ;;  %v1937_v32 = vadd.f32 1.0, %v1936_v41  ;;  %v1918_v29 = vmul.f32 -0.5, %v5825_v3 }
 0x130   : > { %v5877_v24 = vpop.f32.mrb[32].mxu0  ;;  %v5911_v19 = vadd.f32 %v1878_v8, %v7474_v23  ;;  %v5916_v31 = vpop.eup %4686  ;;  %v1921_v45 = vand.u32 2147483647, %v5825_v3  ;;  %4694 = vpow2.f32 %v1742_v46  ;;  %v1658_v48 = vsub.f32 0.0, %v1594_v1 }
 0x131   : > { %v5884_v44 = vpop.f32.mrb[33].mxu0  ;;  %v1277_v36 = vadd.f32 %v5708_v39, %v5418_v51  ;;  %v7475_v25 = vmax.f32 %v5559_v33, 0.0  ;;  %v7476_v8 = vmax.f32 %v5568_v26, 0.0  ;;  %v1960_v20 = vadd.f32 1.0, %v5897_v42 }
 0x132   : > { %v5895_v58 = vpop.f32.mrb[34].mxu0  ;;  %v1661_v14 = vsub.f32 0.0, %v1597_v30  ;;  %v1914_v41 = vsel %vm5864_vm10, %v1911_v57, %v1908_v37  ;;  %vm5932_vm11 = vcmp.lt.f32.partialorder %v1939_v2, 0.0004427343  ;;  %v1942_v51 = vadd.f32 1.0, %v5907_v11 }
 0x133   : > { %v5905_v53 = vpop.f32.mrb[35].mxu0  ;;  %v5923_v9 = vadd.f32 %v1905_v0, %v7475_v25  ;;  %v5927_v40 = vadd.f32 %v1887_v16, %v7476_v8  ;;  %v5938_v33 = vadd.f32 %v5429_v59, %v1256_v47  ;;  %v4689_v39 = vpop.eup %4688  ;;  %v7479_v26 = vmax.f32 %v5576_v15, 0.0 }
 0x134   : > { %7473 = vst [vmem:[#allocation55_spill] sm:$0xff] %v5905_v53  ;;  %v1938_v0 = vmul.f32 %v5804_v63, %v1937_v32  ;;  %v1919_v30 = vadd.f32 1.0, %v1918_v29  ;;  %v1969_v54 = vadd.f32 1.0, %v5916_v31  ;;  %vm5948_vm12 = vcmp.lt.f32.partialorder %v1921_v45, 0.0004427343 }
 0x135   : > { %v5942_v1 = vadd.f32 %v1932_v10, %v7479_v26  ;;  %v5946_v57 = vpop.eup %4690  ;;  %v1738_v37 = vmul.f32 1.442695, %v1658_v48  ;;  %v5953_v2 = vadd.f32 %v5429_v59, %v1277_v36  ;;  %v1269_v15 = vadd.f32 %v5715_v62, %v5421_v52 }
 0x136   : > { %v4693_v23 = vpop.eup %4692  ;;  %v7483_v63 = vmax.f32 %v5595_v38, 0.0  ;;  %4696 = vlog2.f32 %v1960_v20  ;;  %v1744_v29 = vmul.f32 1.442695, %v1661_v14  ;;  %v1963_v48 = vmul.f32 -0.5, %v5897_v42 }
 0x137   : > { %4698 = vlog2.f32 %v1942_v51  ;;  %v1595_v36 = vand.u32 2147483647, %v5938_v33  ;;  %v1280_v52 = vadd.f32 %v5727_v28, %v5432_v60  ;;  %v1935_v25 = vmul.f32 0.6931472, %v4689_v39 }
 0x138   : > { %v5957_v47 = vpop.f32.mrb[36].mxu0  ;;  %v5961_v10 = vadd.f32 %v1914_v41, %v7483_v63  ;;  %v1945_v38 = vmul.f32 -0.5, %v5907_v11  ;;  %4700 = vlog2.f32 %v1969_v54  ;;  %v1951_v8 = vadd.f32 1.0, %v5946_v57 }
 0x139   : > { %7482 = vst [vmem:[#allocation56_spill] sm:$0xff] %v5957_v47  ;;  %v5964_v45 = vpop.f32.mrb[37].mxu0  ;;  %v1917_v20 = vmul.f32 0.6931472, %v4693_v23  ;;  %4702 = vpow2.f32 %v1738_v37  ;;  %v1600_v14 = vand.u32 2147483647, %v5953_v2  ;;  %v5976_v41 = vadd.f32 %v5429_v59, %v1269_v15 }
 0x13a   : > { %7484 = vst [vmem:[#allocation57_spill] sm:$0xff] %v5964_v45  ;;  %v5970_v62 = vpop.f32.mrb[38].mxu0  ;;  %v1920_v26 = vmul.f32 %v5825_v3, %v1919_v30  ;;  %v1966_v60 = vand.u32 2147483647, %v5897_v42  ;;  %v1972_v28 = vmul.f32 -0.5, %v5916_v31  ;;  %4704 = vpow2.f32 %v1744_v29  ;;  %v5983_v39 = vpop.eup %4694 }
 0x13b   : > { %7485 = vst [vmem:[#allocation58_spill] sm:$0xff] %v5970_v62  ;;  %v5978_v51 = vpop.f32.mrb[39].mxu0  ;;  %v1964_v54 = vadd.f32 1.0, %v1963_v48  ;;  %v1659_v37 = vsub.f32 0.0, %v1595_v36  ;;  %v5987_v63 = vadd.f32 %v5429_v59, %v1280_v52  ;;  %v1941_v15 = vsel %vm5932_vm11, %v1938_v0, %v1935_v25 }
 0x13c   : > { %7486 = vst [vmem:[#allocation59_spill] sm:$0xff] %v5978_v51  ;;  %v1946_v32 = vadd.f32 1.0, %v1945_v38  ;;  %v1948_v3 = vand.u32 2147483647, %v5907_v11  ;;  %4706 = vlog2.f32 %v1951_v8  ;;  %v1923_v29 = vsel %vm5948_vm12, %v1920_v26, %v1917_v20 }
 0x13d   : > { %v1975_v48 = vand.u32 2147483647, %v5916_v31  ;;  %v1664_v50 = vsub.f32 0.0, %v1600_v14  ;;  %v1598_v36 = vand.u32 2147483647, %v5976_v41  ;;  %v1973_v46 = vadd.f32 1.0, %v1972_v28 }
 0x13e   : > { %vm6000_vm13 = vcmp.lt.f32.partialorder %v1966_v60, 0.0004427343  ;;  %v1996_v0 = vadd.f32 1.0, %v5983_v39  ;;  %v7492_v16 = vmax.f32 %v5636_v22, 0.0  ;;  %v1740_v14 = vmul.f32 1.442695, %v1659_v37 }
 0x13f   : > { %v1601_v26 = vand.u32 2147483647, %v5987_v63  ;;  %v7495_v28 = vmax.f32 %v7494_v21, 0.0  ;;  %v1965_v25 = vmul.f32 %v5897_v42, %v1964_v54  ;;  %vm6022_vm14 = vcmp.lt.f32.partialorder %v1948_v3, 0.0004427343  ;;  %v7500_v21 = vld [vmem:[#allocation5_spill] sm:$0xff] }
 0x140   : > { %v5992_v30 = vpop.f32.mrb[40].mxu0  ;;  %v6010_v8 = vadd.f32 %v1941_v15, %v7492_v16  ;;  %v4697_v61 = vpop.eup %4696  ;;  %vm6026_vm15 = vcmp.lt.f32.partialorder %v1975_v48, 0.0004427343  ;;  %v1750_v20 = vmul.f32 1.442695, %v1664_v50  ;;  %v1974_v42 = vmul.f32 %v5916_v31, %v1973_v46  ;;  %v7502_v31 = vld [vmem:[#allocation49_spill] sm:$0xff] }
 0x141   : > { %7487 = vst [vmem:[#allocation60_spill] sm:$0xff] %v5992_v30  ;;  %v5998_v23 = vpop.f32.mrb[41].mxu0  ;;  %v4699_v15 = vpop.eup %4698  ;;  %4708 = vlog2.f32 %v1996_v0  ;;  %v1962_v3 = vmul.f32 0.6931472, %v4697_v61  ;;  %v1665_v16 = vsub.f32 0.0, %v1601_v26  ;;  %v1834_v46 = vadd.f32 1.0, %v7502_v31 }
 0x142   : > { %7488 = vst [vmem:[#allocation61_spill] sm:$0xff] %v5998_v23  ;;  %v6006_v38 = vpop.f32.mrb[42].mxu0  ;;  %v6018_v23 = vadd.f32 %v1923_v29, %v7495_v28  ;;  %v7501_v29 = vld [vmem:[#allocation50_spill] sm:$0xff]  ;;  %v4701_v30 = vpop.eup %4700  ;;  %4710 = vpow2.f32 %v1740_v14  ;;  %v7510_v22 = vmax.f32 %v5722_v43, 0.0  ;;  %v1840_v45 = vand.u32 2147483647, %v7502_v31 }
 0x143   : > { %7491 = vst [vmem:[#allocation62_spill] sm:$0xff] %v6006_v38  ;;  %v6014_v60 = vpop.f32.mrb[43].mxu0  ;;  %v1947_v38 = vmul.f32 %v5907_v11, %v1946_v32  ;;  %v1272_v28 = vadd.f32 %v7501_v29, %v7500_v21  ;;  %v1954_v11 = vmul.f32 -0.5, %v5946_v57  ;;  %v1957_v32 = vand.u32 2147483647, %v5946_v57  ;;  %v6036_v54 = vpop.eup %4702 }
 0x144   : > { %7493 = vst [vmem:[#allocation63_spill] sm:$0xff] %v6014_v60  ;;  %v1662_v60 = vsub.f32 0.0, %v1598_v36  ;;  %v6039_v50 = vpop.eup %4704  ;;  %v1944_v36 = vmul.f32 0.6931472, %v4699_v15  ;;  %v1999_v21 = vmul.f32 -0.5, %v5983_v39  ;;  %4712 = vpow2.f32 %v1750_v20 }
 0x145   : > { %v6048_v61 = vadd.f32 %v5429_v59, %v1272_v28  ;;  %v1971_v48 = vmul.f32 0.6931472, %v4701_v30  ;;  %v1955_v15 = vadd.f32 1.0, %v1954_v11  ;;  %vm6052_vm0 = vcmp.lt.f32.partialorder %v1957_v32, 0.0004427343 }
 0x146   : > { %v1746_v0 = vmul.f32 1.442695, %v1662_v60  ;;  %v4707_v26 = vpop.eup %4706  ;;  %v1981_v29 = vmul.f32 -0.5, %v6036_v54  ;;  %v1968_v20 = vsel %vm6000_vm13, %v1965_v25, %v1962_v3  ;;  %v2002_v60 = vand.u32 2147483647, %v5983_v39 }
 0x147   : > { %7504 = vst [vmem:[#allocation5_spill] sm:$0xff] %v6048_v61  ;;  %v2008_v62 = vmul.f32 -0.5, %v6039_v50  ;;  %v1752_v59 = vmul.f32 1.442695, %v1665_v16  ;;  %v1950_v30 = vsel %vm6022_vm14, %v1947_v38, %v1944_v36  ;;  %v2000_v11 = vadd.f32 1.0, %v1999_v21 }
 0x148   : > { %v6044_v51 = vpop.f32.mrb[44].mxu0  ;;  %4714 = vlog2.f32 %v1834_v46  ;;  %v1837_v32 = vmul.f32 -0.5, %v7502_v31  ;;  %v1978_v52 = vadd.f32 1.0, %v6036_v54  ;;  %v1599_v25 = vand.u32 2147483647, %v6048_v61  ;;  %v7512_v46 = vld [vmem:[#allocation51_spill] sm:$0xff] }
 0x149   : > { %7503 = vst [vmem:[#allocation42_spill] sm:$0xff] %v6044_v51  ;;  %v6050_v14 = vpop.f32.mrb[45].mxu0  ;;  %v1953_v51 = vmul.f32 0.6931472, %v4707_v26  ;;  %4716 = vpow2.f32 %v1746_v0  ;;  %v1977_v16 = vsel %vm6026_vm15, %v1974_v42, %v1971_v48  ;;  %v1956_v3 = vmul.f32 %v5946_v57, %v1955_v15  ;;  %v7557_v57 = vld [vmem:[#allocation54_spill] sm:$0xff] }
 0x14a   : > { %7505 = vst [vmem:[#allocation50_spill] sm:$0xff] %v6050_v14  ;;  %v6061_v28 = vpop.f32.mrb[46].mxu0  ;;  %v2005_v38 = vadd.f32 1.0, %v6039_v50  ;;  %v6076_v36 = vadd.f32 %v1968_v20, %v7510_v22  ;;  %v2009_v21 = vadd.f32 1.0, %v2008_v62  ;;  %4718 = vpow2.f32 %v1752_v59  ;;  %v7534_v59 = vld [vmem:[#allocation52_spill] sm:$0xff] }
 0x14b   : > { %7508 = vst [vmem:[#allocation49_spill] sm:$0xff] %v6061_v28  ;;  %v6066_v14 = vpop.f32.mrb[47].mxu0  ;;  %v1982_v28 = vadd.f32 1.0, %v1981_v29  ;;  %v1843_v26 = vadd.f32 1.0, %v7512_v46  ;;  %v7513_v0 = vmax.f32 %v5725_v49, 0.0  ;;  %v6084_v37 = vmul.f32 %v5983_v39, %v2000_v11 }
 0x14c   : > { %7509 = vst [vmem:[#allocation64_spill] sm:$0xff] %v6066_v14  ;;  %7511 = vst [vmem:[#allocation65_spill] sm:$0xff] %v6076_v36  ;;  %v4709_v14 = vpop.eup %4708  ;;  %vm6086_vm1 = vcmp.lt.f32.partialorder %v2002_v60, 0.0004427343  ;;  %v1984_v43 = vand.u32 2147483647, %v6036_v54  ;;  %v1959_v49 = vsel %vm6052_vm0, %v1956_v3, %v1953_v51  ;;  %4720 = vlog2.f32 %v1978_v52 }
 0x14d   : > { %v6081_v47 = vadd.f32 %v1950_v30, %v7513_v0  ;;  %v1838_v42 = vadd.f32 1.0, %v1837_v32  ;;  %v6093_v62 = vpop.eup %4710  ;;  %v7518_v29 = vmax.f32 %v5748_v7, 0.0  ;;  %v1663_v39 = vsub.f32 0.0, %v1599_v25 }
 0x14e   : > { %v6104_v60 = vmul.f32 %v6036_v54, %v1982_v28  ;;  %4722 = vlog2.f32 %v2005_v38  ;;  %v6108_v11 = vpop.eup %4712  ;;  %v6111_v7 = vmul.f32 %v6039_v50, %v2009_v21  ;;  %v1846_v51 = vmul.f32 -0.5, %v7512_v46 }
 0x14f   : > { %7514 = vst [vmem:[#allocation51_spill] sm:$0xff] %v6081_v47  ;;  %v6097_v15 = vadd.f32 %v1977_v16, %v7518_v29  ;;  %4724 = vlog2.f32 %v1843_v26  ;;  %v7522_v54 = vmax.f32 %v5788_v56, 0.0  ;;  %v6121_v52 = vmul.f32 0.6931472, %v4709_v14  ;;  %v7525_v26 = vld [vmem:[#allocation6_spill] sm:$0xff]  ;;  %v7533_v14 = vld [vmem:[#allocation12_spill] sm:$0xff] }
 0x150   : > { %v6091_v48 = vpop.f32.mrb[48].mxu0  ;;  %v1987_v25 = vadd.f32 1.0, %v6093_v62  ;;  %v6125_v16 = vmul.f32 %v7502_v31, %v1838_v42  ;;  %v1990_v38 = vmul.f32 -0.5, %v6093_v62  ;;  %v1748_v22 = vmul.f32 1.442695, %v1663_v39  ;;  %v7527_v42 = vld [vmem:[#allocation9_spill] sm:$0xff] }
 0x151   : > { %7517 = vst [vmem:[#allocation66_spill] sm:$0xff] %v6091_v48  ;;  %7519 = vst [vmem:[#allocation67_spill] sm:$0xff] %v6097_v15  ;;  %v6101_v20 = vpop.f32.mrb[49].mxu0  ;;  %v6119_v28 = vadd.f32 %v1959_v49, %v7522_v54  ;;  %v1293_v56 = vadd.f32 %v5770_v6, %v7525_v26  ;;  %v2032_v29 = vadd.f32 1.0, %v6108_v11  ;;  %v7526_v49 = vld [vmem:[#allocation7_spill] sm:$0xff]  ;;  %v1296_v54 = vadd.f32 %v5776_v18, %v7527_v42  ;;  %v7528_v26 = vld [vmem:[#allocation8_spill] sm:$0xff] }
 0x152   : > { %7520 = vst [vmem:[#allocation68_spill] sm:$0xff] %v6101_v20  ;;  %v6115_v32 = vpop.f32.mrb[50].mxu0  ;;  %v4715_v0 = vpop.eup %4714  ;;  %v1285_v31 = vadd.f32 %v5773_v12, %v7526_v49  ;;  %v6145_v39 = vld [vmem:[%s7388_s4] ss:$0 sm:$0xff]  ;;  %v1288_v21 = vadd.f32 %v5781_v34, %v7528_v26  ;;  %4726 = vlog2.f32 %v1987_v25  ;;  %vm6156_vm2 = vcmp.lt.f32.partialorder %v1840_v45, 0.0004427343 }
 0x153   : > { %7521 = vst [vmem:[#allocation69_spill] sm:$0xff] %v6115_v32  ;;  %7523 = vst [vmem:[#allocation70_spill] sm:$0xff] %v6119_v28  ;;  %v6127_v3 = vpop.f32.mrb[51].mxu0  ;;  %v6140_v30 = vpop.eup %4716  ;;  %v6148_v6 = vadd.f32 %v6145_v39, %v1293_v56  ;;  %v6164_v56 = vadd.f32 %v6145_v39, %v1296_v54  ;;  %v2004_v26 = vsel %vm6086_vm1, %v6084_v37, %v6121_v52  ;;  %4728 = vpow2.f32 %v1748_v22 }
 0x154   : > { %7524 = vst [vmem:[#allocation71_spill] sm:$0xff] %v6127_v3  ;;  %v6161_v49 = vadd.f32 %v6145_v39, %v1285_v31  ;;  %v6168_v34 = vpop.eup %4718  ;;  %v1836_v45 = vmul.f32 0.6931472, %v4715_v0  ;;  %4730 = vlog2.f32 %v2032_v29  ;;  %v2014_v31 = vadd.f32 1.0, %v6140_v30 }
 0x155   : > { %v1604_v25 = vand.u32 2147483647, %v6148_v6  ;;  %v1847_v54 = vadd.f32 1.0, %v1846_v51  ;;  %vm2541_vm3 = vcmask 408576   ;;  %vm6182_vm4 = vcmp.lt.f32.partialorder %v1984_v43, 0.0004427343 }
 0x156   : > { %v4721_v32 = vpop.eup %4720  ;;  %v1849_v37 = vand.u32 2147483647, %v7512_v46  ;;  %v1602_v22 = vand.u32 2147483647, %v6161_v49  ;;  %v6189_v0 = vadd.f32 %v6145_v39, %v1288_v21  ;;  %v2041_v43 = vadd.f32 1.0, %v6168_v34 }
 0x157   : > { %v1668_v52 = vsub.f32 0.0, %v1604_v25  ;;  %v1991_v20 = vadd.f32 1.0, %v1990_v38  ;;  %v1842_v25 = vsel %vm6156_vm2, %v6125_v16, %v1836_v45  ;;  %v1980_v36 = vmul.f32 0.6931472, %v4721_v32 }
 0x158   : > { %v6166_v42 = vpop.f32.mrb[52].mxu0  ;;  %v4723_v29 = vpop.eup %4722  ;;  %v1666_v21 = vsub.f32 0.0, %v1602_v22  ;;  %4732 = vlog2.f32 %v2014_v31  ;;  %vm1850_vm5 = vcmp.lt.f32.partialorder %v1849_v37, 0.0004427343  ;;  %v1603_v28 = vand.u32 2147483647, %v6189_v0 }
 0x159   : > { %7531 = vst [vmem:[#allocation6_spill] sm:$0xff] %v6166_v42  ;;  %v6175_v12 = vpop.f32.mrb[53].mxu0  ;;  %v1309_v42 = vadd.f32 %v7534_v59, %v7533_v14  ;;  %v2035_v59 = vmul.f32 -0.5, %v6108_v11  ;;  %v2038_v14 = vand.u32 2147483647, %v6108_v11  ;;  %4734 = vlog2.f32 %v2041_v43  ;;  %v7544_v31 = vld [vmem:[#allocation31_spill] sm:$0xff] }
 0x15a   : > { %7532 = vst [vmem:[#allocation7_spill] sm:$0xff] %v6175_v12  ;;  %v6180_v3 = vpop.f32.mrb[54].mxu0  ;;  %v4725_v12 = vpop.eup %4724  ;;  %v1758_v48 = vmul.f32 1.442695, %v1668_v52  ;;  %v7539_v38 = vand.u32 2147483647, %v6039_v50 }
 0x15b   : > { %7535 = vst [vmem:[#allocation9_spill] sm:$0xff] %v6180_v3  ;;  %v6191_v51 = vpop.f32.mrb[55].mxu0  ;;  %v1605_v3 = vand.u32 2147483647, %v6164_v56  ;;  %v1845_v61 = vmul.f32 0.6931472, %v4725_v12  ;;  %v6202_v15 = vadd.f32 %v6145_v39, %v1309_v42 }
 0x15c   : > { %7538 = vst [vmem:[#allocation8_spill] sm:$0xff] %v6191_v51  ;;  %v1848_v51 = vmul.f32 %v7512_v46, %v1847_v54  ;;  %vm6207_vm6 = vcmp.lt.f32.partialorder %v7539_v38, 0.0004427343  ;;  %v1754_v12 = vmul.f32 1.442695, %v1666_v21  ;;  %v7542_v42 = vld [vmem:[#allocation28_spill] sm:$0xff]  ;;  %4736 = vpow2.f32 %v1758_v48  ;;  %v4727_v52 = vpop.eup %4726 }
 0x15d   : > { %v1669_v53 = vsub.f32 0.0, %v1605_v3  ;;  %v2017_v3 = vmul.f32 -0.5, %v6140_v30  ;;  %v7543_v32 = vmax.f32 %v7542_v42, 0.0  ;;  %v7545_v54 = vmax.f32 %v7544_v31, 0.0  ;;  %v6227_v21 = vpop.eup %4728 }
 0x15e   : > { %v1851_v16 = vsel %vm1850_vm5, %v1848_v51, %v1845_v61  ;;  %v7546_v22 = vmax.f32 %v5833_v5, 0.0  ;;  %v2036_v61 = vadd.f32 1.0, %v2035_v59  ;;  %4738 = vpow2.f32 %v1754_v12  ;;  %v7554_v12 = vld [vmem:[#allocation53_spill] sm:$0xff]  ;;  %v4731_v31 = vpop.eup %4730 }
 0x15f   : > { %v1760_v18 = vmul.f32 1.442695, %v1669_v53  ;;  %v2410_v45 = vadd.f32 %v1842_v25, %v7543_v32  ;;  %v2411_v37 = vadd.f32 %v1851_v16, %v7545_v54  ;;  %v1608_v53 = vand.u32 2147483647, %v6202_v15  ;;  %v7553_v16 = vld [vmem:[#allocation10_spill] sm:$0xff] }
 0x160   : > { %v6211_v46 = vpop.f32.mrb[56].mxu0  ;;  %v6222_v43 = vadd.f32 %v2004_v26, %v7546_v22  ;;  %v7548_v25 = vand.u32 2147483647, %v6093_v62  ;;  %vm6235_vm8 = vcmp.lt.f32.partialorder %v2038_v14, 0.0004427343  ;;  %v2044_v5 = vmul.f32 -0.5, %v6168_v34 }
 0x161   : > { %v6218_v50 = vpop.f32.mrb[57].mxu0  ;;  %v2474_v26 = vpack.c.bf16 %v2411_v37, %v2410_v45  ;;  %v1667_v59 = vsub.f32 0.0, %v1603_v28  ;;  %v1301_v42 = vadd.f32 %v7554_v12, %v7553_v16  ;;  %v1986_v54 = vsel %vm6182_vm4, %v6104_v60, %v1980_v36  ;;  %v7556_v60 = vld [vmem:[#allocation13_spill] sm:$0xff] }
 0x162   : > { %v6225_v51 = vpop.f32.mrb[58].mxu0  ;;  %vm6231_vm7 = vcmp.lt.f32.partialorder %v7548_v25, 0.0004427343  ;;  %v1992_v22 = vmul.f32 %v6093_v62, %v1991_v20  ;;  %v2020_v14 = vand.u32 2147483647, %v6140_v30  ;;  %4740 = vpow2.f32 %v1760_v18 }
 0x163   : > { %7547 = vst [vmem:[#allocation12_spill] sm:$0xff] %v6225_v51  ;;  %v6242_v32 = vpop.f32.mrb[59].mxu0  ;;  %v2007_v25 = vmul.f32 0.6931472, %v4723_v29  ;;  %v2018_v51 = vadd.f32 1.0, %v2017_v3  ;;  %4335 = vmatprep.mubr.msk.bf16.mxu1 %vm2541_vm3, %v2474_v26  ;;  %v2478_v28 = vpack.c.bf16 %v6018_v23, %v5961_v10  ;;  %v2479_v45 = vpack.c.bf16 %v6010_v8, %v5942_v1  ;;  %v7559_v26 = vld [vmem:[#allocation11_spill] sm:$0xff] }
 0x164   : > { %v2023_v37 = vadd.f32 1.0, %v6227_v21  ;;  %v7555_v36 = vpack.c.bf16 %v5850_v35, %v5808_v17  ;;  %v1672_v62 = vsub.f32 0.0, %v1608_v53  ;;  %v6260_v20 = vadd.f32 %v6145_v39, %v1301_v42  ;;  %v7579_v1 = vld [vmem:[#allocation65_spill] sm:$0xff]  ;;  %v7580_v8 = vld [vmem:[#allocation67_spill] sm:$0xff] }
 0x165   : > { %v1312_v29 = vadd.f32 %v7557_v57, %v7556_v60  ;;  %v2045_v18 = vadd.f32 1.0, %v2044_v5  ;;  %v2047_v10 = vand.u32 2147483647, %v6168_v34  ;;  %v1756_v23 = vmul.f32 1.442695, %v1667_v59  ;;  %v4733_v5 = vpop.eup %4732 }
 0x166   : > { %4336 = vmatmul.mubr.msk.bf16.vlgmr.msra.gmra.mrb[0].mxu1 %vm2541_vm3, %v7555_v36  ;;  %v7558_v3 = vpack.c.bf16 %v5927_v40, %v5911_v19  ;;  %v1304_v17 = vadd.f32 %v5859_v13, %v7559_v26  ;;  %v1989_v35 = vmul.f32 0.6931472, %v4727_v52  ;;  %v2034_v53 = vmul.f32 0.6931472, %v4731_v31  ;;  %v7563_v13 = vld [vmem:[#allocation16_spill] sm:$0xff]  ;;  %v4735_v31 = vpop.eup %4734 }
 0x167   : > { %v2037_v16 = vmul.f32 %v6108_v11, %v2036_v61  ;;  %vm6272_vm9 = vcmp.lt.f32.partialorder %v2020_v14, 0.0004427343  ;;  %v7562_v42 = vmax.f32 %v5862_v27, 0.0  ;;  %v2013_v19 = vsel %vm6207_vm6, %v6111_v7, %v2007_v25 }
 0x168   : > { %4339 = vmatprep.mubr.msk.bf16.mxu1 %vm2541_vm3, %v7558_v3  ;;  %v2019_v40 = vmul.f32 %v6140_v30, %v2018_v51  ;;  %v1325_v52 = vadd.f32 %v5877_v24, %v7563_v13  ;;  %4742 = vlog2.f32 %v2023_v37  ;;  %v1766_v11 = vmul.f32 1.442695, %v1672_v62  ;;  %v6290_v27 = vpop.f32.mrb[60].mxu0 }
 0x169   : > { %v6278_v59 = vadd.f32 %v1986_v54, %v7562_v42  ;;  %v1606_v61 = vand.u32 2147483647, %v6260_v20  ;;  %v6288_v14 = vadd.f32 %v6145_v39, %v1312_v29  ;;  %v6292_v54 = vpop.eup %4736  ;;  %v2046_v47 = vmul.f32 %v6168_v34, %v2045_v18  ;;  %v7567_v29 = vld [vmem:[#allocation14_spill] sm:$0xff] }
 0x16a   : > { %vm6295_vm10 = vcmp.lt.f32.partialorder %v2047_v10, 0.0004427343  ;;  %4744 = vpow2.f32 %v1756_v23  ;;  %v6300_v24 = vadd.f32 %v6145_v39, %v1304_v17  ;;  %v6302_v30 = vpop.eup %4738  ;;  %v7566_v51 = vmax.f32 %v5869_v4, 0.0  ;;  %v6318_v10 = vpop.f32.mrb[61].mxu0 }
 0x16b   : > { %v1995_v37 = vsel %vm6231_vm7, %v1992_v22, %v1989_v35  ;;  %v2040_v34 = vsel %vm6235_vm8, %v2037_v16, %v2034_v53  ;;  %v2016_v36 = vmul.f32 0.6931472, %v4733_v5  ;;  %v2043_v62 = vmul.f32 0.6931472, %v4735_v31  ;;  %v6336_v53 = vpop.f32.mrb[62].mxu0 }
 0x16c   : > { %v6306_v25 = vadd.f32 %v2013_v19, %v7566_v51  ;;  %v2026_v60 = vmul.f32 -0.5, %v6227_v21  ;;  %v6314_v57 = vadd.f32 %v6145_v39, %v1325_v52  ;;  %v1317_v18 = vadd.f32 %v5884_v44, %v7567_v29  ;;  %v6320_v4 = vpop.eup %4740 }
 0x16d   : > { %v2068_v38 = vadd.f32 1.0, %v6292_v54  ;;  %v7568_v48 = vpack.c.bf16 %v5923_v9, %v5888_v55  ;;  %4746 = vpow2.f32 %v1766_v11  ;;  %v1670_v22 = vsub.f32 0.0, %v1606_v61 }
 0x16e   : > { %v1609_v23 = vand.u32 2147483647, %v6288_v14  ;;  %v7569_v3 = vmax.f32 %v5938_v33, 0.0  ;;  %v1540_v44 = vmax.f32 %v6148_v6, 0.0  ;;  %v2050_v17 = vadd.f32 1.0, %v6302_v30 }
 0x16f   : > { %4340 = vmatmul.mubr.msk.bf16.gmra.mrb[4].mxu1 %vm2541_vm3, %v7568_v48  ;;  %v1607_v35 = vand.u32 2147483647, %v6300_v24  ;;  %v7570_v55 = vmax.f32 %v5953_v2, 0.0  ;;  %v2022_v16 = vsel %vm6272_vm9, %v2019_v40, %v2016_v36  ;;  %v2029_v33 = vand.u32 2147483647, %v6227_v21 }
 0x170   : > { %v6330_v26 = vadd.f32 %v1995_v37, %v7569_v3  ;;  %4343 = vmatprep.mubr.msk.bf16.mxu1 %vm2541_vm3, %v2478_v28  ;;  %v1538_v5 = vmax.f32 %v6161_v49, 0.0  ;;  %v2049_v42 = vsel %vm6295_vm10, %v2046_v47, %v2043_v62  ;;  %v2027_v19 = vadd.f32 1.0, %v2026_v60  ;;  %v6368_v62 = vpop.f32.mrb[63].mxu0 }
 0x171   : > { %v6340_v9 = vadd.f32 %v2040_v34, %v7570_v55  ;;  %v2077_v13 = vadd.f32 1.0, %v6320_v4  ;;  %v1612_v28 = vand.u32 2147483647, %v6314_v57  ;;  %4748 = vlog2.f32 %v2068_v38  ;;  %7575 = vst [vmem:[#allocation52_spill] sm:$0xff] %v6368_v62 }
 0x172   : > { %v1762_v52 = vmul.f32 1.442695, %v1670_v22  ;;  %v1673_v2 = vsub.f32 0.0, %v1609_v23  ;;  %v6351_v31 = vadd.f32 %v6145_v39, %v1317_v18  ;;  %4750 = vlog2.f32 %v2050_v17  ;;  %v4743_v61 = vpop.eup %4742  ;;  %v7576_v18 = vld [vmem:[#allocation17_spill] sm:$0xff]  ;;  %v7577_v17 = vld [vmem:[#allocation51_spill] sm:$0xff] }
 0x173   : > { %v1541_v12 = vmax.f32 %v6164_v56, 0.0  ;;  %v1671_v11 = vsub.f32 0.0, %v1607_v35  ;;  %v7571_v47 = vmax.f32 %v5976_v41, 0.0  ;;  %v7572_v51 = vmax.f32 %v5987_v63, 0.0  ;;  %v7578_v35 = vld [vmem:[#allocation70_spill] sm:$0xff] }
 0x174   : > { %vm6363_vm11 = vcmp.lt.f32.partialorder %v2029_v33, 0.0004427343  ;;  %v6370_v60 = vpop.eup %4744  ;;  %v2028_v29 = vmul.f32 %v6227_v21, %v2027_v19  ;;  %4752 = vlog2.f32 %v2077_v13  ;;  %v1328_v63 = vadd.f32 %v5895_v58, %v7576_v18  ;;  %v7587_v19 = vld [vmem:[#allocation18_spill] sm:$0xff] }
 0x175   : > { %v6357_v7 = vadd.f32 %v2022_v16, %v7571_v47  ;;  %v6361_v37 = vadd.f32 %v2049_v42, %v7572_v51  ;;  %4754 = vpow2.f32 %v1762_v52  ;;  %v1768_v38 = vmul.f32 1.442695, %v1673_v2  ;;  %v7581_v52 = vld [vmem:[#allocation15_spill] sm:$0xff] }
 0x176   : > { %v1676_v48 = vsub.f32 0.0, %v1612_v28  ;;  %v1610_v22 = vand.u32 2147483647, %v6351_v31  ;;  %v2071_v23 = vmul.f32 -0.5, %v6292_v54  ;;  %v2074_v21 = vand.u32 2147483647, %v6292_v54 }
 0x177   : > { %4344 = vmatmul.mubr.msk.bf16.gmra.mrb[8].mxu1 %vm2541_vm3, %v2479_v45  ;;  %v1764_v3 = vmul.f32 1.442695, %v1671_v11  ;;  %v2480_v55 = vpack.c.bf16 %v7578_v35, %v7577_v17  ;;  %v6385_v16 = vpop.eup %4746  ;;  %v2025_v58 = vmul.f32 0.6931472, %v4743_v61  ;;  %v2059_v33 = vadd.f32 1.0, %v6370_v60  ;;  %v7582_v2 = vld [vmem:[#allocation55_spill] sm:$0xff] }
 0x178   : > { %v1674_v42 = vsub.f32 0.0, %v1610_v22  ;;  %v2481_v45 = vpack.c.bf16 %v7580_v8, %v7579_v1  ;;  %v1320_v11 = vadd.f32 %v7582_v2, %v7581_v52  ;;  %v2053_v47 = vmul.f32 -0.5, %v6302_v30 }
 0x179   : > { %4347 = vmatprep.mubr.msk.bf16.mxu1 %vm2541_vm3, %v2480_v55  ;;  %4756 = vpow2.f32 %v1768_v38  ;;  %v1774_v61 = vmul.f32 1.442695, %v1676_v48  ;;  %v6398_v51 = vadd.f32 %v6145_v39, %v1328_v63  ;;  %v2072_v18 = vadd.f32 1.0, %v2071_v23 }
 0x17a   : > { %v2080_v22 = vmul.f32 -0.5, %v6320_v4  ;;  %v2104_v17 = vadd.f32 1.0, %v6385_v16  ;;  %4758 = vpow2.f32 %v1764_v3  ;;  %v2031_v1 = vsel %vm6363_vm11, %v2028_v29, %v2025_v58  ;;  %v7585_v58 = vld [vmem:[#allocation5_spill] sm:$0xff] }
 0x17b   : > { %v4749_v35 = vpop.eup %4748  ;;  %vm6404_vm12 = vcmp.lt.f32.partialorder %v2074_v21, 0.0004427343  ;;  %4760 = vlog2.f32 %v2059_v33  ;;  %v1770_v38 = vmul.f32 1.442695, %v1674_v42  ;;  %v2056_v63 = vand.u32 2147483647, %v6302_v30 }
 0x17c   : > { %v4751_v48 = vpop.eup %4750  ;;  %v2062_v23 = vmul.f32 -0.5, %v6370_v60  ;;  %v2107_v55 = vmul.f32 -0.5, %v6385_v16  ;;  %v6412_v52 = vadd.f32 %v6145_v39, %v1320_v11  ;;  %v2054_v3 = vadd.f32 1.0, %v2053_v47 }
 0x17d   : > { %v2083_v34 = vand.u32 2147483647, %v6320_v4  ;;  %4762 = vpow2.f32 %v1774_v61  ;;  %v1613_v29 = vand.u32 2147483647, %v6398_v51  ;;  %v7586_v33 = vmax.f32 %v7585_v58, 0.0  ;;  %v7588_v61 = vld [vmem:[#allocation56_spill] sm:$0xff] }
 0x17e   : > { %v4753_v21 = vpop.eup %4752  ;;  %v2070_v2 = vmul.f32 0.6931472, %v4749_v35  ;;  %v2081_v28 = vadd.f32 1.0, %v2080_v22  ;;  %4764 = vlog2.f32 %v2104_v17  ;;  %v2073_v11 = vmul.f32 %v6292_v54, %v2072_v18 }
 0x17f   : > { %4348 = vmatmul.mubr.msk.bf16.gmra.mrb[12].mxu1 %vm2541_vm3, %v2481_v45  ;;  %v6419_v42 = vadd.f32 %v2031_v1, %v7586_v33  ;;  %v6421_v13 = vpop.eup %4754  ;;  %v2052_v47 = vmul.f32 0.6931472, %v4751_v48  ;;  %4766 = vpow2.f32 %v1770_v38  ;;  %v1341_v41 = vadd.f32 %v7588_v61, %v7587_v19 }
 0x180   : > { %v2063_v36 = vadd.f32 1.0, %v2062_v23  ;;  %v2065_v45 = vand.u32 2147483647, %v6370_v60  ;;  %v2108_v40 = vadd.f32 1.0, %v2107_v55  ;;  %v1611_v58 = vand.u32 2147483647, %v6412_v52 }
 0x181   : > { %v2055_v1 = vmul.f32 %v6302_v30, %v2054_v3  ;;  %vm6429_vm13 = vcmp.lt.f32.partialorder %v2056_v63, 0.0004427343  ;;  %vm6433_vm14 = vcmp.lt.f32.partialorder %v2083_v34, 0.0004427343  ;;  %v1677_v54 = vsub.f32 0.0, %v1613_v29  ;;  %v7593_v55 = vld [vmem:[#allocation19_spill] sm:$0xff] }
 0x182   : > { %v2076_v19 = vsel %vm6404_vm12, %v2073_v11, %v2070_v2  ;;  %v2079_v18 = vmul.f32 0.6931472, %v4753_v21  ;;  %v2082_v35 = vmul.f32 %v6320_v4, %v2081_v28  ;;  %v2086_v38 = vadd.f32 1.0, %v6421_v13  ;;  %v7594_v3 = vld [vmem:[#allocation57_spill] sm:$0xff] }
 0x183   : > { %v6441_v48 = vpop.eup %4756  ;;  %v2058_v30 = vsel %vm6429_vm13, %v2055_v1, %v2052_v47  ;;  %v2110_v63 = vand.u32 2147483647, %v6385_v16  ;;  %v6447_v23 = vadd.f32 %v6145_v39, %v1341_v41  ;;  %v1333_v34 = vadd.f32 %v7594_v3, %v7593_v55 }
 0x184   : > { %v6451_v8 = vpop.eup %4758  ;;  %v2064_v29 = vmul.f32 %v6370_v60, %v2063_v36  ;;  %vm6454_vm15 = vcmp.lt.f32.partialorder %v2065_v45, 0.0004427343  ;;  %v6459_v28 = vmul.f32 %v6385_v16, %v2108_v40  ;;  %v1675_v33 = vsub.f32 0.0, %v1611_v58  ;;  %v7600_v58 = vld [vmem:[#allocation58_spill] sm:$0xff] }
 0x185   : > { %v4761_v2 = vpop.eup %4760  ;;  %v6464_v41 = vadd.f32 %v2076_v19, %v1540_v44  ;;  %v1776_v47 = vmul.f32 1.442695, %v1677_v54  ;;  %v6470_v60 = vadd.f32 %v2058_v30, %v1538_v5  ;;  %v2085_v40 = vsel %vm6433_vm14, %v2082_v35, %v2079_v18  ;;  %v7599_v5 = vld [vmem:[#allocation20_spill] sm:$0xff]  ;;  %v7601_v18 = vld [vmem:[#allocation21_spill] sm:$0xff]  ;;  %v7602_v35 = vld [vmem:[#allocation59_spill] sm:$0xff] }
 0x186   : > { %4768 = vlog2.f32 %v2086_v38  ;;  %v2113_v16 = vadd.f32 1.0, %v6441_v48  ;;  %vm6477_vm0 = vcmp.lt.f32.partialorder %v2110_v63, 0.0004427343  ;;  %v2095_v44 = vadd.f32 1.0, %v6451_v8 }
 0x187   : > { %v6475_v61 = vpop.eup %4762  ;;  %v1616_v45 = vand.u32 2147483647, %v6447_v23  ;;  %v6484_v49 = vadd.f32 %v6145_v39, %v1333_v34  ;;  %v1344_v1 = vadd.f32 %v7600_v58, %v7599_v5  ;;  %v2061_v17 = vmul.f32 0.6931472, %v4761_v2 }
 0x188   : > { %v4765_v22 = vpop.eup %4764  ;;  %v2089_v54 = vmul.f32 -0.5, %v6421_v13  ;;  %v1772_v19 = vmul.f32 1.442695, %v1675_v33  ;;  %v1336_v38 = vadd.f32 %v7602_v35, %v7601_v18  ;;  %v2092_v63 = vand.u32 2147483647, %v6421_v13 }
 0x189   : > { %v6491_v30 = vpop.eup %4766  ;;  %4770 = vpow2.f32 %v1776_v47  ;;  %v1680_v55 = vsub.f32 0.0, %v1616_v45  ;;  %v1614_v3 = vand.u32 2147483647, %v6484_v49  ;;  %v2140_v34 = vadd.f32 1.0, %v6475_v61 }
 0x18a   : > { %4772 = vlog2.f32 %v2113_v16  ;;  %v6497_v5 = vadd.f32 %v6145_v39, %v1344_v1  ;;  %v2482_v33 = vpack.c.bf16 %v6330_v26, %v6278_v59  ;;  %v2106_v2 = vmul.f32 0.6931472, %v4765_v22 }
 0x18b   : > { %4774 = vlog2.f32 %v2095_v44  ;;  %v1782_v58 = vmul.f32 1.442695, %v1680_v55  ;;  %v6502_v18 = vadd.f32 %v6145_v39, %v1336_v38  ;;  %v2122_v47 = vadd.f32 1.0, %v6491_v30 }
 0x18c   : > { %4776 = vpow2.f32 %v1772_v19  ;;  %v1678_v45 = vsub.f32 0.0, %v1614_v3  ;;  %v1617_v16 = vand.u32 2147483647, %v6497_v5  ;;  %4351 = vmatprep.mubr.msk.bf16.mxu1 %vm2541_vm3, %v2482_v33  ;;  %v6509_v1 = vadd.f32 %v2085_v40, %v1541_v12  ;;  %v7606_v33 = vld [vmem:[#allocation24_spill] sm:$0xff] }
 0x18d   : > { %v2067_v59 = vsel %vm6454_vm15, %v2064_v29, %v2061_v17  ;;  %v2116_v26 = vmul.f32 -0.5, %v6441_v48  ;;  %v2098_v44 = vmul.f32 -0.5, %v6451_v8  ;;  %v2090_v22 = vadd.f32 1.0, %v2089_v54 }
 0x18e   : > { %v2119_v35 = vand.u32 2147483647, %v6441_v48  ;;  %4778 = vlog2.f32 %v2140_v34  ;;  %v1681_v19 = vsub.f32 0.0, %v1617_v16  ;;  %vm6516_vm1 = vcmp.lt.f32.partialorder %v2092_v63, 0.0004427343 }
 0x18f   : > { %v2143_v56 = vmul.f32 -0.5, %v6475_v61  ;;  %4780 = vpow2.f32 %v1782_v58  ;;  %v1615_v12 = vand.u32 2147483647, %v6502_v18  ;;  %v2483_v29 = vpack.c.bf16 %v6306_v25, %v6222_v43  ;;  %v7607_v58 = vld [vmem:[#allocation60_spill] sm:$0xff] }
 0x190   : > { %v4769_v4 = vpop.eup %4768  ;;  %v7605_v40 = vmax.f32 %v6189_v0, 0.0  ;;  %v2112_v54 = vsel %vm6477_vm0, %v6459_v28, %v2106_v2  ;;  %4782 = vlog2.f32 %v2122_v47  ;;  %v1778_v63 = vmul.f32 1.442695, %v1678_v45 }
 0x191   : > { %v2117_v55 = vadd.f32 1.0, %v2116_v26  ;;  %v2099_v3 = vadd.f32 1.0, %v2098_v44  ;;  %v2101_v34 = vand.u32 2147483647, %v6451_v8  ;;  %4352 = vmatmul.mubr.msk.bf16.gmra.mrb[16].mxu1 %vm2541_vm3, %v2483_v29  ;;  %v1357_v43 = vadd.f32 %v7607_v58, %v7606_v33  ;;  %v7611_v44 = vld [vmem:[#allocation22_spill] sm:$0xff]  ;;  %v7612_v29 = vld [vmem:[#allocation61_spill] sm:$0xff] }
 0x192   : > { %v6526_v17 = vadd.f32 %v2067_v59, %v7605_v40  ;;  %v2091_v25 = vmul.f32 %v6421_v13, %v2090_v22  ;;  %v2146_v0 = vand.u32 2147483647, %v6475_v61  ;;  %v2125_v16 = vmul.f32 -0.5, %v6491_v30 }
 0x193   : > { %v1784_v59 = vmul.f32 1.442695, %v1681_v19  ;;  %v6538_v6 = vpop.eup %4770  ;;  %v7608_v28 = vmax.f32 %v6202_v15, 0.0  ;;  %vm6544_vm2 = vcmp.lt.f32.partialorder %v2119_v35, 0.0004427343  ;;  %v2144_v45 = vadd.f32 1.0, %v2143_v56 }
 0x194   : > { %v1679_v26 = vsub.f32 0.0, %v1615_v12  ;;  %v1349_v13 = vadd.f32 %v7612_v29, %v7611_v44  ;;  %v4773_v22 = vpop.eup %4772  ;;  %v2088_v40 = vmul.f32 0.6931472, %v4769_v4  ;;  %v2128_v33 = vand.u32 2147483647, %v6491_v30 }
 0x195   : > { %v6542_v2 = vadd.f32 %v2112_v54, %v7608_v28  ;;  %4784 = vpow2.f32 %v1778_v63  ;;  %v6552_v19 = vadd.f32 %v6145_v39, %v1357_v43  ;;  %v4775_v15 = vpop.eup %4774  ;;  %v2118_v54 = vmul.f32 %v6441_v48, %v2117_v55  ;;  %v7618_v28 = vld [vmem:[#allocation62_spill] sm:$0xff] }
 0x196   : > { %v2100_v35 = vmul.f32 %v6451_v8, %v2099_v3  ;;  %vm6556_vm4 = vcmp.lt.f32.partialorder %v2101_v34, 0.0004427343  ;;  %v6561_v12 = vpop.eup %4776  ;;  %vm6563_vm5 = vcmp.lt.f32.partialorder %v2146_v0, 0.0004427343  ;;  %v2126_v63 = vadd.f32 1.0, %v2125_v16  ;;  %v7617_v34 = vld [vmem:[#allocation25_spill] sm:$0xff] }
 0x197   : > { %v2149_v43 = vadd.f32 1.0, %v6538_v6  ;;  %4786 = vpow2.f32 %v1784_v59  ;;  %v1620_v48 = vand.u32 2147483647, %v6552_v19  ;;  %v2145_v8 = vmul.f32 %v6475_v61, %v2144_v45 }
 0x198   : > { %v1780_v55 = vmul.f32 1.442695, %v1679_v26  ;;  %v6571_v3 = vadd.f32 %v6145_v39, %v1349_v13  ;;  %v1360_v44 = vadd.f32 %v7618_v28, %v7617_v34  ;;  %v4779_v29 = vpop.eup %4778  ;;  %v2094_v0 = vsel %vm6516_vm1, %v2091_v25, %v2088_v40  ;;  %v7621_v13 = vld [vmem:[#allocation23_spill] sm:$0xff] }
 0x199   : > { %v2115_v56 = vmul.f32 0.6931472, %v4773_v22  ;;  %v2097_v16 = vmul.f32 0.6931472, %v4775_v15  ;;  %vm6577_vm6 = vcmp.lt.f32.partialorder %v2128_v33, 0.0004427343  ;;  %v6581_v59 = vpop.eup %4780  ;;  %v2127_v25 = vmul.f32 %v6491_v30, %v2126_v63 }
 0x19a   : > { %v2131_v61 = vadd.f32 1.0, %v6561_v12  ;;  %v1618_v45 = vand.u32 2147483647, %v6571_v3  ;;  %v6586_v26 = vadd.f32 %v6145_v39, %v1360_v44  ;;  %v7622_v34 = vld [vmem:[#allocation63_spill] sm:$0xff]  ;;  %v4783_v38 = vpop.eup %4782  ;;  %4788 = vlog2.f32 %v2149_v43 }
 0x19b   : > { %v1352_v28 = vadd.f32 %v7622_v34, %v7621_v13  ;;  %v1550_v22 = vmax.f32 %v6484_v49, 0.0  ;;  %v1684_v40 = vsub.f32 0.0, %v1620_v48  ;;  %v2142_v33 = vmul.f32 0.6931472, %v4779_v29 }
 0x19c   : > { %v2152_v15 = vmul.f32 -0.5, %v6538_v6  ;;  %4790 = vpow2.f32 %v1780_v55  ;;  %v1682_v11 = vsub.f32 0.0, %v1618_v45  ;;  %v7623_v21 = vmax.f32 %v6260_v20, 0.0 }
 0x19d   : > { %v2121_v44 = vsel %vm6544_vm2, %v2118_v54, %v2115_v56  ;;  %v2176_v13 = vadd.f32 1.0, %v6581_v59  ;;  %v1621_v30 = vand.u32 2147483647, %v6586_v26  ;;  %v2103_v63 = vsel %vm6556_vm4, %v2100_v35, %v2097_v16 }
 0x19e   : > { %v6595_v62 = vadd.f32 %v2094_v0, %v7623_v21  ;;  %v2124_v43 = vmul.f32 0.6931472, %v4783_v38  ;;  %4792 = vlog2.f32 %v2131_v61  ;;  %v6604_v48 = vadd.f32 %v6145_v39, %v1352_v28 }
 0x19f   : > { %v6606_v55 = vpop.eup %4784  ;;  %v2134_v20 = vmul.f32 -0.5, %v6561_v12  ;;  %v1553_v21 = vmax.f32 %v6497_v5, 0.0  ;;  %v1551_v47 = vmax.f32 %v6502_v18, 0.0  ;;  %v1790_v54 = vmul.f32 1.442695, %v1684_v40 }
 0x1a0   : > { %v2148_v56 = vsel %vm6563_vm5, %v2145_v8, %v2142_v33  ;;  %v2153_v29 = vadd.f32 1.0, %v2152_v15  ;;  %v2155_v35 = vand.u32 2147483647, %v6538_v6  ;;  %v1786_v58 = vmul.f32 1.442695, %v1682_v11 }
 0x1a1   : > { %v6614_v0 = vpop.eup %4786  ;;  %v7624_v16 = vmax.f32 %v6288_v14, 0.0  ;;  %v7625_v45 = vmax.f32 %v6300_v24, 0.0  ;;  %4794 = vlog2.f32 %v2176_v13  ;;  %v1685_v28 = vsub.f32 0.0, %v1621_v30 }
 0x1a2   : > { %v2130_v4 = vsel %vm6577_vm6, %v2127_v25, %v2124_v43  ;;  %v2137_v8 = vand.u32 2147483647, %v6561_v12  ;;  %v2158_v38 = vadd.f32 1.0, %v6606_v55  ;;  %v1619_v11 = vand.u32 2147483647, %v6604_v48 }
 0x1a3   : > { %v6618_v61 = vadd.f32 %v2121_v44, %v7624_v16  ;;  %v6622_v34 = vadd.f32 %v2103_v63, %v7625_v45  ;;  %v7626_v40 = vmax.f32 %v6314_v57, 0.0  ;;  %v2135_v33 = vadd.f32 1.0, %v2134_v20 }
 0x1a4   : > { %v2179_v24 = vmul.f32 -0.5, %v6581_v59  ;;  %4796 = vpow2.f32 %v1790_v54  ;;  %v2154_v15 = vmul.f32 %v6538_v6, %v2153_v29  ;;  %vm6635_vm7 = vcmp.lt.f32.partialorder %v2155_v35, 0.0004427343  ;;  %v4789_v25 = vpop.eup %4788  ;;  %v7633_v29 = vld [vmem:[#allocation42_spill] sm:$0xff] }
 0x1a5   : > { %v6631_v14 = vadd.f32 %v2148_v56, %v7626_v40  ;;  %v2185_v36 = vadd.f32 1.0, %v6614_v0  ;;  %4798 = vpow2.f32 %v1786_v58  ;;  %v7629_v13 = vmax.f32 %v6351_v31, 0.0  ;;  %v7632_v31 = vld [vmem:[#allocation30_spill] sm:$0xff] }
 0x1a6   : > { %v2182_v57 = vand.u32 2147483647, %v6581_v59  ;;  %v1792_v63 = vmul.f32 1.442695, %v1685_v28  ;;  %v2484_v43 = vpack.c.bf16 %v6419_v42, %v6357_v7  ;;  %v6647_v20 = vpop.eup %4790  ;;  %vm6649_vm8 = vcmp.lt.f32.partialorder %v2137_v8, 0.0004427343 }
 0x1a7   : > { %v6642_v30 = vadd.f32 %v2130_v4, %v7629_v13  ;;  %4800 = vlog2.f32 %v2158_v38  ;;  %v1683_v54 = vsub.f32 0.0, %v1619_v11  ;;  %v2485_v56 = vpack.c.bf16 %v6361_v37, %v6340_v9  ;;  %v7636_v8 = vld [vmem:[#allocation26_spill] sm:$0xff] }
 0x1a8   : > { %v1373_v35 = vadd.f32 %v7633_v29, %v7632_v31  ;;  %v2136_v58 = vmul.f32 %v6561_v12, %v2135_v33  ;;  %v2180_v16 = vadd.f32 1.0, %v2179_v24  ;;  %v2161_v45 = vmul.f32 -0.5, %v6606_v55  ;;  %4355 = vmatprep.mubr.msk.bf16.mxu1 %vm2541_vm3, %v2484_v43  ;;  %v4793_v42 = vpop.eup %4792  ;;  %v7637_v38 = vld [vmem:[#allocation50_spill] sm:$0xff] }
 0x1a9   : > { %v1556_v7 = vmax.f32 %v6552_v19, 0.0  ;;  %v2151_v28 = vmul.f32 0.6931472, %v4789_v25  ;;  %4802 = vlog2.f32 %v2185_v36  ;;  %4356 = vmatmul.mubr.msk.bf16.gmra.mrb[20].mxu1 %vm2541_vm3, %v2485_v56  ;;  %v2486_v9 = vpack.c.bf16 %v6526_v17, %v6470_v60  ;;  %v7669_v19 = vld [vmem:[#allocation36_spill] sm:$0xff] }
 0x1aa   : > { %v6663_v4 = vadd.f32 %v6145_v39, %v1373_v35  ;;  %vm6667_vm9 = vcmp.lt.f32.partialorder %v2182_v57, 0.0004427343  ;;  %v2167_v12 = vadd.f32 1.0, %v6647_v20  ;;  %4804 = vpow2.f32 %v1792_v63  ;;  %v7638_v57 = vld [vmem:[#allocation32_spill] sm:$0xff]  ;;  %v7639_v63 = vld [vmem:[#allocation49_spill] sm:$0xff] }
 0x1ab   : > { %v1365_v11 = vadd.f32 %v7637_v38, %v7636_v8  ;;  %v2188_v40 = vmul.f32 -0.5, %v6614_v0  ;;  %v1788_v24 = vmul.f32 1.442695, %v1683_v54  ;;  %4359 = vmatprep.mubr.msk.bf16.mxu1 %vm2541_vm3, %v2486_v9  ;;  %v4795_v60 = vpop.eup %4794  ;;  %v2133_v17 = vmul.f32 0.6931472, %v4793_v42 }
 0x1ac   : > { %v1624_v36 = vand.u32 2147483647, %v6663_v4  ;;  %v2181_v25 = vmul.f32 %v6581_v59, %v2180_v16  ;;  %v2164_v13 = vand.u32 2147483647, %v6606_v55  ;;  %v1376_v43 = vadd.f32 %v7639_v63, %v7638_v57 }
 0x1ad   : > { %v2157_v56 = vsel %vm6635_vm7, %v2154_v15, %v2151_v28  ;;  %v2162_v31 = vadd.f32 1.0, %v2161_v45  ;;  %v2191_v9 = vand.u32 2147483647, %v6614_v0  ;;  %4806 = vlog2.f32 %v2167_v12 }
 0x1ae   : > { %v1688_v54 = vsub.f32 0.0, %v1624_v36  ;;  %v6685_v35 = vpop.eup %4796  ;;  %v2170_v42 = vmul.f32 -0.5, %v6647_v20  ;;  %v6690_v59 = vadd.f32 %v6145_v39, %v1365_v11  ;;  %v2178_v8 = vmul.f32 0.6931472, %v4795_v60  ;;  %v7642_v11 = vld [vmem:[#allocation27_spill] sm:$0xff]  ;;  %v7643_v36 = vld [vmem:[#allocation64_spill] sm:$0xff] }
 0x1af   : > { %v6692_v16 = vpop.eup %4798  ;;  %v2189_v38 = vadd.f32 1.0, %v2188_v40  ;;  %4808 = vpow2.f32 %v1788_v24  ;;  %v2139_v44 = vsel %vm6649_vm8, %v2136_v58, %v2133_v17  ;;  %vm6696_vm10 = vcmp.lt.f32.partialorder %v2164_v13, 0.0004427343 }
 0x1b0   : > { %v1798_v15 = vmul.f32 1.442695, %v1688_v54  ;;  %v1622_v28 = vand.u32 2147483647, %v6690_v59  ;;  %v6702_v12 = vadd.f32 %v6145_v39, %v1376_v43  ;;  %v1368_v57 = vadd.f32 %v7643_v36, %v7642_v11 }
 0x1b1   : > { %v4801_v63 = vpop.eup %4800  ;;  %v7644_v40 = vmax.f32 %v6398_v51, 0.0  ;;  %v2163_v6 = vmul.f32 %v6606_v55, %v2162_v31  ;;  %v2212_v58 = vadd.f32 1.0, %v6685_v35  ;;  %vm6713_vm11 = vcmp.lt.f32.partialorder %v2191_v9, 0.0004427343 }
 0x1b2   : > { %v2171_v13 = vadd.f32 1.0, %v2170_v42  ;;  %v2173_v43 = vand.u32 2147483647, %v6647_v20  ;;  %v2194_v54 = vadd.f32 1.0, %v6692_v16  ;;  %v1686_v11 = vsub.f32 0.0, %v1622_v28  ;;  %v7649_v28 = vld [vmem:[#allocation66_spill] sm:$0xff] }
 0x1b3   : > { %v6708_v24 = vadd.f32 %v2157_v56, %v7644_v40  ;;  %v4803_v36 = vpop.eup %4802  ;;  %v7647_v51 = vmax.f32 %v6412_v52, 0.0  ;;  %v2184_v55 = vsel %vm6667_vm9, %v2181_v25, %v2178_v8  ;;  %v2190_v31 = vmul.f32 %v6614_v0, %v2189_v38  ;;  %v7650_v25 = vld [vmem:[#allocation29_spill] sm:$0xff]  ;;  %v7651_v8 = vld [vmem:[#allocation68_spill] sm:$0xff] }
 0x1b4   : > { %4810 = vpow2.f32 %v1798_v15  ;;  %v6726_v9 = vpop.eup %4804  ;;  %v2160_v40 = vmul.f32 0.6931472, %v4801_v63  ;;  %v1794_v42 = vmul.f32 1.442695, %v1686_v11  ;;  %v1625_v60 = vand.u32 2147483647, %v6702_v12 }
 0x1b5   : > { %v6721_v56 = vadd.f32 %v2139_v44, %v7647_v51  ;;  %v6730_v29 = vadd.f32 %v6145_v39, %v1368_v57  ;;  %4812 = vlog2.f32 %v2212_v58  ;;  %v2487_v52 = vpack.c.bf16 %v6509_v1, %v6464_v41  ;;  %v7648_v44 = vld [vmem:[#allocation34_spill] sm:$0xff] }
 0x1b6   : > { %v1389_v37 = vadd.f32 %v7649_v28, %v7648_v44  ;;  %v1381_v0 = vadd.f32 %v7651_v8, %v7650_v25  ;;  %v2172_v38 = vmul.f32 %v6647_v20, %v2171_v13  ;;  %vm6739_vm12 = vcmp.lt.f32.partialorder %v2173_v43, 0.0004427343  ;;  %v7655_v8 = vld [vmem:[#allocation35_spill] sm:$0xff] }
 0x1b7   : > { %v2215_v63 = vmul.f32 -0.5, %v6685_v35  ;;  %4814 = vlog2.f32 %v2194_v54  ;;  %v2187_v57 = vmul.f32 0.6931472, %v4803_v36  ;;  %v2221_v58 = vadd.f32 1.0, %v6726_v9  ;;  %4360 = vmatmul.mubr.msk.bf16.gmra.mrb[24].mxu1 %vm2541_vm3, %v2487_v52  ;;  %v4807_v1 = vpop.eup %4806 }
 0x1b8   : > { %v1689_v11 = vsub.f32 0.0, %v1625_v60  ;;  %v1623_v41 = vand.u32 2147483647, %v6730_v29  ;;  %v7654_v51 = vmax.f32 %v6447_v23, 0.0  ;;  %v2218_v20 = vand.u32 2147483647, %v6685_v35 }
 0x1b9   : > { %4816 = vpow2.f32 %v1794_v42  ;;  %v6753_v13 = vadd.f32 %v6145_v39, %v1389_v37  ;;  %v6755_v43 = vpop.eup %4808  ;;  %v2166_v60 = vsel %vm6696_vm10, %v2163_v6, %v2160_v40  ;;  %v6761_v52 = vadd.f32 %v6145_v39, %v1381_v0  ;;  %v7656_v0 = vld [vmem:[#allocation69_spill] sm:$0xff] }
 0x1ba   : > { %v6749_v44 = vadd.f32 %v2184_v55, %v7654_v51  ;;  %v1687_v36 = vsub.f32 0.0, %v1623_v41  ;;  %v2216_v23 = vadd.f32 1.0, %v2215_v63  ;;  %v2197_v55 = vmul.f32 -0.5, %v6692_v16  ;;  %v7657_v63 = vld [vmem:[#allocation33_spill] sm:$0xff]  ;;  %v7658_v51 = vld [vmem:[#allocation71_spill] sm:$0xff] }
 0x1bb   : > { %v2200_v28 = vand.u32 2147483647, %v6692_v16  ;;  %v1800_v42 = vmul.f32 1.442695, %v1689_v11  ;;  %v2193_v37 = vsel %vm6713_vm11, %v2190_v31, %v2187_v57  ;;  %v2169_v25 = vmul.f32 0.6931472, %v4807_v1 }
 0x1bc   : > { %4818 = vlog2.f32 %v2221_v58  ;;  %v1628_v45 = vand.u32 2147483647, %v6753_v13  ;;  %v2203_v6 = vadd.f32 1.0, %v6755_v43  ;;  %v1626_v40 = vand.u32 2147483647, %v6761_v52 }
 0x1bd   : > { %v1392_v41 = vadd.f32 %v7656_v0, %v7655_v8  ;;  %v1384_v54 = vadd.f32 %v7658_v51, %v7657_v63  ;;  %v6778_v17 = vadd.f32 %v2166_v60, %v1550_v22  ;;  %vm6780_vm13 = vcmp.lt.f32.partialorder %v2218_v20, 0.0004427343 }
 0x1be   : > { %v6774_v33 = vpop.eup %4810  ;;  %v2224_v57 = vmul.f32 -0.5, %v6726_v9  ;;  %v1796_v58 = vmul.f32 1.442695, %v1687_v36  ;;  %v2217_v11 = vmul.f32 %v6685_v35, %v2216_v23  ;;  %v2198_v1 = vadd.f32 1.0, %v2197_v55 }
 0x1bf   : > { %4820 = vpow2.f32 %v1800_v42  ;;  %v1692_v8 = vsub.f32 0.0, %v1628_v45  ;;  %v4813_v0 = vpop.eup %4812  ;;  %v6788_v63 = vadd.f32 %v2193_v37, %v1553_v21  ;;  %v2175_v49 = vsel %vm6739_vm12, %v2172_v38, %v2169_v25 }
 0x1c0   : > { %vm6792_vm14 = vcmp.lt.f32.partialorder %v2200_v28, 0.0004427343  ;;  %v1558_v20 = vmax.f32 %v6690_v59, 0.0  ;;  %v6798_v60 = vadd.f32 %v6145_v39, %v1392_v41  ;;  %4822 = vlog2.f32 %v2203_v6 }
 0x1c1   : > { %v4815_v35 = vpop.eup %4814  ;;  %v2248_v36 = vadd.f32 1.0, %v6774_v33  ;;  %v1690_v23 = vsub.f32 0.0, %v1626_v40  ;;  %v6802_v5 = vadd.f32 %v6145_v39, %v1384_v54  ;;  %v2225_v21 = vadd.f32 1.0, %v2224_v57 }
 0x1c2   : > { %v2227_v38 = vand.u32 2147483647, %v6726_v9  ;;  %v2206_v15 = vmul.f32 -0.5, %v6755_v43  ;;  %4824 = vpow2.f32 %v1796_v58  ;;  %v2214_v28 = vmul.f32 0.6931472, %v4813_v0 }
 0x1c3   : > { %v6806_v55 = vpop.eup %4816  ;;  %v2199_v42 = vmul.f32 %v6692_v16, %v2198_v1  ;;  %v1806_v37 = vmul.f32 1.442695, %v1692_v8  ;;  %v1629_v25 = vand.u32 2147483647, %v6798_v60  ;;  %v6812_v45 = vadd.f32 %v2175_v49, %v1551_v47 }
 0x1c4   : > { %v2196_v39 = vmul.f32 0.6931472, %v4815_v35  ;;  %v2209_v54 = vand.u32 2147483647, %v6755_v43  ;;  %v1561_v6 = vmax.f32 %v6702_v12, 0.0  ;;  %4826 = vlog2.f32 %v2248_v36 }
 0x1c5   : > { %v1802_v40 = vmul.f32 1.442695, %v1690_v23  ;;  %v1693_v41 = vsub.f32 0.0, %v1629_v25  ;;  %v1627_v51 = vand.u32 2147483647, %v6802_v5  ;;  %v2207_v58 = vadd.f32 1.0, %v2206_v15 }
 0x1c6   : > { %v4819_v57 = vpop.eup %4818  ;;  %v2230_v16 = vadd.f32 1.0, %v6806_v55  ;;  %v2488_v1 = vpack.c.bf16 %v6622_v34, %v6595_v62  ;;  %v2489_v18 = vpack.c.bf16 %v6618_v61, %v6542_v2  ;;  %v2220_v47 = vsel %vm6780_vm13, %v2217_v11, %v2214_v28  ;;  %v7665_v62 = vld [vmem:[#allocation37_spill] sm:$0xff]  ;;  %v7666_v34 = vld [vmem:[#allocation6_spill] sm:$0xff] }
 0x1c7   : > { %v2226_v8 = vmul.f32 %v6726_v9, %v2225_v21  ;;  %vm6825_vm15 = vcmp.lt.f32.partialorder %v2227_v38, 0.0004427343  ;;  %4828 = vpow2.f32 %v1806_v37  ;;  %v2251_v49 = vmul.f32 -0.5, %v6774_v33  ;;  %v6853_v37 = vld [vmem:[%s7388_s4] ss:$0 sm:$0xff]  ;;  %v7677_v11 = vld [vmem:[#allocation38_spill] sm:$0xff] }
 0x1c8   : > { %v1559_v35 = vmax.f32 %v6730_v29, 0.0  ;;  %v1691_v36 = vsub.f32 0.0, %v1627_v51  ;;  %4363 = vmatprep.mubr.msk.bf16.mxu1 %vm2541_vm3, %v2488_v1  ;;  %v1405_v2 = vadd.f32 %v7666_v34, %v7665_v62  ;;  %v2202_v9 = vsel %vm6792_vm14, %v2199_v42, %v2196_v39  ;;  %v7675_v34 = vld [vmem:[#allocation9_spill] sm:$0xff] }
 0x1c9   : > { %v6834_v61 = vpop.eup %4820  ;;  %v2223_v31 = vmul.f32 0.6931472, %v4819_v57  ;;  %vm6838_vm0 = vcmp.lt.f32.partialorder %v2209_v54, 0.0004427343  ;;  %4830 = vpow2.f32 %v1802_v40  ;;  %v1808_v23 = vmul.f32 1.442695, %v1693_v41  ;;  %4364 = vmatmul.mubr.msk.bf16.gmra.mrb[28].mxu1 %vm2541_vm3, %v2489_v18 }
 0x1ca   : > { %v6845_v21 = vadd.f32 %v2220_v47, %v1556_v7  ;;  %v2208_v38 = vmul.f32 %v6755_v43, %v2207_v58  ;;  %v2254_v15 = vand.u32 2147483647, %v6774_v33  ;;  %4832 = vlog2.f32 %v2230_v16  ;;  %v4823_v22 = vpop.eup %4822  ;;  %v7670_v7 = vld [vmem:[#allocation7_spill] sm:$0xff] }
 0x1cb   : > { %v1564_v28 = vmax.f32 %v6753_v13, 0.0  ;;  %v1804_v42 = vmul.f32 1.442695, %v1691_v36  ;;  %v6856_v25 = vadd.f32 %v6853_v37, %v1405_v2  ;;  %v1397_v39 = vadd.f32 %v7670_v7, %v7669_v19 }
 0x1cc   : > { %v6860_v54 = vpop.eup %4824  ;;  %v7671_v43 = vmax.f32 %v6571_v3, 0.0  ;;  %v2252_v41 = vadd.f32 1.0, %v2251_v49  ;;  %v2257_v51 = vadd.f32 1.0, %v6834_v61  ;;  %v1562_v57 = vmax.f32 %v6761_v52, 0.0 }
 0x1cd   : > { %v2229_v58 = vsel %vm6825_vm15, %v2226_v8, %v2223_v31  ;;  %v2233_v16 = vmul.f32 -0.5, %v6806_v55  ;;  %4834 = vpow2.f32 %v1808_v23  ;;  %v1632_v1 = vand.u32 2147483647, %v6856_v25  ;;  %v7674_v8 = vld [vmem:[#allocation39_spill] sm:$0xff] }
 0x1ce   : > { %v6864_v40 = vadd.f32 %v2202_v9, %v7671_v43  ;;  %v2205_v18 = vmul.f32 0.6931472, %v4823_v22  ;;  %vm6872_vm1 = vcmp.lt.f32.partialorder %v2254_v15, 0.0004427343  ;;  %v2260_v3 = vmul.f32 -0.5, %v6834_v61  ;;  %v4827_v49 = vpop.eup %4826 }
 0x1cf   : > { %4836 = vpow2.f32 %v1804_v42  ;;  %v2239_v36 = vadd.f32 1.0, %v6860_v54  ;;  %v1696_v62 = vsub.f32 0.0, %v1632_v1  ;;  %v6879_v0 = vadd.f32 %v6853_v37, %v1397_v39 }
 0x1d0   : > { %v1408_v2 = vadd.f32 %v7675_v34, %v7674_v8  ;;  %v7676_v9 = vmax.f32 %v6586_v26, 0.0  ;;  %v2253_v23 = vmul.f32 %v6774_v33, %v2252_v41  ;;  %v2236_v15 = vand.u32 2147483647, %v6806_v55 }
 0x1d1   : > { %4838 = vlog2.f32 %v2257_v51  ;;  %v6889_v22 = vpop.eup %4828  ;;  %v2234_v42 = vadd.f32 1.0, %v2233_v16  ;;  %v2242_v19 = vmul.f32 -0.5, %v6860_v54  ;;  %v1565_v7 = vmax.f32 %v6798_v60, 0.0 }
 0x1d2   : > { %v6885_v31 = vadd.f32 %v2229_v58, %v7676_v9  ;;  %v1814_v39 = vmul.f32 1.442695, %v1696_v62  ;;  %v2211_v43 = vsel %vm6838_vm0, %v2208_v38, %v2205_v18  ;;  %v2250_v1 = vmul.f32 0.6931472, %v4827_v49  ;;  %v7678_v38 = vld [vmem:[#allocation8_spill] sm:$0xff] }
 0x1d3   : > { %v2263_v26 = vand.u32 2147483647, %v6834_v61  ;;  %v6897_v33 = vpop.eup %4830  ;;  %v2261_v41 = vadd.f32 1.0, %v2260_v3  ;;  %4840 = vlog2.f32 %v2239_v36  ;;  %v1630_v51 = vand.u32 2147483647, %v6879_v0 }
 0x1d4   : > { %v6901_v16 = vadd.f32 %v6853_v37, %v1408_v2  ;;  %v4833_v8 = vpop.eup %4832  ;;  %v2284_v62 = vadd.f32 1.0, %v6889_v22  ;;  %4842 = vpow2.f32 %v1814_v39  ;;  %v1400_v18 = vadd.f32 %v7678_v38, %v7677_v11 }
 0x1d5   : > { %v2490_v49 = vpack.c.bf16 %v6721_v56, %v6642_v30  ;;  %v2235_v34 = vmul.f32 %v6806_v55, %v2234_v42  ;;  %vm6909_vm2 = vcmp.lt.f32.partialorder %v2236_v15, 0.0004427343  ;;  %v2243_v36 = vadd.f32 1.0, %v2242_v19 }
 0x1d6   : > { %v1694_v9 = vsub.f32 0.0, %v1630_v51  ;;  %v2256_v2 = vsel %vm6872_vm1, %v2253_v23, %v2250_v1  ;;  %v2287_v58 = vmul.f32 -0.5, %v6889_v22  ;;  %v2266_v39 = vadd.f32 1.0, %v6897_v33  ;;  %v7695_v1 = vld [vmem:[#allocation41_spill] sm:$0xff] }
 0x1d7   : > { %v1633_v11 = vand.u32 2147483647, %v6901_v16  ;;  %4367 = vmatprep.mubr.msk.bf16.mxu1 %vm2541_vm3, %v2490_v49  ;;  %v6919_v30 = vpop.eup %4834  ;;  %v7681_v56 = vmax.f32 %v6604_v48, 0.0  ;;  %v2232_v15 = vmul.f32 0.6931472, %v4833_v8  ;;  %v2269_v47 = vmul.f32 -0.5, %v6897_v33 }
 0x1d8   : > { %v2245_v42 = vand.u32 2147483647, %v6860_v54  ;;  %v6930_v19 = vmul.f32 %v6834_v61, %v2261_v41  ;;  %vm6932_vm4 = vcmp.lt.f32.partialorder %v2263_v26, 0.0004427343  ;;  %4844 = vlog2.f32 %v2284_v62 }
 0x1d9   : > { %v6923_v55 = vadd.f32 %v2211_v43, %v7681_v56  ;;  %v6927_v23 = vpop.eup %4836  ;;  %v6938_v48 = vadd.f32 %v6853_v37, %v1400_v18  ;;  %v7684_v43 = vmax.f32 %v6663_v4, 0.0  ;;  %v6945_v38 = vmul.f32 %v6860_v54, %v2243_v36  ;;  %v7687_v36 = vld [vmem:[#allocation44_spill] sm:$0xff] }
 0x1da   : > { %v1810_v49 = vmul.f32 1.442695, %v1694_v9  ;;  %v1697_v61 = vsub.f32 0.0, %v1633_v11  ;;  %v2288_v26 = vadd.f32 1.0, %v2287_v58  ;;  %v2290_v56 = vand.u32 2147483647, %v6889_v22 }
 0x1db   : > { %v6942_v8 = vadd.f32 %v2256_v2, %v7684_v43  ;;  %v4839_v41 = vpop.eup %4838  ;;  %4846 = vlog2.f32 %v2266_v39  ;;  %v2293_v62 = vadd.f32 1.0, %v6919_v30  ;;  %v2238_v18 = vsel %vm6909_vm2, %v2235_v34, %v2232_v15  ;;  %v7688_v11 = vld [vmem:[#allocation40_spill] sm:$0xff] }
 0x1dc   : > { %v2270_v51 = vadd.f32 1.0, %v2269_v47  ;;  %v2275_v4 = vadd.f32 1.0, %v6927_v23  ;;  %v1816_v2 = vmul.f32 1.442695, %v1697_v61  ;;  %vm6952_vm5 = vcmp.lt.f32.partialorder %v2245_v42, 0.0004427343 }
 0x1dd   : > { %4848 = vpow2.f32 %v1810_v49  ;;  %v1631_v54 = vand.u32 2147483647, %v6938_v48  ;;  %v2491_v58 = vpack.c.bf16 %v6708_v24, %v6631_v14  ;;  %v1421_v9 = vadd.f32 %v6211_v46, %v7687_v36  ;;  %v4841_v39 = vpop.eup %4840  ;;  %v7694_v36 = vld [vmem:[#allocation12_spill] sm:$0xff] }
 0x1de   : > { %v2259_v3 = vmul.f32 0.6931472, %v4839_v41  ;;  %v1566_v34 = vmax.f32 %v6879_v0, 0.0  ;;  %4850 = vpow2.f32 %v1816_v2  ;;  %v1413_v15 = vadd.f32 %v6218_v50, %v7688_v11  ;;  %v6964_v42 = vpop.eup %4842 }
 0x1df   : > { %v6968_v47 = vadd.f32 %v2238_v18, %v1558_v20  ;;  %v2272_v49 = vand.u32 2147483647, %v6897_v33  ;;  %4852 = vlog2.f32 %v2293_v62  ;;  %v2296_v14 = vmul.f32 -0.5, %v6919_v30  ;;  %4368 = vmatmul.mubr.msk.bf16.gmra.mrb[32].mxu1 %vm2541_vm3, %v2491_v58 }
 0x1e0   : > { %v6974_v46 = vmul.f32 %v6889_v22, %v2288_v26  ;;  %v1695_v24 = vsub.f32 0.0, %v1631_v54  ;;  %v6977_v61 = vadd.f32 %v6853_v37, %v1421_v9  ;;  %v6980_v50 = vadd.f32 %v6853_v37, %v1413_v15 }
 0x1e1   : > { %v2241_v59 = vmul.f32 0.6931472, %v4841_v39  ;;  %vm6982_vm6 = vcmp.lt.f32.partialorder %v2290_v56, 0.0004427343  ;;  %v6987_v41 = vmul.f32 %v6897_v33, %v2270_v51  ;;  %v2299_v62 = vand.u32 2147483647, %v6919_v30 }
 0x1e2   : > { %4854 = vlog2.f32 %v2275_v4  ;;  %v2265_v22 = vsel %vm6932_vm4, %v6930_v19, %v2259_v3  ;;  %v2320_v26 = vadd.f32 1.0, %v6964_v42  ;;  %v1812_v18 = vmul.f32 1.442695, %v1695_v24  ;;  %v4845_v54 = vpop.eup %4844  ;;  %v7693_v4 = vld [vmem:[#allocation45_spill] sm:$0xff] }
 0x1e3   : > { %v1636_v2 = vand.u32 2147483647, %v6977_v61  ;;  %vm6995_vm7 = vcmp.lt.f32.partialorder %v2272_v49, 0.0004427343  ;;  %v2297_v58 = vadd.f32 1.0, %v2296_v14  ;;  %v2278_v33 = vmul.f32 -0.5, %v6927_v23 }
 0x1e4   : > { %v1634_v51 = vand.u32 2147483647, %v6980_v50  ;;  %v1424_v9 = vadd.f32 %v7694_v36, %v7693_v4  ;;  %4856 = vpow2.f32 %v1812_v18  ;;  %v1416_v39 = vadd.f32 %v6242_v32, %v7695_v1 }
 0x1e5   : > { %v1700_v19 = vsub.f32 0.0, %v1636_v2  ;;  %v2492_v3 = vpack.c.bf16 %v6812_v45, %v6778_v17  ;;  %v4847_v11 = vpop.eup %4846  ;;  %v2281_v15 = vand.u32 2147483647, %v6927_v23  ;;  %v2493_v24 = vpack.c.bf16 %v6788_v63, %v6749_v44 }
 0x1e6   : > { %v1698_v49 = vsub.f32 0.0, %v1634_v51  ;;  %v7009_v14 = vadd.f32 %v6853_v37, %v1424_v9  ;;  %v2247_v18 = vsel %vm6952_vm5, %v6945_v38, %v2241_v59  ;;  %v2286_v2 = vmul.f32 0.6931472, %v4845_v54 }
 0x1e7   : > { %4858 = vlog2.f32 %v2320_v26  ;;  %v1822_v32 = vmul.f32 1.442695, %v1700_v19  ;;  %4371 = vmatprep.mubr.msk.bf16.mxu1 %vm2541_vm3, %v2492_v3  ;;  %v7017_v17 = vpop.eup %4848  ;;  %v7021_v45 = vadd.f32 %v2265_v22, %v1561_v6  ;;  %v1569_v51 = vmax.f32 %v6901_v16, 0.0 }
 0x1e8   : > { %v1818_v4 = vmul.f32 1.442695, %v1698_v49  ;;  %v7025_v44 = vadd.f32 %v6853_v37, %v1416_v39  ;;  %4372 = vmatmul.mubr.msk.bf16.gmra.mrb[36].mxu1 %vm2541_vm3, %v2493_v24  ;;  %v7028_v63 = vpop.eup %4850  ;;  %v2268_v38 = vmul.f32 0.6931472, %v4847_v11  ;;  %vm7030_vm8 = vcmp.lt.f32.partialorder %v2299_v62, 0.0004427343 }
 0x1e9   : > { %v2279_v59 = vadd.f32 1.0, %v2278_v33  ;;  %4860 = vpow2.f32 %v1822_v32  ;;  %v1637_v12 = vand.u32 2147483647, %v7009_v14  ;;  %v4853_v6 = vpop.eup %4852  ;;  %v7037_v22 = vadd.f32 %v2247_v18, %v1559_v35  ;;  %v7700_v11 = vld [vmem:[#allocation46_spill] sm:$0xff]  ;;  %v7701_v49 = vld [vmem:[#allocation43_spill] sm:$0xff] }
 0x1ea   : > { %v2298_v26 = vmul.f32 %v6919_v30, %v2297_v58  ;;  %vm7040_vm9 = vcmp.lt.f32.partialorder %v2281_v15, 0.0004427343  ;;  %v1567_v62 = vmax.f32 %v6938_v48, 0.0  ;;  %v2292_v33 = vsel %vm6982_vm6, %v6974_v46, %v2286_v2 }
 0x1eb   : > { %v2302_v36 = vadd.f32 1.0, %v7017_v17  ;;  %v2329_v9 = vadd.f32 1.0, %v7028_v63  ;;  %4862 = vpow2.f32 %v1818_v4  ;;  %v2323_v35 = vmul.f32 -0.5, %v6964_v42 }
 0x1ec   : > { %v4855_v29 = vpop.eup %4854  ;;  %v2326_v30 = vand.u32 2147483647, %v6964_v42  ;;  %v1701_v58 = vsub.f32 0.0, %v1637_v12  ;;  %v1635_v19 = vand.u32 2147483647, %v7025_v44  ;;  %v2274_v1 = vsel %vm6995_vm7, %v6987_v41, %v2268_v38 }
 0x1ed   : > { %v2295_v39 = vmul.f32 0.6931472, %v4853_v6  ;;  %v2280_v46 = vmul.f32 %v6927_v23, %v2279_v59  ;;  %4864 = vlog2.f32 %v2329_v9  ;;  %v1437_v15 = vadd.f32 %v6290_v27, %v7700_v11  ;;  %v7704_v59 = vld [vmem:[#allocation48_spill] sm:$0xff] }
 0x1ee   : > { %v1824_v20 = vmul.f32 1.442695, %v1701_v58  ;;  %v1699_v3 = vsub.f32 0.0, %v1635_v19  ;;  %v1429_v24 = vadd.f32 %v6318_v10, %v7701_v49  ;;  %v7061_v18 = vpop.eup %4856  ;;  %v7065_v2 = vadd.f32 %v2292_v33, %v1564_v28  ;;  %v7707_v11 = vld [vmem:[#allocation52_spill] sm:$0xff] }
 0x1ef   : > { %v2277_v56 = vmul.f32 0.6931472, %v4855_v29  ;;  %4866 = vlog2.f32 %v2302_v36  ;;  %v2305_v41 = vmul.f32 -0.5, %v7017_v17  ;;  %v7070_v23 = vadd.f32 %v2274_v1, %v1562_v57 }
 0x1f0   : > { %v2324_v32 = vadd.f32 1.0, %v2323_v35  ;;  %vm7072_vm10 = vcmp.lt.f32.partialorder %v2326_v30, 0.0004427343  ;;  %v2311_v10 = vadd.f32 1.0, %v7061_v18  ;;  %4868 = vpow2.f32 %v1824_v20 }
 0x1f1   : > { %v4859_v4 = vpop.eup %4858  ;;  %v1820_v13 = vmul.f32 1.442695, %v1699_v3  ;;  %v7078_v28 = vadd.f32 %v6853_v37, %v1437_v15  ;;  %v7081_v38 = vadd.f32 %v6853_v37, %v1429_v24  ;;  %v2301_v52 = vsel %vm7030_vm8, %v2298_v26, %v2295_v39  ;;  %v7706_v3 = vld [vmem:[#allocation47_spill] sm:$0xff] }
 0x1f2   : > { %v2308_v57 = vand.u32 2147483647, %v7017_v17  ;;  %4870 = vlog2.f32 %v2311_v10  ;;  %v1440_v12 = vadd.f32 %v6336_v53, %v7704_v59  ;;  %v2283_v33 = vsel %vm7040_vm9, %v2280_v46, %v2277_v56 }
 0x1f3   : > { %v7088_v6 = vpop.eup %4860  ;;  %v2306_v36 = vadd.f32 1.0, %v2305_v41  ;;  %4872 = vpow2.f32 %v1820_v13  ;;  %v1640_v9 = vand.u32 2147483647, %v7078_v28  ;;  %v2322_v29 = vmul.f32 0.6931472, %v4859_v4 }
 0x1f4   : > { %v2332_v35 = vmul.f32 -0.5, %v7028_v63  ;;  %v2335_v43 = vand.u32 2147483647, %v7028_v63  ;;  %v2356_v26 = vadd.f32 1.0, %v7088_v6  ;;  %v2325_v53 = vmul.f32 %v6964_v42, %v2324_v32 }
 0x1f5   : > { %v7096_v30 = vpop.eup %4862  ;;  %v2314_v58 = vmul.f32 -0.5, %v7061_v18  ;;  %v1704_v19 = vsub.f32 0.0, %v1640_v9  ;;  %v1638_v54 = vand.u32 2147483647, %v7081_v38  ;;  %v7103_v1 = vadd.f32 %v2301_v52, %v1565_v7 }
 0x1f6   : > { %v7705_v39 = vmax.f32 %v6802_v5, 0.0  ;;  %v7110_v20 = vadd.f32 %v6853_v37, %v1440_v12  ;;  %v1432_v15 = vadd.f32 %v7707_v11, %v7706_v3  ;;  %vm7114_vm11 = vcmp.lt.f32.partialorder %v2308_v57, 0.0004427343 }
 0x1f7   : > { %v4865_v42 = vpop.eup %4864  ;;  %4874 = vlog2.f32 %v2356_v26  ;;  %v2338_v60 = vadd.f32 1.0, %v7096_v30  ;;  %v1830_v7 = vmul.f32 1.442695, %v1704_v19  ;;  %v2328_v5 = vsel %vm7072_vm10, %v2325_v53, %v2322_v29 }
 0x1f8   : > { %v7107_v46 = vadd.f32 %v2283_v33, %v7705_v39  ;;  %v2307_v24 = vmul.f32 %v7017_v17, %v2306_v36  ;;  %v2333_v56 = vadd.f32 1.0, %v2332_v35  ;;  %vm7122_vm12 = vcmp.lt.f32.partialorder %v2335_v43, 0.0004427343 }
 0x1f9   : > { %v4867_v32 = vpop.eup %4866  ;;  %v2315_v10 = vadd.f32 1.0, %v2314_v58  ;;  %v2317_v4 = vand.u32 2147483647, %v7061_v18  ;;  %4876 = vpow2.f32 %v1830_v7  ;;  %v1702_v13 = vsub.f32 0.0, %v1638_v54 }
 0x1fa   : > { %v2331_v52 = vmul.f32 0.6931472, %v4865_v42  ;;  %v1641_v57 = vand.u32 2147483647, %v7110_v20  ;;  %v7129_v59 = vadd.f32 %v6853_v37, %v1432_v15  ;;  %v2494_v17 = vpack.c.bf16 %v6923_v55, %v6864_v40  ;;  %v7133_v27 = vpop.eup %4868 }
 0x1fb   : > { %v2359_v12 = vmul.f32 -0.5, %v7088_v6  ;;  %4878 = vlog2.f32 %v2338_v60  ;;  %v1826_v33 = vmul.f32 1.442695, %v1702_v13  ;;  %v2495_v36 = vpack.c.bf16 %v6885_v31, %v6845_v21 }
 0x1fc   : > { %v4871_v9 = vpop.eup %4870  ;;  %v2304_v29 = vmul.f32 0.6931472, %v4867_v32  ;;  %v2334_v35 = vmul.f32 %v7028_v63, %v2333_v56  ;;  %v2365_v43 = vadd.f32 1.0, %v7133_v27  ;;  %v1705_v37 = vsub.f32 0.0, %v1641_v57  ;;  %4375 = vmatprep.mubr.msk.bf16.mxu1 %vm2541_vm3, %v2494_v17 }
 0x1fd   : > { %v7141_v26 = vpop.eup %4872  ;;  %v2313_v40 = vmul.f32 0.6931472, %v4871_v9  ;;  %v2316_v55 = vmul.f32 %v7061_v18, %v2315_v10  ;;  %4880 = vpow2.f32 %v1826_v33  ;;  %v1639_v53 = vand.u32 2147483647, %v7129_v59  ;;  %4376 = vmatmul.mubr.msk.bf16.gmra.mrb[40].mxu1 %vm2541_vm3, %v2495_v36 }
 0x1fe   : > { %v2337_v21 = vsel %vm7122_vm12, %v2334_v35, %v2331_v52  ;;  %vm2318_vm13 = vcmp.lt.f32.partialorder %v2317_v4, 0.0004427343  ;;  %4882 = vlog2.f32 %v2365_v43  ;;  %v2347_v31 = vadd.f32 1.0, %v7141_v26 }
 0x1ff   : > { %v7712_v63 = vmax.f32 %v6856_v25, 0.0  ;;  %v2319_v19 = vsel %vm2318_vm13, %v2316_v55, %v2313_v40  ;;  %v2360_v54 = vadd.f32 1.0, %v2359_v12  ;;  %v1832_v39 = vmul.f32 1.442695, %v1705_v37 }
 0x200   : > { %v2310_v18 = vsel %vm7114_vm11, %v2307_v24, %v2304_v29  ;;  %v2341_v3 = vmul.f32 -0.5, %v7096_v30  ;;  %4884 = vlog2.f32 %v2347_v31  ;;  %v1703_v11 = vsub.f32 0.0, %v1639_v53 }
 0x201   : > { %v7151_v58 = vadd.f32 %v2328_v5, %v7712_v63  ;;  %v4875_v15 = vpop.eup %4874  ;;  %v7158_v42 = vadd.f32 %v2337_v21, %v1569_v51  ;;  %v2463_v25 = vadd.f32 %v2319_v19, %v1567_v62  ;;  %v2368_v60 = vmul.f32 -0.5, %v7133_v27 }
 0x202   : > { %4886 = vpow2.f32 %v1832_v39  ;;  %v1828_v7 = vmul.f32 1.442695, %v1703_v11  ;;  %v2496_v49 = vpack.c.bf16 %v7037_v22, %v6968_v47  ;;  %v2497_v5 = vpack.c.bf16 %v7021_v45, %v6942_v8 }
 0x203   : > { %v2498_v24 = vpack.c.bf16 %v7107_v46, %v7070_v23  ;;  %v7169_v56 = vpop.eup %4876  ;;  %v2462_v16 = vadd.f32 %v2310_v18, %v1566_v34  ;;  %v2362_v48 = vand.u32 2147483647, %v7088_v6  ;;  %v2350_v51 = vmul.f32 -0.5, %v7141_v26 }
 0x204   : > { %v2499_v62 = vpack.c.bf16 %v7103_v1, %v7065_v2  ;;  %v2358_v41 = vmul.f32 0.6931472, %v4875_v15  ;;  %v2344_v47 = vand.u32 2147483647, %v7096_v30  ;;  %v2392_v8 = vadd.f32 1.0, %v7169_v56  ;;  %4379 = vmatprep.mubr.msk.bf16.mxu1 %vm2541_vm3, %v2496_v49 }
 0x205   : > { %v4879_v45 = vpop.eup %4878  ;;  %v2369_v22 = vadd.f32 1.0, %v2368_v60  ;;  %4888 = vpow2.f32 %v1828_v7  ;;  %4380 = vmatmul.mubr.msk.bf16.gmra.mrb[44].mxu1 %vm2541_vm3, %v2497_v5  ;;  %v2500_v0 = vpack.c.bf16 %v2463_v25, %v2462_v16  ;;  %v2501_v34 = vpack.c.bf16 %v7158_v42, %v7151_v58 }
 0x206   : > { %v2361_v23 = vmul.f32 %v7088_v6, %v2360_v54  ;;  %v2342_v46 = vadd.f32 1.0, %v2341_v3  ;;  %v2371_v2 = vand.u32 2147483647, %v7133_v27  ;;  %v2353_v1 = vand.u32 2147483647, %v7141_v26  ;;  %4383 = vmatprep.mubr.msk.bf16.mxu1 %vm2541_vm3, %v2498_v24 }
 0x207   : > { %v7187_v32 = vpop.eup %4880  ;;  %v1572_v10 = vmax.f32 %v6977_v61, 0.0  ;;  %vm7190_vm14 = vcmp.lt.f32.partialorder %v2362_v48, 0.0004427343  ;;  %v2351_v13 = vadd.f32 1.0, %v2350_v51  ;;  %v2340_v57 = vmul.f32 0.6931472, %v4879_v45 }
 0x208   : > { %v4883_v52 = vpop.eup %4882  ;;  %v2364_v6 = vsel %vm7190_vm14, %v2361_v23, %v2358_v41  ;;  %4890 = vlog2.f32 %v2392_v8  ;;  %v2374_v17 = vadd.f32 1.0, %v7187_v32  ;;  %v1573_v12 = vmax.f32 %v7009_v14, 0.0 }
 0x209   : > { %v2367_v33 = vmul.f32 0.6931472, %v4883_v52  ;;  %v2370_v36 = vmul.f32 %v7133_v27, %v2369_v22  ;;  %v1571_v61 = vmax.f32 %v7025_v44, 0.0  ;;  %v2343_v29 = vmul.f32 %v7096_v30, %v2342_v46 }
 0x20a   : > { %v4885_v9 = vpop.eup %4884  ;;  %vm7201_vm15 = vcmp.lt.f32.partialorder %v2344_v47, 0.0004427343  ;;  %vm2372_vm0 = vcmp.lt.f32.partialorder %v2371_v2, 0.0004427343  ;;  %vm2354_vm1 = vcmp.lt.f32.partialorder %v2353_v1, 0.0004427343  ;;  %v2468_v37 = vadd.f32 %v2364_v6, %v1572_v10 }
 0x20b   : > { %v2373_v40 = vsel %vm2372_vm0, %v2370_v36, %v2367_v33  ;;  %v2349_v55 = vmul.f32 0.6931472, %v4885_v9  ;;  %v2352_v14 = vmul.f32 %v7141_v26, %v2351_v13  ;;  %v2346_v27 = vsel %vm7201_vm15, %v2343_v29, %v2340_v57 }
 0x20c   : > { %v4887_v43 = vpop.eup %4886  ;;  %v2469_v53 = vadd.f32 %v2373_v40, %v1573_v12  ;;  %4892 = vlog2.f32 %v2374_v17  ;;  %v1570_v30 = vmax.f32 %v6980_v50, 0.0  ;;  %v2395_v26 = vmul.f32 -0.5, %v7169_v56  ;;  %v7229_v17 = vld [vmem:[%s7390_s6] ss:$0 sm:$0xff] }
 0x20d   : > { %v2401_v44 = vadd.f32 1.0, %v4887_v43  ;;  %v2355_v21 = vsel %vm2354_vm1, %v2352_v14, %v2349_v55  ;;  %4384 = vmatmul.mubr.msk.bf16.gmra.mrb[48].mxu1 %vm2541_vm3, %v2499_v62  ;;  %v2404_v54 = vmul.f32 -0.5, %v4887_v43  ;;  %v2377_v50 = vmul.f32 -0.5, %v7187_v32 }
 0x20e   : > { %v2467_v31 = vadd.f32 %v2355_v21, %v1571_v61  ;;  %4387 = vmatprep.mubr.msk.bf16.mxu1 %vm2541_vm3, %v2500_v0  ;;  %v2503_v63 = vpack.c.bf16 %v2469_v53, %v2468_v37  ;;  %v2466_v19 = vadd.f32 %v2346_v27, %v1570_v30  ;;  %v2396_v11 = vadd.f32 1.0, %v2395_v26 }
 0x20f   : > { %4894 = vlog2.f32 %v2401_v44  ;;  %v4889_v58 = vpop.eup %4888  ;;  %v2398_v15 = vand.u32 2147483647, %v7169_v56  ;;  %v2405_v42 = vadd.f32 1.0, %v2404_v54  ;;  %v2407_v49 = vand.u32 2147483647, %v4887_v43 }
 0x210   : > { %v2383_v39 = vadd.f32 1.0, %v4889_v58  ;;  %v2502_v18 = vpack.c.bf16 %v2467_v31, %v2466_v19  ;;  %v2386_v60 = vmul.f32 -0.5, %v4889_v58  ;;  %v2397_v5 = vmul.f32 %v7169_v56, %v2396_v11 }
 0x211   : > { %v2378_v24 = vadd.f32 1.0, %v2377_v50  ;;  %vm2399_vm2 = vcmp.lt.f32.partialorder %v2398_v15, 0.0004427343  ;;  %v2380_v48 = vand.u32 2147483647, %v7187_v32  ;;  %v2406_v51 = vmul.f32 %v4887_v43, %v2405_v42 }
 0x212   : > { %v4891_v3 = vpop.eup %4890  ;;  %4896 = vlog2.f32 %v2383_v39  ;;  %v2387_v8 = vadd.f32 1.0, %v2386_v60  ;;  %v1576_v45 = vmax.f32 %v7078_v28, 0.0  ;;  %v1577_v22 = vmax.f32 %v7110_v20, 0.0 }
 0x213   : > { %v2394_v25 = vmul.f32 0.6931472, %v4891_v3  ;;  %vm2408_vm4 = vcmp.lt.f32.partialorder %v2407_v49, 0.0004427343  ;;  %v2389_v0 = vand.u32 2147483647, %v4889_v58 }
 0x214   : > { %vm2381_vm5 = vcmp.lt.f32.partialorder %v2380_v48, 0.0004427343  ;;  %v2388_v4 = vmul.f32 %v4889_v58, %v2387_v8  ;;  %v1574_v13 = vmax.f32 %v7081_v38, 0.0  ;;  %v1575_v28 = vmax.f32 %v7129_v59, 0.0 }
 0x215   : > { %4388 = vmatmul.mubr.msk.bf16.gmra.mrb[52].mxu1 %vm2541_vm3, %v2501_v34  ;;  %v2400_v62 = vsel %vm2399_vm2, %v2397_v5, %v2394_v25  ;;  %v2379_v34 = vmul.f32 %v7187_v32, %v2378_v24  ;;  %vm2390_vm6 = vcmp.lt.f32.partialorder %v2389_v0, 0.0004427343 }
 0x216   : > { %v4893_v7 = vpop.eup %4892  ;;  %4391 = vmatprep.mubr.msk.bf16.mxu1 %vm2541_vm3, %v2502_v18  ;;  %v2472_v46 = vadd.f32 %v2400_v62, %v1576_v45 }
 0x217   : > { %v2376_v41 = vmul.f32 0.6931472, %v4893_v7 }
 0x219   : > { %v4895_v16 = vpop.eup %4894  ;;  %v2382_v1 = vsel %vm2381_vm5, %v2379_v34, %v2376_v41 }
 0x21a   : > { %v2403_v47 = vmul.f32 0.6931472, %v4895_v16  ;;  %v2470_v6 = vadd.f32 %v2382_v1, %v1574_v13 }
 0x21c   : > { %v2409_v23 = vsel %vm2408_vm4, %v2406_v51, %v2403_v47  ;;  %v4897_v56 = vpop.eup %4896 }
 0x21d   : > { %v2473_v2 = vadd.f32 %v2409_v23, %v1577_v22  ;;  %v2385_v10 = vmul.f32 0.6931472, %v4897_v56  ;;  %4392 = vmatmul.mubr.msk.bf16.gmra.mrb[56].mxu1 %vm2541_vm3, %v2503_v63 }
 0x21f   : > { %v2505_v20 = vpack.c.bf16 %v2473_v2, %v2472_v46  ;;  %v2391_v52 = vsel %vm2390_vm6, %v2388_v4, %v2385_v10 }
 0x220   : > { %v2471_v57 = vadd.f32 %v2391_v52, %v1575_v28 }
 0x222   : > { %v2504_v32 = vpack.c.bf16 %v2471_v57, %v2470_v6 }
 0x224   : > { %4395 = vmatprep.mubr.msk.bf16.mxu1 %vm2541_vm3, %v2504_v32 }
 0x225   : > { %4396 = vmatmul.mubr.msk.bf16.gmra.mrb[60].mxu1 %vm2541_vm3, %v2505_v20 }
 0x239   : > { %v4337_v12 = vpop.f32.mrb[0].mxu1 }
 0x23a   : > { %v2685_v38 = vadd.f32 %v4337_v12, %v7229_v17  ;;  %v2676_v33 = vpop.f32.mrb[1].mxu1 }
 0x23b   : > { %v2677_v59 = vadd.f32 %v7229_v17, %v2676_v33  ;;  %v4338_v36 = vpop.f32.mrb[2].mxu1 }
 0x23c   : > { %v2933_v61 = vmul.f32 0.5, %v2685_v38  ;;  %v2688_v9 = vadd.f32 %v4338_v36, %v7229_v17  ;;  %v2679_v29 = vpop.f32.mrb[3].mxu1 }
 0x23d   : > { %v2931_v35 = vmul.f32 0.5, %v2677_v59  ;;  %v2680_v43 = vadd.f32 %v7229_v17, %v2679_v29 }
 0x23e   : > { %4898 = vtanh.f32 %v2933_v61  ;;  %v2934_v37 = vmul.f32 0.5, %v2688_v9 }
 0x23f   : > { %4900 = vtanh.f32 %v2931_v35  ;;  %v2932_v40 = vmul.f32 0.5, %v2680_v43 }
 0x240   : > { %4902 = vtanh.f32 %v2934_v37 }
 0x241   : > { %4904 = vtanh.f32 %v2932_v40 }
 0x242   : > { %v4341_v55 = vpop.f32.mrb[4].mxu1 }
 0x243   : > { %v2701_v14 = vadd.f32 %v4341_v55, %v7229_v17  ;;  %v2692_v27 = vpop.f32.mrb[5].mxu1 }
 0x244   : > { %v2693_v53 = vadd.f32 %v7229_v17, %v2692_v27  ;;  %v4342_v44 = vpop.f32.mrb[6].mxu1 }
 0x245   : > { %v2937_v30 = vmul.f32 0.5, %v2701_v14  ;;  %v2704_v21 = vadd.f32 %v4342_v44, %v7229_v17  ;;  %v2695_v31 = vpop.f32.mrb[7].mxu1 }
 0x246   : > { %v2935_v63 = vmul.f32 0.5, %v2693_v53  ;;  %v2696_v58 = vadd.f32 %v7229_v17, %v2695_v31 }
 0x247   : > { %4906 = vtanh.f32 %v2937_v30  ;;  %v2938_v19 = vmul.f32 0.5, %v2704_v21 }
 0x248   : > { %4908 = vtanh.f32 %v2935_v63  ;;  %v2936_v26 = vmul.f32 0.5, %v2696_v58  ;;  %v4899_v54 = vpop.eup %4898 }
 0x249   : > { %4910 = vtanh.f32 %v2938_v19  ;;  %v4901_v39 = vpop.eup %4900  ;;  %v3061_v18 = vmul.f32 0.5, %v4899_v54 }
 0x24a   : > { %4912 = vtanh.f32 %v2936_v26  ;;  %v4345_v3 = vpop.f32.mrb[8].mxu1  ;;  %v4903_v11 = vpop.eup %4902  ;;  %v3059_v50 = vmul.f32 0.5, %v4901_v39 }
 0x24b   : > { %v2717_v15 = vadd.f32 %v4345_v3, %v7229_v17  ;;  %v2708_v42 = vpop.f32.mrb[9].mxu1  ;;  %v4905_v25 = vpop.eup %4904  ;;  %v3062_v60 = vmul.f32 0.5, %v4903_v11  ;;  %v3125_v51 = vadd.f32 0.5, %v3061_v18 }
 0x24c   : > { %v2709_v7 = vadd.f32 %v7229_v17, %v2708_v42  ;;  %v4346_v49 = vpop.f32.mrb[10].mxu1  ;;  %v3060_v5 = vmul.f32 0.5, %v4905_v25  ;;  %v3123_v8 = vadd.f32 0.5, %v3059_v50 }
 0x24d   : > { %v2941_v24 = vmul.f32 0.5, %v2717_v15  ;;  %v2720_v16 = vadd.f32 %v4346_v49, %v7229_v17  ;;  %v2711_v48 = vpop.f32.mrb[11].mxu1  ;;  %v3126_v62 = vadd.f32 0.5, %v3062_v60 }
 0x24e   : > { %v2939_v41 = vmul.f32 0.5, %v2709_v7  ;;  %v2712_v47 = vadd.f32 %v7229_v17, %v2711_v48  ;;  %v3124_v45 = vadd.f32 0.5, %v3060_v5 }
 0x24f   : > { %4914 = vtanh.f32 %v2941_v24  ;;  %v2942_v22 = vmul.f32 0.5, %v2720_v16  ;;  %v3978_v0 = vpack.c.bf16 %v3126_v62, %v3125_v51 }
 0x250   : > { %4916 = vtanh.f32 %v2939_v41  ;;  %v2940_v34 = vmul.f32 0.5, %v2712_v47  ;;  %v3973_v56 = vpack.c.bf16 %v3124_v45, %v3123_v8 }
 0x251   : > { %v4907_v23 = vpop.eup %4906  ;;  %4918 = vtanh.f32 %v2942_v22  ;;  %4161 = vst [vmem:[%s7246_s15 + $0x8] sm:$0xff] %v3978_v0  }
 0x252   : > { %v4909_v46 = vpop.eup %4908  ;;  %v3065_v2 = vmul.f32 0.5, %v4907_v23  ;;  %4920 = vtanh.f32 %v2940_v34  ;;  %v4349_v1 = vpop.f32.mrb[12].mxu1  ;;  %3974 = vst [vmem:[%s7246_s15] sm:$0xff] %v3973_v56  }
 0x253   : > { %v4911_v10 = vpop.eup %4910  ;;  %v3063_v4 = vmul.f32 0.5, %v4909_v46  ;;  %v2733_v13 = vadd.f32 %v4349_v1, %v7229_v17  ;;  %v2724_v28 = vpop.f32.mrb[13].mxu1 }
 0x254   : > { %v4913_v20 = vpop.eup %4912  ;;  %v3066_v52 = vmul.f32 0.5, %v4911_v10  ;;  %v2725_v6 = vadd.f32 %v7229_v17, %v2724_v28  ;;  %v4350_v57 = vpop.f32.mrb[14].mxu1  ;;  %v3129_v59 = vadd.f32 0.5, %v3065_v2 }
 0x255   : > { %v3064_v32 = vmul.f32 0.5, %v4913_v20  ;;  %v2945_v12 = vmul.f32 0.5, %v2733_v13  ;;  %v2736_v38 = vadd.f32 %v4350_v57, %v7229_v17  ;;  %v2727_v33 = vpop.f32.mrb[15].mxu1  ;;  %v3127_v29 = vadd.f32 0.5, %v3063_v4 }
 0x256   : > { %v3130_v36 = vadd.f32 0.5, %v3066_v52  ;;  %v2943_v61 = vmul.f32 0.5, %v2725_v6  ;;  %v2728_v9 = vadd.f32 %v7229_v17, %v2727_v33 }
 0x257   : > { %v3128_v35 = vadd.f32 0.5, %v3064_v32  ;;  %4922 = vtanh.f32 %v2945_v12  ;;  %v2946_v43 = vmul.f32 0.5, %v2736_v38 }
 0x258   : > { %v3988_v37 = vpack.c.bf16 %v3130_v36, %v3129_v59  ;;  %4924 = vtanh.f32 %v2943_v61  ;;  %v2944_v40 = vmul.f32 0.5, %v2728_v9 }
 0x259   : > { %v4915_v55 = vpop.eup %4914  ;;  %v3983_v14 = vpack.c.bf16 %v3128_v35, %v3127_v29  ;;  %4926 = vtanh.f32 %v2946_v43 }
 0x25a   : > { %v4917_v27 = vpop.eup %4916  ;;  %4163 = vst [vmem:[%s7246_s15 + $0x18] sm:$0xff] %v3988_v37   ;;  %v3069_v53 = vmul.f32 0.5, %v4915_v55  ;;  %4928 = vtanh.f32 %v2944_v40 }
 0x25b   : > { %v4919_v44 = vpop.eup %4918  ;;  %4162 = vst [vmem:[%s7246_s15 + $0x10] sm:$0xff] %v3983_v14   ;;  %v3067_v30 = vmul.f32 0.5, %v4917_v27 }
 0x25c   : > { %v4921_v21 = vpop.eup %4920  ;;  %v3070_v31 = vmul.f32 0.5, %v4919_v44  ;;  %v3133_v58 = vadd.f32 0.5, %v3069_v53 }
 0x25d   : > { %v3068_v63 = vmul.f32 0.5, %v4921_v21  ;;  %v3131_v26 = vadd.f32 0.5, %v3067_v30 }
 0x25e   : > { %v3134_v19 = vadd.f32 0.5, %v3070_v31 }
 0x25f   : > { %v3132_v54 = vadd.f32 0.5, %v3068_v63 }
 0x260   : > { %v3998_v39 = vpack.c.bf16 %v3134_v19, %v3133_v58 }
 0x261   : > { %v4923_v18 = vpop.eup %4922  ;;  %v3993_v3 = vpack.c.bf16 %v3132_v54, %v3131_v26 }
 0x262   : > { %v4925_v11 = vpop.eup %4924  ;;  %4165 = vst [vmem:[%s7246_s15 + $0x28] sm:$0xff] %v3998_v39   ;;  %v3073_v50 = vmul.f32 0.5, %v4923_v18 }
 0x263   : > { %v4927_v15 = vpop.eup %4926  ;;  %4164 = vst [vmem:[%s7246_s15 + $0x20] sm:$0xff] %v3993_v3   ;;  %v3071_v42 = vmul.f32 0.5, %v4925_v11 }
 0x264   : > { %v4929_v25 = vpop.eup %4928  ;;  %v3074_v60 = vmul.f32 0.5, %v4927_v15  ;;  %v3137_v49 = vadd.f32 0.5, %v3073_v50  ;;  %v4353_v24 = vpop.f32.mrb[16].mxu1 }
 0x265   : > { %v3072_v7 = vmul.f32 0.5, %v4929_v25  ;;  %v3135_v16 = vadd.f32 0.5, %v3071_v42  ;;  %v2749_v51 = vadd.f32 %v4353_v24, %v7229_v17  ;;  %v2740_v62 = vpop.f32.mrb[17].mxu1 }
 0x266   : > { %v3138_v5 = vadd.f32 0.5, %v3074_v60  ;;  %v2741_v47 = vadd.f32 %v7229_v17, %v2740_v62  ;;  %v4354_v8 = vpop.f32.mrb[18].mxu1 }
 0x267   : > { %v3136_v48 = vadd.f32 0.5, %v3072_v7  ;;  %v2949_v22 = vmul.f32 0.5, %v2749_v51  ;;  %v2752_v0 = vadd.f32 %v4354_v8, %v7229_v17  ;;  %v2743_v34 = vpop.f32.mrb[19].mxu1 }
 0x268   : > { %v4008_v41 = vpack.c.bf16 %v3138_v5, %v3137_v49  ;;  %v2947_v23 = vmul.f32 0.5, %v2741_v47  ;;  %v2744_v56 = vadd.f32 %v7229_v17, %v2743_v34 }
 0x269   : > { %v4003_v45 = vpack.c.bf16 %v3136_v48, %v3135_v16  ;;  %4930 = vtanh.f32 %v2949_v22  ;;  %v2950_v46 = vmul.f32 0.5, %v2752_v0 }
 0x26a   : > { %4167 = vst [vmem:[%s7246_s15 + $0x38] sm:$0xff] %v4008_v41   ;;  %4932 = vtanh.f32 %v2947_v23  ;;  %v2948_v2 = vmul.f32 0.5, %v2744_v56 }
 0x26b   : > { %4166 = vst [vmem:[%s7246_s15 + $0x30] sm:$0xff] %v4003_v45   ;;  %4934 = vtanh.f32 %v2950_v46 }
 0x26c   : > { %4936 = vtanh.f32 %v2948_v2 }
 0x273   : > { %v4931_v1 = vpop.eup %4930 }
 0x274   : > { %v4933_v10 = vpop.eup %4932  ;;  %v3077_v4 = vmul.f32 0.5, %v4931_v1 }
 0x275   : > { %v4935_v13 = vpop.eup %4934  ;;  %v3075_v28 = vmul.f32 0.5, %v4933_v10 }
 0x276   : > { %v4937_v20 = vpop.eup %4936  ;;  %v3078_v52 = vmul.f32 0.5, %v4935_v13  ;;  %v3141_v57 = vadd.f32 0.5, %v3077_v4 }
 0x277   : > { %v3076_v6 = vmul.f32 0.5, %v4937_v20  ;;  %v3139_v12 = vadd.f32 0.5, %v3075_v28 }
 0x278   : > { %v3142_v32 = vadd.f32 0.5, %v3078_v52 }
 0x279   : > { %v3140_v38 = vadd.f32 0.5, %v3076_v6 }
 0x27a   : > { %v4018_v33 = vpack.c.bf16 %v3142_v32, %v3141_v57 }
 0x27b   : > { %v4013_v36 = vpack.c.bf16 %v3140_v38, %v3139_v12 }
 0x27c   : > { %v4357_v59 = vpop.f32.mrb[20].mxu1  ;;  %4169 = vst [vmem:[%s7246_s15 + $0x48] sm:$0xff] %v4018_v33  }
 0x27d   : > { %v2765_v61 = vadd.f32 %v4357_v59, %v7229_v17  ;;  %v2756_v9 = vpop.f32.mrb[21].mxu1  ;;  %4168 = vst [vmem:[%s7246_s15 + $0x40] sm:$0xff] %v4013_v36  }
 0x27e   : > { %v2757_v29 = vadd.f32 %v7229_v17, %v2756_v9  ;;  %v4358_v35 = vpop.f32.mrb[22].mxu1 }
 0x27f   : > { %v2953_v43 = vmul.f32 0.5, %v2765_v61  ;;  %v2768_v37 = vadd.f32 %v4358_v35, %v7229_v17  ;;  %v2759_v40 = vpop.f32.mrb[23].mxu1 }
 0x280   : > { %v2951_v55 = vmul.f32 0.5, %v2757_v29  ;;  %v2760_v14 = vadd.f32 %v7229_v17, %v2759_v40 }
 0x281   : > { %4938 = vtanh.f32 %v2953_v43  ;;  %v2954_v27 = vmul.f32 0.5, %v2768_v37 }
 0x282   : > { %4940 = vtanh.f32 %v2951_v55  ;;  %v2952_v53 = vmul.f32 0.5, %v2760_v14 }
 0x283   : > { %4942 = vtanh.f32 %v2954_v27 }
 0x284   : > { %4944 = vtanh.f32 %v2952_v53 }
 0x28a   : > { %v4361_v44 = vpop.f32.mrb[24].mxu1 }
 0x28b   : > { %v4939_v30 = vpop.eup %4938  ;;  %v2781_v21 = vadd.f32 %v4361_v44, %v7229_v17  ;;  %v2772_v31 = vpop.f32.mrb[25].mxu1 }
 0x28c   : > { %v4941_v63 = vpop.eup %4940  ;;  %v3081_v58 = vmul.f32 0.5, %v4939_v30  ;;  %v2773_v19 = vadd.f32 %v7229_v17, %v2772_v31  ;;  %v4362_v26 = vpop.f32.mrb[26].mxu1 }
 0x28d   : > { %v4943_v54 = vpop.eup %4942  ;;  %v3079_v39 = vmul.f32 0.5, %v4941_v63  ;;  %v2957_v18 = vmul.f32 0.5, %v2781_v21  ;;  %v2784_v3 = vadd.f32 %v4362_v26, %v7229_v17  ;;  %v2775_v11 = vpop.f32.mrb[27].mxu1 }
 0x28e   : > { %v4945_v50 = vpop.eup %4944  ;;  %v3082_v15 = vmul.f32 0.5, %v4943_v54  ;;  %v2955_v42 = vmul.f32 0.5, %v2773_v19  ;;  %v2776_v25 = vadd.f32 %v7229_v17, %v2775_v11  ;;  %v3145_v49 = vadd.f32 0.5, %v3081_v58 }
 0x28f   : > { %v3080_v60 = vmul.f32 0.5, %v4945_v50  ;;  %4946 = vtanh.f32 %v2957_v18  ;;  %v2958_v7 = vmul.f32 0.5, %v2784_v3  ;;  %v3143_v16 = vadd.f32 0.5, %v3079_v39 }
 0x290   : > { %v3146_v5 = vadd.f32 0.5, %v3082_v15  ;;  %4948 = vtanh.f32 %v2955_v42  ;;  %v2956_v24 = vmul.f32 0.5, %v2776_v25 }
 0x291   : > { %v3144_v48 = vadd.f32 0.5, %v3080_v60  ;;  %4950 = vtanh.f32 %v2958_v7 }
 0x292   : > { %v4028_v51 = vpack.c.bf16 %v3146_v5, %v3145_v49  ;;  %4952 = vtanh.f32 %v2956_v24 }
 0x293   : > { %v4023_v62 = vpack.c.bf16 %v3144_v48, %v3143_v16 }
 0x294   : > { %4171 = vst [vmem:[%s7246_s15 + $0x58] sm:$0xff] %v4028_v51  }
 0x295   : > { %4170 = vst [vmem:[%s7246_s15 + $0x50] sm:$0xff] %v4023_v62  }
 0x299   : > { %v4947_v41 = vpop.eup %4946 }
 0x29a   : > { %v4949_v47 = vpop.eup %4948  ;;  %v3085_v8 = vmul.f32 0.5, %v4947_v41 }
 0x29b   : > { %v4951_v45 = vpop.eup %4950  ;;  %v3083_v22 = vmul.f32 0.5, %v4949_v47 }
 0x29c   : > { %v4365_v0 = vpop.f32.mrb[28].mxu1  ;;  %v4953_v34 = vpop.eup %4952  ;;  %v3086_v23 = vmul.f32 0.5, %v4951_v45  ;;  %v3149_v4 = vadd.f32 0.5, %v3085_v8 }
 0x29d   : > { %v2797_v56 = vadd.f32 %v4365_v0, %v7229_v17  ;;  %v2788_v46 = vpop.f32.mrb[29].mxu1  ;;  %v3084_v2 = vmul.f32 0.5, %v4953_v34  ;;  %v3147_v6 = vadd.f32 0.5, %v3083_v22 }
 0x29e   : > { %v2789_v1 = vadd.f32 %v7229_v17, %v2788_v46  ;;  %v4366_v10 = vpop.f32.mrb[30].mxu1  ;;  %v3150_v13 = vadd.f32 0.5, %v3086_v23 }
 0x29f   : > { %v2961_v28 = vmul.f32 0.5, %v2797_v56  ;;  %v2800_v20 = vadd.f32 %v4366_v10, %v7229_v17  ;;  %v2791_v52 = vpop.f32.mrb[31].mxu1  ;;  %v3148_v57 = vadd.f32 0.5, %v3084_v2 }
 0x2a0   : > { %v2959_v32 = vmul.f32 0.5, %v2789_v1  ;;  %v2792_v12 = vadd.f32 %v7229_v17, %v2791_v52  ;;  %v4038_v38 = vpack.c.bf16 %v3150_v13, %v3149_v4 }
 0x2a1   : > { %4954 = vtanh.f32 %v2961_v28  ;;  %v2962_v33 = vmul.f32 0.5, %v2800_v20  ;;  %v4033_v59 = vpack.c.bf16 %v3148_v57, %v3147_v6 }
 0x2a2   : > { %4956 = vtanh.f32 %v2959_v32  ;;  %v2960_v36 = vmul.f32 0.5, %v2792_v12  ;;  %4173 = vst [vmem:[%s7246_s15 + $0x68] sm:$0xff] %v4038_v38  }
 0x2a3   : > { %4958 = vtanh.f32 %v2962_v33  ;;  %4172 = vst [vmem:[%s7246_s15 + $0x60] sm:$0xff] %v4033_v59  }
 0x2a4   : > { %4960 = vtanh.f32 %v2960_v36 }
 0x2ab   : > { %v4955_v61 = vpop.eup %4954 }
 0x2ac   : > { %v4957_v9 = vpop.eup %4956  ;;  %v3089_v29 = vmul.f32 0.5, %v4955_v61 }
 0x2ad   : > { %v4959_v35 = vpop.eup %4958  ;;  %v3087_v43 = vmul.f32 0.5, %v4957_v9 }
 0x2ae   : > { %v4961_v37 = vpop.eup %4960  ;;  %v3090_v40 = vmul.f32 0.5, %v4959_v35  ;;  %v3153_v14 = vadd.f32 0.5, %v3089_v29 }
 0x2af   : > { %v3088_v55 = vmul.f32 0.5, %v4961_v37  ;;  %v3151_v53 = vadd.f32 0.5, %v3087_v43 }
 0x2b0   : > { %v3154_v27 = vadd.f32 0.5, %v3090_v40 }
 0x2b1   : > { %v3152_v44 = vadd.f32 0.5, %v3088_v55 }
 0x2b2   : > { %v4369_v30 = vpop.f32.mrb[32].mxu1  ;;  %v4048_v21 = vpack.c.bf16 %v3154_v27, %v3153_v14 }
 0x2b3   : > { %v2813_v31 = vadd.f32 %v4369_v30, %v7229_v17  ;;  %v2804_v63 = vpop.f32.mrb[33].mxu1  ;;  %v4043_v58 = vpack.c.bf16 %v3152_v44, %v3151_v53 }
 0x2b4   : > { %v2805_v19 = vadd.f32 %v7229_v17, %v2804_v63  ;;  %v4370_v26 = vpop.f32.mrb[34].mxu1  ;;  %4175 = vst [vmem:[%s7246_s15 + $0x78] sm:$0xff] %v4048_v21  }
 0x2b5   : > { %v2965_v54 = vmul.f32 0.5, %v2813_v31  ;;  %v2816_v39 = vadd.f32 %v4370_v26, %v7229_v17  ;;  %v2807_v18 = vpop.f32.mrb[35].mxu1  ;;  %4174 = vst [vmem:[%s7246_s15 + $0x70] sm:$0xff] %v4043_v58  }
 0x2b6   : > { %v2963_v3 = vmul.f32 0.5, %v2805_v19  ;;  %v2808_v11 = vadd.f32 %v7229_v17, %v2807_v18 }
 0x2b7   : > { %4962 = vtanh.f32 %v2965_v54  ;;  %v2966_v50 = vmul.f32 0.5, %v2816_v39 }
 0x2b8   : > { %4964 = vtanh.f32 %v2963_v3  ;;  %v2964_v15 = vmul.f32 0.5, %v2808_v11 }
 0x2b9   : > { %4966 = vtanh.f32 %v2966_v50 }
 0x2ba   : > { %4968 = vtanh.f32 %v2964_v15 }
 0x2bb   : > { %v4373_v42 = vpop.f32.mrb[36].mxu1 }
 0x2bc   : > { %v2829_v25 = vadd.f32 %v4373_v42, %v7229_v17  ;;  %v2820_v60 = vpop.f32.mrb[37].mxu1 }
 0x2bd   : > { %v2821_v7 = vadd.f32 %v7229_v17, %v2820_v60  ;;  %v4374_v49 = vpop.f32.mrb[38].mxu1 }
 0x2be   : > { %v2969_v5 = vmul.f32 0.5, %v2829_v25  ;;  %v2832_v24 = vadd.f32 %v4374_v49, %v7229_v17  ;;  %v2823_v16 = vpop.f32.mrb[39].mxu1 }
 0x2bf   : > { %v2967_v48 = vmul.f32 0.5, %v2821_v7  ;;  %v2824_v51 = vadd.f32 %v7229_v17, %v2823_v16 }
 0x2c0   : > { %4970 = vtanh.f32 %v2969_v5  ;;  %v2970_v62 = vmul.f32 0.5, %v2832_v24 }
 0x2c1   : > { %4972 = vtanh.f32 %v2967_v48  ;;  %v2968_v41 = vmul.f32 0.5, %v2824_v51  ;;  %v4963_v47 = vpop.eup %4962 }
 0x2c2   : > { %4974 = vtanh.f32 %v2970_v62  ;;  %v4965_v8 = vpop.eup %4964  ;;  %v3093_v45 = vmul.f32 0.5, %v4963_v47 }
 0x2c3   : > { %4976 = vtanh.f32 %v2968_v41  ;;  %v4967_v22 = vpop.eup %4966  ;;  %v3091_v0 = vmul.f32 0.5, %v4965_v8 }
 0x2c4   : > { %v4969_v34 = vpop.eup %4968  ;;  %v3094_v23 = vmul.f32 0.5, %v4967_v22  ;;  %v3157_v46 = vadd.f32 0.5, %v3093_v45 }
 0x2c5   : > { %v3092_v56 = vmul.f32 0.5, %v4969_v34  ;;  %v3155_v1 = vadd.f32 0.5, %v3091_v0 }
 0x2c6   : > { %v3158_v2 = vadd.f32 0.5, %v3094_v23 }
 0x2c7   : > { %v3156_v10 = vadd.f32 0.5, %v3092_v56 }
 0x2c8   : > { %v4058_v4 = vpack.c.bf16 %v3158_v2, %v3157_v46 }
 0x2c9   : > { %v4053_v28 = vpack.c.bf16 %v3156_v10, %v3155_v1 }
 0x2ca   : > { %v4971_v13 = vpop.eup %4970  ;;  %4177 = vst [vmem:[%s7246_s15 + $0x88] sm:$0xff] %v4058_v4  }
 0x2cb   : > { %v4973_v20 = vpop.eup %4972  ;;  %v3097_v52 = vmul.f32 0.5, %v4971_v13  ;;  %4176 = vst [vmem:[%s7246_s15 + $0x80] sm:$0xff] %v4053_v28  }
 0x2cc   : > { %v4975_v6 = vpop.eup %4974  ;;  %v3095_v57 = vmul.f32 0.5, %v4973_v20 }
 0x2cd   : > { %v4977_v32 = vpop.eup %4976  ;;  %v3098_v12 = vmul.f32 0.5, %v4975_v6  ;;  %v3161_v33 = vadd.f32 0.5, %v3097_v52 }
 0x2ce   : > { %v3096_v38 = vmul.f32 0.5, %v4977_v32  ;;  %v3159_v36 = vadd.f32 0.5, %v3095_v57 }
 0x2cf   : > { %v3162_v59 = vadd.f32 0.5, %v3098_v12 }
 0x2d0   : > { %v3160_v61 = vadd.f32 0.5, %v3096_v38  ;;  %v4377_v9 = vpop.f32.mrb[40].mxu1 }
 0x2d1   : > { %v4068_v29 = vpack.c.bf16 %v3162_v59, %v3161_v33  ;;  %v2845_v35 = vadd.f32 %v4377_v9, %v7229_v17  ;;  %v2836_v43 = vpop.f32.mrb[41].mxu1 }
 0x2d2   : > { %v4063_v37 = vpack.c.bf16 %v3160_v61, %v3159_v36  ;;  %v2837_v40 = vadd.f32 %v7229_v17, %v2836_v43  ;;  %v4378_v55 = vpop.f32.mrb[42].mxu1 }
 0x2d3   : > { %4179 = vst [vmem:[%s7246_s15 + $0x98] sm:$0xff] %v4068_v29   ;;  %v2973_v14 = vmul.f32 0.5, %v2845_v35  ;;  %v2848_v27 = vadd.f32 %v4378_v55, %v7229_v17  ;;  %v2839_v53 = vpop.f32.mrb[43].mxu1 }
 0x2d4   : > { %4178 = vst [vmem:[%s7246_s15 + $0x90] sm:$0xff] %v4063_v37   ;;  %v2971_v44 = vmul.f32 0.5, %v2837_v40  ;;  %v2840_v30 = vadd.f32 %v7229_v17, %v2839_v53 }
 0x2d5   : > { %4978 = vtanh.f32 %v2973_v14  ;;  %v2974_v21 = vmul.f32 0.5, %v2848_v27 }
 0x2d6   : > { %4980 = vtanh.f32 %v2971_v44  ;;  %v2972_v31 = vmul.f32 0.5, %v2840_v30 }
 0x2d7   : > { %4982 = vtanh.f32 %v2974_v21 }
 0x2d8   : > { %4984 = vtanh.f32 %v2972_v31  ;;  %v4381_v63 = vpop.f32.mrb[44].mxu1 }
 0x2d9   : > { %v2861_v58 = vadd.f32 %v4381_v63, %v7229_v17  ;;  %v2852_v19 = vpop.f32.mrb[45].mxu1 }
 0x2da   : > { %v2853_v26 = vadd.f32 %v7229_v17, %v2852_v19  ;;  %v4382_v54 = vpop.f32.mrb[46].mxu1 }
 0x2db   : > { %v2977_v39 = vmul.f32 0.5, %v2861_v58  ;;  %v2864_v18 = vadd.f32 %v4382_v54, %v7229_v17  ;;  %v2855_v3 = vpop.f32.mrb[47].mxu1 }
 0x2dc   : > { %v2975_v11 = vmul.f32 0.5, %v2853_v26  ;;  %v2856_v50 = vadd.f32 %v7229_v17, %v2855_v3 }
 0x2dd   : > { %4986 = vtanh.f32 %v2977_v39  ;;  %v2978_v15 = vmul.f32 0.5, %v2864_v18 }
 0x2de   : > { %4988 = vtanh.f32 %v2975_v11  ;;  %v2976_v42 = vmul.f32 0.5, %v2856_v50 }
 0x2df   : > { %v4979_v25 = vpop.eup %4978  ;;  %4990 = vtanh.f32 %v2978_v15 }
 0x2e0   : > { %v4981_v60 = vpop.eup %4980  ;;  %v3101_v7 = vmul.f32 0.5, %v4979_v25  ;;  %4992 = vtanh.f32 %v2976_v42  ;;  %v4385_v49 = vpop.f32.mrb[48].mxu1 }
 0x2e1   : > { %v4983_v5 = vpop.eup %4982  ;;  %v3099_v24 = vmul.f32 0.5, %v4981_v60  ;;  %v2877_v16 = vadd.f32 %v4385_v49, %v7229_v17  ;;  %v2868_v48 = vpop.f32.mrb[49].mxu1 }
 0x2e2   : > { %v4985_v51 = vpop.eup %4984  ;;  %v3102_v62 = vmul.f32 0.5, %v4983_v5  ;;  %v2869_v41 = vadd.f32 %v7229_v17, %v2868_v48  ;;  %v4386_v47 = vpop.f32.mrb[50].mxu1  ;;  %v3165_v34 = vadd.f32 0.5, %v3101_v7 }
 0x2e3   : > { %v3100_v8 = vmul.f32 0.5, %v4985_v51  ;;  %v2981_v45 = vmul.f32 0.5, %v2877_v16  ;;  %v2880_v22 = vadd.f32 %v4386_v47, %v7229_v17  ;;  %v2871_v0 = vpop.f32.mrb[51].mxu1  ;;  %v3163_v2 = vadd.f32 0.5, %v3099_v24 }
 0x2e4   : > { %v3166_v23 = vadd.f32 0.5, %v3102_v62  ;;  %v2979_v56 = vmul.f32 0.5, %v2869_v41  ;;  %v2872_v46 = vadd.f32 %v7229_v17, %v2871_v0 }
 0x2e5   : > { %v3164_v1 = vadd.f32 0.5, %v3100_v8  ;;  %4994 = vtanh.f32 %v2981_v45  ;;  %v2982_v10 = vmul.f32 0.5, %v2880_v22 }
 0x2e6   : > { %v4078_v4 = vpack.c.bf16 %v3166_v23, %v3165_v34  ;;  %4996 = vtanh.f32 %v2979_v56  ;;  %v2980_v13 = vmul.f32 0.5, %v2872_v46 }
 0x2e7   : > { %v4987_v28 = vpop.eup %4986  ;;  %v4073_v20 = vpack.c.bf16 %v3164_v1, %v3163_v2  ;;  %4998 = vtanh.f32 %v2982_v10 }
 0x2e8   : > { %v4989_v52 = vpop.eup %4988  ;;  %4181 = vst [vmem:[%s7246_s15 + $0xa8] sm:$0xff] %v4078_v4   ;;  %v3105_v6 = vmul.f32 0.5, %v4987_v28  ;;  %5000 = vtanh.f32 %v2980_v13  ;;  %v4389_v57 = vpop.f32.mrb[52].mxu1 }
 0x2e9   : > { %v4991_v32 = vpop.eup %4990  ;;  %4180 = vst [vmem:[%s7246_s15 + $0xa0] sm:$0xff] %v4073_v20   ;;  %v3103_v12 = vmul.f32 0.5, %v4989_v52  ;;  %v2893_v38 = vadd.f32 %v4389_v57, %v7229_v17  ;;  %v2884_v33 = vpop.f32.mrb[53].mxu1 }
 0x2ea   : > { %v4993_v59 = vpop.eup %4992  ;;  %v3106_v36 = vmul.f32 0.5, %v4991_v32  ;;  %v2885_v61 = vadd.f32 %v7229_v17, %v2884_v33  ;;  %v4390_v9 = vpop.f32.mrb[54].mxu1  ;;  %v3169_v40 = vadd.f32 0.5, %v3105_v6 }
 0x2eb   : > { %v3104_v29 = vmul.f32 0.5, %v4993_v59  ;;  %v2985_v35 = vmul.f32 0.5, %v2893_v38  ;;  %v2896_v43 = vadd.f32 %v4390_v9, %v7229_v17  ;;  %v2887_v37 = vpop.f32.mrb[55].mxu1  ;;  %v3167_v53 = vadd.f32 0.5, %v3103_v12 }
 0x2ec   : > { %v3170_v55 = vadd.f32 0.5, %v3106_v36  ;;  %v2983_v14 = vmul.f32 0.5, %v2885_v61  ;;  %v2888_v27 = vadd.f32 %v7229_v17, %v2887_v37 }
 0x2ed   : > { %v3168_v44 = vadd.f32 0.5, %v3104_v29  ;;  %5002 = vtanh.f32 %v2985_v35  ;;  %v2986_v30 = vmul.f32 0.5, %v2896_v43 }
 0x2ee   : > { %v4088_v21 = vpack.c.bf16 %v3170_v55, %v3169_v40  ;;  %5004 = vtanh.f32 %v2983_v14  ;;  %v2984_v31 = vmul.f32 0.5, %v2888_v27 }
 0x2ef   : > { %v4995_v63 = vpop.eup %4994  ;;  %v4083_v58 = vpack.c.bf16 %v3168_v44, %v3167_v53  ;;  %5006 = vtanh.f32 %v2986_v30 }
 0x2f0   : > { %v4997_v19 = vpop.eup %4996  ;;  %4183 = vst [vmem:[%s7246_s15 + $0xb8] sm:$0xff] %v4088_v21   ;;  %v3109_v26 = vmul.f32 0.5, %v4995_v63  ;;  %5008 = vtanh.f32 %v2984_v31  ;;  %v4393_v54 = vpop.f32.mrb[56].mxu1 }
 0x2f1   : > { %v4999_v39 = vpop.eup %4998  ;;  %4182 = vst [vmem:[%s7246_s15 + $0xb0] sm:$0xff] %v4083_v58   ;;  %v3107_v18 = vmul.f32 0.5, %v4997_v19  ;;  %v2909_v3 = vadd.f32 %v4393_v54, %v7229_v17  ;;  %v2900_v11 = vpop.f32.mrb[57].mxu1 }
 0x2f2   : > { %v5001_v50 = vpop.eup %5000  ;;  %v3110_v15 = vmul.f32 0.5, %v4999_v39  ;;  %v2901_v42 = vadd.f32 %v7229_v17, %v2900_v11  ;;  %v4394_v25 = vpop.f32.mrb[58].mxu1  ;;  %v3173_v24 = vadd.f32 0.5, %v3109_v26 }
 0x2f3   : > { %v3108_v60 = vmul.f32 0.5, %v5001_v50  ;;  %v2989_v7 = vmul.f32 0.5, %v2909_v3  ;;  %v2912_v49 = vadd.f32 %v4394_v25, %v7229_v17  ;;  %v2903_v5 = vpop.f32.mrb[59].mxu1  ;;  %v3171_v62 = vadd.f32 0.5, %v3107_v18 }
 0x2f4   : > { %v3174_v16 = vadd.f32 0.5, %v3110_v15  ;;  %v2987_v48 = vmul.f32 0.5, %v2901_v42  ;;  %v2904_v51 = vadd.f32 %v7229_v17, %v2903_v5 }
 0x2f5   : > { %v3172_v41 = vadd.f32 0.5, %v3108_v60  ;;  %5010 = vtanh.f32 %v2989_v7  ;;  %v2990_v47 = vmul.f32 0.5, %v2912_v49 }
 0x2f6   : > { %v4098_v8 = vpack.c.bf16 %v3174_v16, %v3173_v24  ;;  %5012 = vtanh.f32 %v2987_v48  ;;  %v2988_v45 = vmul.f32 0.5, %v2904_v51 }
 0x2f7   : > { %v5003_v22 = vpop.eup %5002  ;;  %v4093_v0 = vpack.c.bf16 %v3172_v41, %v3171_v62  ;;  %5014 = vtanh.f32 %v2990_v47 }
 0x2f8   : > { %v5005_v34 = vpop.eup %5004  ;;  %4185 = vst [vmem:[%s7246_s15 + $0xc8] sm:$0xff] %v4098_v8   ;;  %v3113_v23 = vmul.f32 0.5, %v5003_v22  ;;  %5016 = vtanh.f32 %v2988_v45  ;;  %v4397_v56 = vpop.f32.mrb[60].mxu1 }
 0x2f9   : > { %v5007_v46 = vpop.eup %5006  ;;  %4184 = vst [vmem:[%s7246_s15 + $0xc0] sm:$0xff] %v4093_v0   ;;  %v3111_v2 = vmul.f32 0.5, %v5005_v34  ;;  %v2925_v1 = vadd.f32 %v4397_v56, %v7229_v17  ;;  %v2916_v10 = vpop.f32.mrb[61].mxu1 }
 0x2fa   : > { %v5009_v4 = vpop.eup %5008  ;;  %v3114_v13 = vmul.f32 0.5, %v5007_v46  ;;  %v2917_v28 = vadd.f32 %v7229_v17, %v2916_v10  ;;  %v4398_v20 = vpop.f32.mrb[62].mxu1  ;;  %v3177_v12 = vadd.f32 0.5, %v3113_v23 }
 0x2fb   : > { %v3112_v52 = vmul.f32 0.5, %v5009_v4  ;;  %v2993_v6 = vmul.f32 0.5, %v2925_v1  ;;  %v2928_v57 = vadd.f32 %v4398_v20, %v7229_v17  ;;  %v2919_v32 = vpop.f32.mrb[63].mxu1  ;;  %v3175_v36 = vadd.f32 0.5, %v3111_v2 }
 0x2fc   : > { %v3178_v38 = vadd.f32 0.5, %v3114_v13  ;;  %v2991_v33 = vmul.f32 0.5, %v2917_v28  ;;  %v2920_v59 = vadd.f32 %v7229_v17, %v2919_v32 }
 0x2fd   : > { %v3176_v61 = vadd.f32 0.5, %v3112_v52  ;;  %5018 = vtanh.f32 %v2993_v6  ;;  %v2994_v9 = vmul.f32 0.5, %v2928_v57 }
 0x2fe   : > { %v4108_v29 = vpack.c.bf16 %v3178_v38, %v3177_v12  ;;  %5020 = vtanh.f32 %v2991_v33  ;;  %v2992_v35 = vmul.f32 0.5, %v2920_v59 }
 0x2ff   : > { %v5011_v43 = vpop.eup %5010  ;;  %v4103_v37 = vpack.c.bf16 %v3176_v61, %v3175_v36  ;;  %5022 = vtanh.f32 %v2994_v9 }
 0x300   : > { %v5013_v40 = vpop.eup %5012  ;;  %4187 = vst [vmem:[%s7246_s15 + $0xd8] sm:$0xff] %v4108_v29   ;;  %v3117_v55 = vmul.f32 0.5, %v5011_v43  ;;  %5024 = vtanh.f32 %v2992_v35 }
 0x301   : > { %v5015_v14 = vpop.eup %5014  ;;  %4186 = vst [vmem:[%s7246_s15 + $0xd0] sm:$0xff] %v4103_v37   ;;  %v3115_v17 = vmul.f32 0.5, %v5013_v40 }
 0x302   : > { %v5017_v27 = vpop.eup %5016  ;;  %v3118_v53 = vmul.f32 0.5, %v5015_v14  ;;  %v3181_v30 = vadd.f32 0.5, %v3117_v55 }
 0x303   : > { %v3116_v44 = vmul.f32 0.5, %v5017_v27  ;;  %v3179_v31 = vadd.f32 0.5, %v3115_v17 }
 0x304   : > { %v3182_v21 = vadd.f32 0.5, %v3118_v53 }
 0x305   : > { %v3180_v63 = vadd.f32 0.5, %v3116_v44 }
 0x306   : > { %v4118_v58 = vpack.c.bf16 %v3182_v21, %v3181_v30 }
 0x307   : > { %v5019_v19 = vpop.eup %5018  ;;  %v4113_v26 = vpack.c.bf16 %v3180_v63, %v3179_v31 }
 0x308   : > { %v5021_v54 = vpop.eup %5020  ;;  %4189 = vst [vmem:[%s7246_s15 + $0xe8] sm:$0xff] %v4118_v58   ;;  %v3121_v39 = vmul.f32 0.5, %v5019_v19 }
 0x309   : > { %v5023_v18 = vpop.eup %5022  ;;  %4188 = vst [vmem:[%s7246_s15 + $0xe0] sm:$0xff] %v4113_v26   ;;  %v3119_v3 = vmul.f32 0.5, %v5021_v54 }
 0x30a   : > { %v5025_v11 = vpop.eup %5024  ;;  %v3122_v50 = vmul.f32 0.5, %v5023_v18  ;;  %v3185_v42 = vadd.f32 0.5, %v3121_v39 }
 0x30b   : > { %v3120_v15 = vmul.f32 0.5, %v5025_v11  ;;  %v3183_v60 = vadd.f32 0.5, %v3119_v3 }
 0x30c   : > { %v3186_v25 = vadd.f32 0.5, %v3122_v50 }
 0x30d   : > { %v3184_v7 = vadd.f32 0.5, %v3120_v15 }
 0x30e   : > { %v4128_v49 = vpack.c.bf16 %v3186_v25, %v3185_v42 }
 0x30f   : > { %v4123_v5 = vpack.c.bf16 %v3184_v7, %v3183_v60 }
 0x310   : > { %4191 = vst [vmem:[%s7246_s15 + $0xf8] sm:$0xff] %v4128_v49  }
 0x311   : > { %4190 = vst [vmem:[%s7246_s15 + $0xf0] sm:$0xff] %v4123_v5  }
 0x312   : > { %5041 = shalt.err (!%p5038_p3)
}
 0x313   : > { %s5042_s8 = scalar_lea.hbm %s7335_s20, 4096  ;;  %s5046_s14 = scalar_lea.hbm %s7391_s7, 8192 }
 0x314   : > { %p5043_p4 = scmp.ne.s32.totalorder %s7335_s20, %s5042_s8  ;;  %p5047_p9 = scmp.lt.u32.totalorder %s7335_s20, %s7391_s7 }
 0x315   : > { %p5048_p10 = scmp.lt.u32.totalorder %s5046_s14, %s5042_s8  ;;  %p5050_p12 = scmp.lt.u32.totalorder %s5042_s8, %s7335_s20 }
 0x316   : > { %p5044_p7 = pnand %p5043_p4, %p5174_p5 }
 0x317   : > { %p5049_p11 = por %p5048_p10, %p5047_p9 }
 0x318   : > { %p5045_p8 = pneg %p5044_p7 }
 0x319   : > { %p5051_p13 = por %p5050_p12, %p5049_p11 }
 0x31b   : > { %p5052_p0 = pnand %p5051_p13, %p5045_p8 }
 0x31d   : > { %5055 = shalt.err (!%p5052_p0)
}
 0x31e   : > { %s5094_s18 = smov 64   ;;  %s5095_s19 = smov 4  }
 0x31f   : > { %4401 = dma.vmem_to_hbm [thread:$0]  (%p5174_p5), %s7337_s17, 4096, %s7335_s20, %s7343_s28, %s5094_s18, %s5094_s18, %s5095_s19  }
 0x320 PF: > { %p4407_p1 = scmp.ge.s32.totalorder %s5090_s27, 2  ;;  %s3536_s21 = sand.u32 1, %s5078_s24  }
 0x321   : > { %s3537_s22 = scalar_lea.sflag [#allocation3], %s3536_s21 }
 0x322   : > { %p4404_p2 = pnand %p4407_p1, %p5178_p6 }
 0x324   : > { %5073 = dma.done.wait (!%p4404_p2), %s3537_s22, 4096  }
 0x325   : > { %5075 = vsyncadd (!%p4404_p2), %s3537_s22, 4294963200  ;;  %p17_p3 = scmp.ge.s32.totalorder %s5161_s30, 4   ;;  %s7717_s24 = smov %s5082_s25 }
 0x326   : > { %s7718_s25 = smov %s5086_s26  ;;  %s7719_s26 = smov %s5172_s10 }
 0x327   : > { %s7720_s27 = smov %s5161_s30  ;;  %19 = sbr.rel (!%p17_p3) target bundleno = 3 (0x3), region = 86 }
 0x32e   :  { %3542 = vsyncpa [#allocation3], 1 }
 0x32f   :  { %3544 = vsyncpa [#allocation3 + $0x1], 1 }

</bundles_post_ra>
